<compile_context>
chip_gen: v7x
topology: tpu7x:2x2x1
jax: 0.10.0
libtpu: 0.0.40
codegen_flags: <defaults>
</compile_context>

<pallas_src>
import functools

import jax
import jax.numpy as jnp
from jax.experimental import pallas as pl
from jax.experimental.pallas import tpu as pltpu


EPS = 1e-5          # nn.BatchNorm1d default eps
NEG_SLOPE = 0.2     # nn.LeakyReLU(0.2)
STRIDE = 4
PAD = 2
KSIZE = 8


def conv_out_len(L):
    return (L + 2 * PAD - KSIZE) // STRIDE + 1


# ---------------------------------------------------------------------------
# Fused Pallas kernel
# ---------------------------------------------------------------------------
def _fused_forward_kernel(B, L1, L2, L3,
                          p1_ref, w1_ref, b1_ref,
                          w2_ref, b2_ref, g2_ref, be2_ref,
                          w3_ref, b3_ref, g3_ref, be3_ref,
                          wc_ref, bc_ref,
                          feat_ref, out_ref,
                          a1_ref, a2_ref):
    C1, C2, C3 = 32, 64, 128
    Lp1 = 4 * L2 + 4          # padded length consumed by conv2 (per batch)
    Lp2 = 4 * L3 + 4          # padded length consumed by conv3 (per batch)

    # Zero the padded channel-last activation scratch (pad rows must read 0).
    a1_ref[...] = jnp.zeros(a1_ref.shape, jnp.float32)
    a2_ref[...] = jnp.zeros(a2_ref.shape, jnp.float32)

    # ---------------- layer 1: Conv1d(1, 32, 8, 4, 2) + LeakyReLU (VPU) -----
    p1 = p1_ref[...]                                     # (B*L1, 8) patches
    z1 = jnp.zeros((p1.shape[0], C1), jnp.float32)
    for k in range(KSIZE):                               # 8 broadcast FMAs
        z1 = z1 + p1[:, k:k + 1] * w1_ref[k:k + 1, :]
    z1 = z1 + b1_ref[...]
    y1 = jnp.where(z1 >= 0, z1, NEG_SLOPE * z1)          # (B*L1, 32)

    m1 = min(L1, Lp1 - 2)     # rows of h1 that conv2's windows actually read
    for b in range(B):
        a1_ref[b * Lp1 + 2: b * Lp1 + 2 + m1, :] = y1[b * L1: b * L1 + m1, :]

    # -------- Conv1d (stride 4, k 8, pad 2) + BatchNorm1d + LeakyReLU -------
    def conv_bn_lrelu(a_ref, Lp_in, L_out, w_ref, b_ref, g_ref, be_ref, Cout):
        zs = []
        s = jnp.zeros((1, Cout), jnp.float32)
        s2 = jnp.zeros((1, Cout), jnp.float32)
        for b in range(B):
            acc = jnp.zeros((L_out, Cout), jnp.float32)
            for k in range(KSIZE):
                # Tap k: rows b*Lp_in + k, +4, +8, ...  (stride-4 sublane read)
                x_k = a_ref[pl.ds(b * Lp_in + k, L_out, stride=STRIDE), :]
                acc = acc + jnp.dot(x_k.astype(jnp.bfloat16), w_ref[k],
                                    preferred_element_type=jnp.float32)
            z = acc + b_ref[...]                          # (L_out, Cout)
            zs.append(z)
            # one-pass BN statistics (f32 accumulation)
            s = s + jnp.sum(z, axis=0, keepdims=True)
            s2 = s2 + jnp.sum(z * z, axis=0, keepdims=True)
        inv_n = 1.0 / float(B * L_out)
        mean = s * inv_n
        var = s2 * inv_n - mean * mean                    # biased (training)
        scale = g_ref[...] * jax.lax.rsqrt(var + EPS)
        shift = be_ref[...] - mean * scale
        ys = []
        for b in range(B):
            y = zs[b] * scale + shift
            ys.append(jnp.where(y >= 0, y, NEG_SLOPE * y))
        return ys

    # ---------------- layer 2: Conv1d(32, 64) + BN + LeakyReLU --------------
    ys2 = conv_bn_lrelu(a1_ref, Lp1, L2, w2_ref, b2_ref, g2_ref, be2_ref, C2)
    m2 = min(L2, Lp2 - 2)
    for b in range(B):
        a2_ref[b * Lp2 + 2: b * Lp2 + 2 + m2, :] = ys2[b][:m2, :]

    # ---------------- layer 3: Conv1d(64, 128) + BN + LeakyReLU -------------
    ys3 = conv_bn_lrelu(a2_ref, Lp2, L3, w3_ref, b3_ref, g3_ref, be3_ref, C3)

    # --------- feat output (channel-last, lane-dense) + linear head ---------
    wc = wc_ref[...]                                      # (L3, 128) permuted
    bc = bc_ref[...]                                      # (1, 1)
    for b in range(B):
        y3 = ys3[b]                                       # (L3, 128)
        feat_ref[b * L3:(b + 1) * L3, :] = y3
        r = jnp.sum(y3 * wc, axis=1, keepdims=True)       # (L3, 1) lane reduce
        out_ref[b:b + 1, :] = jnp.sum(r, axis=0, keepdims=True) + bc


_VMEM = pl.BlockSpec(memory_space=pltpu.MemorySpace.VMEM)


# ---------------------------------------------------------------------------
# JAX wrapper (layout plumbing on inputs/params only)
# ---------------------------------------------------------------------------
@jax.jit
def conv1d_discriminator_forward(x, params):
    """x: (B, 1, L) float32  ->  (feat (B, 128, L3) NCW, out (B,))."""
    B, _, L = x.shape
    L1 = conv_out_len(L)
    L2 = conv_out_len(L1)
    L3 = conv_out_len(L2)
    Lp1, Lp2 = 4 * L2 + 4, 4 * L3 + 4
    C1, C2, C3 = 32, 64, 128

    # Layer-1 patches straight from the (tiny) network input: pad to the exact
    # window extent 4*(L1+1) and split each stride-4 step into lo/hi chunks.
    need = 4 * (L1 + 1)
    xp = jnp.pad(x[:, 0, :], ((0, 0), (PAD, PAD)))
    xp = jnp.pad(xp, ((0, 0), (0, max(0, need - xp.shape[1]))))[:, :need]
    xc = xp.reshape(B, L1 + 1, STRIDE)
    p1 = jnp.concatenate([xc[:, :L1, :], xc[:, 1:, :]], axis=-1)   # (B, L1, 8)
    p1 = p1.reshape(B * L1, KSIZE).astype(jnp.float32)

    # Weight / param re-layout: per-tap-major, channel-last.
    w1f = params["w1"].reshape(C1, KSIZE).T.astype(jnp.float32)         # (8,32)
    w2t = jnp.transpose(params["w2"], (2, 1, 0)).astype(jnp.bfloat16)   # (8,32,64)
    w3t = jnp.transpose(params["w3"], (2, 1, 0)).astype(jnp.bfloat16)   # (8,64,128)
    wcp = params["wc"].reshape(C3, L3).T.astype(jnp.float32)            # (L3,128)

    b1 = params["b1"].reshape(1, C1).astype(jnp.float32)
    b2 = params["b2"].reshape(1, C2).astype(jnp.float32)
    b3 = params["b3"].reshape(1, C3).astype(jnp.float32)
    g2 = params["g2"].reshape(1, C2).astype(jnp.float32)
    be2 = params["be2"].reshape(1, C2).astype(jnp.float32)
    g3 = params["g3"].reshape(1, C3).astype(jnp.float32)
    be3 = params["be3"].reshape(1, C3).astype(jnp.float32)
    bc = params["bc"].reshape(1, 1).astype(jnp.float32)

    flops = 2 * B * (L1 * KSIZE * C1 + L2 * KSIZE * C1 * C2
                     + L3 * KSIZE * C2 * C3 + L3 * C3)
    bytes_accessed = (4 * (p1.size + w1f.size + b1.size + b2.size + b3.size
                           + g2.size + be2.size + g3.size + be3.size
                           + wcp.size + bc.size + B * L3 * C3 + B)
                      + 2 * (w2t.size + w3t.size))

    kernel = functools.partial(_fused_forward_kernel, B, L1, L2, L3)
    feat_cl, logits = pl.pallas_call(
        kernel,
        out_shape=(jax.ShapeDtypeStruct((B * L3, C3), jnp.float32),
                   jax.ShapeDtypeStruct((B, 1), jnp.float32)),
        in_specs=[_VMEM] * 13,
        out_specs=(_VMEM, _VMEM),
        scratch_shapes=[pltpu.VMEM((B * Lp1, C1), jnp.float32),   # padded h1
                        pltpu.VMEM((B * Lp2, C2), jnp.float32)],  # padded h2
        compiler_params=pltpu.CompilerParams(
            vmem_limit_bytes=32 * 1024 * 1024),
        cost_estimate=pl.CostEstimate(flops=flops,
                                      transcendentals=C2 + C3,
                                      bytes_accessed=bytes_accessed),
    )(p1, w1f, b1, w2t, b2, g2, be2, w3t, b3, g3, be3, wcp, bc)

    # Single layout fix-up to match the PyTorch NCW `feat` output.
    feat = feat_cl.reshape(B, L3, C3).transpose(0, 2, 1)
    out = logits.reshape(-1)
    return feat, out


# ---------------------------------------------------------------------------
# Deterministic synthetic parameters (same shapes as the PyTorch module)
# ---------------------------------------------------------------------------
def init_params(key, input_dim):
    L3 = conv_out_len(conv_out_len(conv_out_len(input_dim)))
    flattened_size = 128 * L3
    ks = jax.random.split(key, 8)
    f32 = jnp.float32

    def nrm(k, shape, scale=0.05):
        return (scale * jax.random.normal(k, shape)).astype(f32)

    params = {
        "w1": nrm(ks[0], (32, 1, KSIZE)),
        "b1": nrm(ks[1], (32,)),
        "w2": nrm(ks[2], (64, 32, KSIZE)),
        "b2": nrm(ks[3], (64,)),
        "g2": jnp.ones((64,), f32),
        "be2": jnp.zeros((64,), f32),
        "w3": nrm(ks[4], (128, 64, KSIZE)),
        "b3": nrm(ks[5], (128,)),
        "g3": jnp.ones((128,), f32),
        "be3": jnp.zeros((128,), f32),
        "wc": nrm(ks[6], (1, flattened_size)),
        "bc": nrm(ks[7], (1,)),
    }
    return params, flattened_size


if __name__ == "__main__":
    # Small shapes consistent with the module: batch=2, 1 input channel,
    # input length 256 (instead of the default 1100) -> L3 = 4, flat = 512.
    INPUT_DIM = 256
    BATCH = 2

    key = jax.random.PRNGKey(0)
    k_params, k_x = jax.random.split(key)
    params, flat_size = init_params(k_params, INPUT_DIM)

    x = jax.random.normal(k_x, (BATCH, 1, INPUT_DIM), dtype=jnp.float32)

    feat, out = conv1d_discriminator_forward(x, params)
    jax.block_until_ready((feat, out))

    L3 = conv_out_len(conv_out_len(conv_out_len(INPUT_DIM)))
    assert feat.shape == (BATCH, 128, L3), feat.shape
    assert out.shape == (BATCH,), out.shape
    assert flat_size == 128 * L3
    assert bool(jnp.all(jnp.isfinite(feat))) and bool(jnp.all(jnp.isfinite(out)))

    print("KERNEL_OK")
</pallas_src>

<mosaic_0001>
module attributes {stable_mosaic.version = 11 : i64} {
  func.func @_fused_forward_kernel(%arg0: memref<128x8xf32, #tpu.memory_space<vmem>>, %arg1: memref<8x32xf32, #tpu.memory_space<vmem>>, %arg2: memref<1x32xf32, #tpu.memory_space<vmem>>, %arg3: memref<8x32x64xbf16, #tpu.memory_space<vmem>>, %arg4: memref<1x64xf32, #tpu.memory_space<vmem>>, %arg5: memref<1x64xf32, #tpu.memory_space<vmem>>, %arg6: memref<1x64xf32, #tpu.memory_space<vmem>>, %arg7: memref<8x64x128xbf16, #tpu.memory_space<vmem>>, %arg8: memref<1x128xf32, #tpu.memory_space<vmem>>, %arg9: memref<1x128xf32, #tpu.memory_space<vmem>>, %arg10: memref<1x128xf32, #tpu.memory_space<vmem>>, %arg11: memref<4x128xf32, #tpu.memory_space<vmem>>, %arg12: memref<1x1xf32, #tpu.memory_space<vmem>>, %arg13: memref<8x128xf32, #tpu.memory_space<vmem>>, %arg14: memref<2x1xf32, #tpu.memory_space<vmem>>, %arg15: memref<136x32xf32, #tpu.memory_space<vmem>>, %arg16: memref<40x64xf32, #tpu.memory_space<vmem>>) attributes {dimension_semantics = [], scalar_prefetch = 0 : i64, scratch_operands = 2 : i64, tpu.core_type = #tpu.core_type<tc>} {
    %cst = arith.constant 0.000000e+00 : f32
    %0 = vector.broadcast %cst : f32 to vector<136x32xf32>
    %c0 = arith.constant 0 : index
    %c0_0 = arith.constant 0 : index
    %1 = vector.load %arg15[%c0, %c0_0] : memref<136x32xf32, #tpu.memory_space<vmem>>, vector<136x32xf32>
    tpu.vector_store %arg15[%c0, %c0_0], %0 {strides = array<i32>} : memref<136x32xf32, #tpu.memory_space<vmem>>, vector<136x32xf32>,
    %cst_1 = arith.constant 0.000000e+00 : f32
    %2 = vector.broadcast %cst_1 : f32 to vector<40x64xf32>
    %c0_2 = arith.constant 0 : index
    %c0_3 = arith.constant 0 : index
    %3 = vector.load %arg16[%c0_2, %c0_3] : memref<40x64xf32, #tpu.memory_space<vmem>>, vector<40x64xf32>
    tpu.vector_store %arg16[%c0_2, %c0_3], %2 {strides = array<i32>} : memref<40x64xf32, #tpu.memory_space<vmem>>, vector<40x64xf32>,
    %c0_4 = arith.constant 0 : index
    %c0_5 = arith.constant 0 : index
    %4 = vector.load %arg0[%c0_4, %c0_5] : memref<128x8xf32, #tpu.memory_space<vmem>>, vector<128x8xf32>
    %cst_6 = arith.constant 0.000000e+00 : f32
    %5 = vector.broadcast %cst_6 : f32 to vector<128x32xf32>
    %6 = vector.extract_strided_slice %4 {offsets = [0, 0], sizes = [128, 1], strides = [1, 1]} : vector<128x8xf32> to vector<128x1xf32>
    %c0_7 = arith.constant 0 : index
    %c0_8 = arith.constant 0 : index
    %7 = vector.load %arg1[%c0_7, %c0_8] : memref<8x32xf32, #tpu.memory_space<vmem>>, vector<1x32xf32>
    %8 = vector.broadcast %6 : vector<128x1xf32> to vector<128x32xf32>
    %9 = vector.broadcast %7 : vector<1x32xf32> to vector<128x32xf32>
    %10 = arith.mulf %8, %9 : vector<128x32xf32>
    %11 = arith.addf %5, %10 : vector<128x32xf32>
    %12 = vector.extract_strided_slice %4 {offsets = [0, 1], sizes = [128, 1], strides = [1, 1]} : vector<128x8xf32> to vector<128x1xf32>
    %c1 = arith.constant 1 : index
    %c0_9 = arith.constant 0 : index
    %13 = vector.load %arg1[%c1, %c0_9] : memref<8x32xf32, #tpu.memory_space<vmem>>, vector<1x32xf32>
    %14 = vector.broadcast %12 : vector<128x1xf32> to vector<128x32xf32>
    %15 = vector.broadcast %13 : vector<1x32xf32> to vector<128x32xf32>
    %16 = arith.mulf %14, %15 : vector<128x32xf32>
    %17 = arith.addf %11, %16 : vector<128x32xf32>
    %18 = vector.extract_strided_slice %4 {offsets = [0, 2], sizes = [128, 1], strides = [1, 1]} : vector<128x8xf32> to vector<128x1xf32>
    %c2 = arith.constant 2 : index
    %c0_10 = arith.constant 0 : index
    %19 = vector.load %arg1[%c2, %c0_10] : memref<8x32xf32, #tpu.memory_space<vmem>>, vector<1x32xf32>
    %20 = vector.broadcast %18 : vector<128x1xf32> to vector<128x32xf32>
    %21 = vector.broadcast %19 : vector<1x32xf32> to vector<128x32xf32>
    %22 = arith.mulf %20, %21 : vector<128x32xf32>
    %23 = arith.addf %17, %22 : vector<128x32xf32>
    %24 = vector.extract_strided_slice %4 {offsets = [0, 3], sizes = [128, 1], strides = [1, 1]} : vector<128x8xf32> to vector<128x1xf32>
    %c3 = arith.constant 3 : index
    %c0_11 = arith.constant 0 : index
    %25 = vector.load %arg1[%c3, %c0_11] : memref<8x32xf32, #tpu.memory_space<vmem>>, vector<1x32xf32>
    %26 = vector.broadcast %24 : vector<128x1xf32> to vector<128x32xf32>
    %27 = vector.broadcast %25 : vector<1x32xf32> to vector<128x32xf32>
    %28 = arith.mulf %26, %27 : vector<128x32xf32>
    %29 = arith.addf %23, %28 : vector<128x32xf32>
    %30 = vector.extract_strided_slice %4 {offsets = [0, 4], sizes = [128, 1], strides = [1, 1]} : vector<128x8xf32> to vector<128x1xf32>
    %c4 = arith.constant 4 : index
    %c0_12 = arith.constant 0 : index
    %31 = vector.load %arg1[%c4, %c0_12] : memref<8x32xf32, #tpu.memory_space<vmem>>, vector<1x32xf32>
    %32 = vector.broadcast %30 : vector<128x1xf32> to vector<128x32xf32>
    %33 = vector.broadcast %31 : vector<1x32xf32> to vector<128x32xf32>
    %34 = arith.mulf %32, %33 : vector<128x32xf32>
    %35 = arith.addf %29, %34 : vector<128x32xf32>
    %36 = vector.extract_strided_slice %4 {offsets = [0, 5], sizes = [128, 1], strides = [1, 1]} : vector<128x8xf32> to vector<128x1xf32>
    %c5 = arith.constant 5 : index
    %c0_13 = arith.constant 0 : index
    %37 = vector.load %arg1[%c5, %c0_13] : memref<8x32xf32, #tpu.memory_space<vmem>>, vector<1x32xf32>
    %38 = vector.broadcast %36 : vector<128x1xf32> to vector<128x32xf32>
    %39 = vector.broadcast %37 : vector<1x32xf32> to vector<128x32xf32>
    %40 = arith.mulf %38, %39 : vector<128x32xf32>
    %41 = arith.addf %35, %40 : vector<128x32xf32>
    %42 = vector.extract_strided_slice %4 {offsets = [0, 6], sizes = [128, 1], strides = [1, 1]} : vector<128x8xf32> to vector<128x1xf32>
    %c6 = arith.constant 6 : index
    %c0_14 = arith.constant 0 : index
    %43 = vector.load %arg1[%c6, %c0_14] : memref<8x32xf32, #tpu.memory_space<vmem>>, vector<1x32xf32>
    %44 = vector.broadcast %42 : vector<128x1xf32> to vector<128x32xf32>
    %45 = vector.broadcast %43 : vector<1x32xf32> to vector<128x32xf32>
    %46 = arith.mulf %44, %45 : vector<128x32xf32>
    %47 = arith.addf %41, %46 : vector<128x32xf32>
    %48 = vector.extract_strided_slice %4 {offsets = [0, 7], sizes = [128, 1], strides = [1, 1]} : vector<128x8xf32> to vector<128x1xf32>
    %c7 = arith.constant 7 : index
    %c0_15 = arith.constant 0 : index
    %49 = vector.load %arg1[%c7, %c0_15] : memref<8x32xf32, #tpu.memory_space<vmem>>, vector<1x32xf32>
    %50 = vector.broadcast %48 : vector<128x1xf32> to vector<128x32xf32>
    %51 = vector.broadcast %49 : vector<1x32xf32> to vector<128x32xf32>
    %52 = arith.mulf %50, %51 : vector<128x32xf32>
    %53 = arith.addf %47, %52 : vector<128x32xf32>
    %c0_16 = arith.constant 0 : index
    %c0_17 = arith.constant 0 : index
    %54 = vector.load %arg2[%c0_16, %c0_17] : memref<1x32xf32, #tpu.memory_space<vmem>>, vector<1x32xf32>
    %55 = vector.broadcast %54 : vector<1x32xf32> to vector<128x32xf32>
    %56 = arith.addf %53, %55 : vector<128x32xf32>
    %cst_18 = arith.constant 0.000000e+00 : f32
    %57 = vector.broadcast %cst_18 : f32 to vector<128x32xf32>
    %58 = arith.cmpf oge, %56, %57 : vector<128x32xf32>
    %cst_19 = arith.constant 2.000000e-01 : f32
    %59 = vector.broadcast %cst_19 : f32 to vector<128x32xf32>
    %60 = arith.mulf %59, %56 : vector<128x32xf32>
    %61 = arith.select %58, %56, %60 : vector<128x32xi1>, vector<128x32xf32>
    %62 = vector.extract_strided_slice %61 {offsets = [0, 0], sizes = [64, 32], strides = [1, 1]} : vector<128x32xf32> to vector<64x32xf32>
    %c2_20 = arith.constant 2 : index
    %c0_21 = arith.constant 0 : index
    %63 = vector.load %arg15[%c2_20, %c0_21] : memref<136x32xf32, #tpu.memory_space<vmem>>, vector<64x32xf32>
    tpu.vector_store %arg15[%c2_20, %c0_21], %62 {strides = array<i32>} : memref<136x32xf32, #tpu.memory_space<vmem>>, vector<64x32xf32>,
    %64 = vector.extract_strided_slice %61 {offsets = [64, 0], sizes = [64, 32], strides = [1, 1]} : vector<128x32xf32> to vector<64x32xf32>
    %c70 = arith.constant 70 : index
    %c0_22 = arith.constant 0 : index
    %65 = vector.load %arg15[%c70, %c0_22] : memref<136x32xf32, #tpu.memory_space<vmem>>, vector<64x32xf32>
    tpu.vector_store %arg15[%c70, %c0_22], %64 {strides = array<i32>} : memref<136x32xf32, #tpu.memory_space<vmem>>, vector<64x32xf32>,
    %cst_23 = arith.constant 0.000000e+00 : f32
    %66 = vector.broadcast %cst_23 : f32 to vector<1x64xf32>
    %cst_24 = arith.constant 0.000000e+00 : f32
    %67 = vector.broadcast %cst_24 : f32 to vector<1x64xf32>
    %cst_25 = arith.constant 0.000000e+00 : f32
    %68 = vector.broadcast %cst_25 : f32 to vector<16x64xf32>
    %c0_26 = arith.constant 0 : index
    %c0_27 = arith.constant 0 : index
    %69 = tpu.strided_load %arg15[%c0_26, %c0_27] {strides = array<i32: 4, 1>} : memref<136x32xf32, #tpu.memory_space<vmem>>, vector<16x32xf32>
    %70 = arith.truncf %69 : vector<16x32xf32> to vector<16x32xbf16>
    %c0_28 = arith.constant 0 : index
    %c0_29 = arith.constant 0 : index
    %c0_30 = arith.constant 0 : index
    %71 = vector.load %arg3[%c0_28, %c0_29, %c0_30] : memref<8x32x64xbf16, #tpu.memory_space<vmem>>, vector<1x32x64xbf16>
    %72 = vector.shape_cast %71 : vector<1x32x64xbf16> to vector<32x64xbf16>
    %cst_31 = arith.constant dense<0.000000e+00> : vector<16x64xf32>
    %73 = tpu.matmul %70, %72, %cst_31 {dimension_numbers = #tpu.dot_dimension_numbers<[1], [0], [0], [1], [0, 0, 1, 1], [], []>} : vector<16x32xbf16>, vector<32x64xbf16>, vector<16x64xf32> -> vector<16x64xf32>
    %74 = arith.addf %68, %73 : vector<16x64xf32>
    %c1_32 = arith.constant 1 : index
    %c0_33 = arith.constant 0 : index
    %75 = tpu.strided_load %arg15[%c1_32, %c0_33] {strides = array<i32: 4, 1>} : memref<136x32xf32, #tpu.memory_space<vmem>>, vector<16x32xf32>
    %76 = arith.truncf %75 : vector<16x32xf32> to vector<16x32xbf16>
    %c1_34 = arith.constant 1 : index
    %c0_35 = arith.constant 0 : index
    %c0_36 = arith.constant 0 : index
    %77 = vector.load %arg3[%c1_34, %c0_35, %c0_36] : memref<8x32x64xbf16, #tpu.memory_space<vmem>>, vector<1x32x64xbf16>
    %78 = vector.shape_cast %77 : vector<1x32x64xbf16> to vector<32x64xbf16>
    %cst_37 = arith.constant dense<0.000000e+00> : vector<16x64xf32>
    %79 = tpu.matmul %76, %78, %cst_37 {dimension_numbers = #tpu.dot_dimension_numbers<[1], [0], [0], [1], [0, 0, 1, 1], [], []>} : vector<16x32xbf16>, vector<32x64xbf16>, vector<16x64xf32> -> vector<16x64xf32>
    %80 = arith.addf %74, %79 : vector<16x64xf32>
    %c2_38 = arith.constant 2 : index
    %c0_39 = arith.constant 0 : index
    %81 = tpu.strided_load %arg15[%c2_38, %c0_39] {strides = array<i32: 4, 1>} : memref<136x32xf32, #tpu.memory_space<vmem>>, vector<16x32xf32>
    %82 = arith.truncf %81 : vector<16x32xf32> to vector<16x32xbf16>
    %c2_40 = arith.constant 2 : index
    %c0_41 = arith.constant 0 : index
    %c0_42 = arith.constant 0 : index
    %83 = vector.load %arg3[%c2_40, %c0_41, %c0_42] : memref<8x32x64xbf16, #tpu.memory_space<vmem>>, vector<1x32x64xbf16>
    %84 = vector.shape_cast %83 : vector<1x32x64xbf16> to vector<32x64xbf16>
    %cst_43 = arith.constant dense<0.000000e+00> : vector<16x64xf32>
    %85 = tpu.matmul %82, %84, %cst_43 {dimension_numbers = #tpu.dot_dimension_numbers<[1], [0], [0], [1], [0, 0, 1, 1], [], []>} : vector<16x32xbf16>, vector<32x64xbf16>, vector<16x64xf32> -> vector<16x64xf32>
    %86 = arith.addf %80, %85 : vector<16x64xf32>
    %c3_44 = arith.constant 3 : index
    %c0_45 = arith.constant 0 : index
    %87 = tpu.strided_load %arg15[%c3_44, %c0_45] {strides = array<i32: 4, 1>} : memref<136x32xf32, #tpu.memory_space<vmem>>, vector<16x32xf32>
    %88 = arith.truncf %87 : vector<16x32xf32> to vector<16x32xbf16>
    %c3_46 = arith.constant 3 : index
    %c0_47 = arith.constant 0 : index
    %c0_48 = arith.constant 0 : index
    %89 = vector.load %arg3[%c3_46, %c0_47, %c0_48] : memref<8x32x64xbf16, #tpu.memory_space<vmem>>, vector<1x32x64xbf16>
    %90 = vector.shape_cast %89 : vector<1x32x64xbf16> to vector<32x64xbf16>
    %cst_49 = arith.constant dense<0.000000e+00> : vector<16x64xf32>
    %91 = tpu.matmul %88, %90, %cst_49 {dimension_numbers = #tpu.dot_dimension_numbers<[1], [0], [0], [1], [0, 0, 1, 1], [], []>} : vector<16x32xbf16>, vector<32x64xbf16>, vector<16x64xf32> -> vector<16x64xf32>
    %92 = arith.addf %86, %91 : vector<16x64xf32>
    %c4_50 = arith.constant 4 : index
    %c0_51 = arith.constant 0 : index
    %93 = tpu.strided_load %arg15[%c4_50, %c0_51] {strides = array<i32: 4, 1>} : memref<136x32xf32, #tpu.memory_space<vmem>>, vector<16x32xf32>
    %94 = arith.truncf %93 : vector<16x32xf32> to vector<16x32xbf16>
    %c4_52 = arith.constant 4 : index
    %c0_53 = arith.constant 0 : index
    %c0_54 = arith.constant 0 : index
    %95 = vector.load %arg3[%c4_52, %c0_53, %c0_54] : memref<8x32x64xbf16, #tpu.memory_space<vmem>>, vector<1x32x64xbf16>
    %96 = vector.shape_cast %95 : vector<1x32x64xbf16> to vector<32x64xbf16>
    %cst_55 = arith.constant dense<0.000000e+00> : vector<16x64xf32>
    %97 = tpu.matmul %94, %96, %cst_55 {dimension_numbers = #tpu.dot_dimension_numbers<[1], [0], [0], [1], [0, 0, 1, 1], [], []>} : vector<16x32xbf16>, vector<32x64xbf16>, vector<16x64xf32> -> vector<16x64xf32>
    %98 = arith.addf %92, %97 : vector<16x64xf32>
    %c5_56 = arith.constant 5 : index
    %c0_57 = arith.constant 0 : index
    %99 = tpu.strided_load %arg15[%c5_56, %c0_57] {strides = array<i32: 4, 1>} : memref<136x32xf32, #tpu.memory_space<vmem>>, vector<16x32xf32>
    %100 = arith.truncf %99 : vector<16x32xf32> to vector<16x32xbf16>
    %c5_58 = arith.constant 5 : index
    %c0_59 = arith.constant 0 : index
    %c0_60 = arith.constant 0 : index
    %101 = vector.load %arg3[%c5_58, %c0_59, %c0_60] : memref<8x32x64xbf16, #tpu.memory_space<vmem>>, vector<1x32x64xbf16>
    %102 = vector.shape_cast %101 : vector<1x32x64xbf16> to vector<32x64xbf16>
    %cst_61 = arith.constant dense<0.000000e+00> : vector<16x64xf32>
    %103 = tpu.matmul %100, %102, %cst_61 {dimension_numbers = #tpu.dot_dimension_numbers<[1], [0], [0], [1], [0, 0, 1, 1], [], []>} : vector<16x32xbf16>, vector<32x64xbf16>, vector<16x64xf32> -> vector<16x64xf32>
    %104 = arith.addf %98, %103 : vector<16x64xf32>
    %c6_62 = arith.constant 6 : index
    %c0_63 = arith.constant 0 : index
    %105 = tpu.strided_load %arg15[%c6_62, %c0_63] {strides = array<i32: 4, 1>} : memref<136x32xf32, #tpu.memory_space<vmem>>, vector<16x32xf32>
    %106 = arith.truncf %105 : vector<16x32xf32> to vector<16x32xbf16>
    %c6_64 = arith.constant 6 : index
    %c0_65 = arith.constant 0 : index
    %c0_66 = arith.constant 0 : index
    %107 = vector.load %arg3[%c6_64, %c0_65, %c0_66] : memref<8x32x64xbf16, #tpu.memory_space<vmem>>, vector<1x32x64xbf16>
    %108 = vector.shape_cast %107 : vector<1x32x64xbf16> to vector<32x64xbf16>
    %cst_67 = arith.constant dense<0.000000e+00> : vector<16x64xf32>
    %109 = tpu.matmul %106, %108, %cst_67 {dimension_numbers = #tpu.dot_dimension_numbers<[1], [0], [0], [1], [0, 0, 1, 1], [], []>} : vector<16x32xbf16>, vector<32x64xbf16>, vector<16x64xf32> -> vector<16x64xf32>
    %110 = arith.addf %104, %109 : vector<16x64xf32>
    %c7_68 = arith.constant 7 : index
    %c0_69 = arith.constant 0 : index
    %111 = tpu.strided_load %arg15[%c7_68, %c0_69] {strides = array<i32: 4, 1>} : memref<136x32xf32, #tpu.memory_space<vmem>>, vector<16x32xf32>
    %112 = arith.truncf %111 : vector<16x32xf32> to vector<16x32xbf16>
    %c7_70 = arith.constant 7 : index
    %c0_71 = arith.constant 0 : index
    %c0_72 = arith.constant 0 : index
    %113 = vector.load %arg3[%c7_70, %c0_71, %c0_72] : memref<8x32x64xbf16, #tpu.memory_space<vmem>>, vector<1x32x64xbf16>
    %114 = vector.shape_cast %113 : vector<1x32x64xbf16> to vector<32x64xbf16>
    %cst_73 = arith.constant dense<0.000000e+00> : vector<16x64xf32>
    %115 = tpu.matmul %112, %114, %cst_73 {dimension_numbers = #tpu.dot_dimension_numbers<[1], [0], [0], [1], [0, 0, 1, 1], [], []>} : vector<16x32xbf16>, vector<32x64xbf16>, vector<16x64xf32> -> vector<16x64xf32>
    %116 = arith.addf %110, %115 : vector<16x64xf32>
    %c0_74 = arith.constant 0 : index
    %c0_75 = arith.constant 0 : index
    %117 = vector.load %arg4[%c0_74, %c0_75] : memref<1x64xf32, #tpu.memory_space<vmem>>, vector<1x64xf32>
    %118 = vector.broadcast %117 : vector<1x64xf32> to vector<16x64xf32>
    %119 = arith.addf %116, %118 : vector<16x64xf32>
    %cst_76 = arith.constant dense<0.000000e+00> : vector<64xf32>
    %120 = vector.multi_reduction <add>, %119, %cst_76 [0] : vector<16x64xf32> to vector<64xf32>
    %121 = vector.shape_cast %120 : vector<64xf32> to vector<1x64xf32>
    %122 = arith.addf %66, %121 : vector<1x64xf32>
    %123 = arith.mulf %119, %119 : vector<16x64xf32>
    %cst_77 = arith.constant dense<0.000000e+00> : vector<64xf32>
    %124 = vector.multi_reduction <add>, %123, %cst_77 [0] : vector<16x64xf32> to vector<64xf32>
    %125 = vector.shape_cast %124 : vector<64xf32> to vector<1x64xf32>
    %126 = arith.addf %67, %125 : vector<1x64xf32>
    %cst_78 = arith.constant 0.000000e+00 : f32
    %127 = vector.broadcast %cst_78 : f32 to vector<16x64xf32>
    %c68 = arith.constant 68 : index
    %c0_79 = arith.constant 0 : index
    %128 = tpu.strided_load %arg15[%c68, %c0_79] {strides = array<i32: 4, 1>} : memref<136x32xf32, #tpu.memory_space<vmem>>, vector<16x32xf32>
    %129 = arith.truncf %128 : vector<16x32xf32> to vector<16x32xbf16>
    %c0_80 = arith.constant 0 : index
    %c0_81 = arith.constant 0 : index
    %c0_82 = arith.constant 0 : index
    %130 = vector.load %arg3[%c0_80, %c0_81, %c0_82] : memref<8x32x64xbf16, #tpu.memory_space<vmem>>, vector<1x32x64xbf16>
    %131 = vector.shape_cast %130 : vector<1x32x64xbf16> to vector<32x64xbf16>
    %cst_83 = arith.constant dense<0.000000e+00> : vector<16x64xf32>
    %132 = tpu.matmul %129, %131, %cst_83 {dimension_numbers = #tpu.dot_dimension_numbers<[1], [0], [0], [1], [0, 0, 1, 1], [], []>} : vector<16x32xbf16>, vector<32x64xbf16>, vector<16x64xf32> -> vector<16x64xf32>
    %133 = arith.addf %127, %132 : vector<16x64xf32>
    %c69 = arith.constant 69 : index
    %c0_84 = arith.constant 0 : index
    %134 = tpu.strided_load %arg15[%c69, %c0_84] {strides = array<i32: 4, 1>} : memref<136x32xf32, #tpu.memory_space<vmem>>, vector<16x32xf32>
    %135 = arith.truncf %134 : vector<16x32xf32> to vector<16x32xbf16>
    %c1_85 = arith.constant 1 : index
    %c0_86 = arith.constant 0 : index
    %c0_87 = arith.constant 0 : index
    %136 = vector.load %arg3[%c1_85, %c0_86, %c0_87] : memref<8x32x64xbf16, #tpu.memory_space<vmem>>, vector<1x32x64xbf16>
    %137 = vector.shape_cast %136 : vector<1x32x64xbf16> to vector<32x64xbf16>
    %cst_88 = arith.constant dense<0.000000e+00> : vector<16x64xf32>
    %138 = tpu.matmul %135, %137, %cst_88 {dimension_numbers = #tpu.dot_dimension_numbers<[1], [0], [0], [1], [0, 0, 1, 1], [], []>} : vector<16x32xbf16>, vector<32x64xbf16>, vector<16x64xf32> -> vector<16x64xf32>
    %139 = arith.addf %133, %138 : vector<16x64xf32>
    %c70_89 = arith.constant 70 : index
    %c0_90 = arith.constant 0 : index
    %140 = tpu.strided_load %arg15[%c70_89, %c0_90] {strides = array<i32: 4, 1>} : memref<136x32xf32, #tpu.memory_space<vmem>>, vector<16x32xf32>
    %141 = arith.truncf %140 : vector<16x32xf32> to vector<16x32xbf16>
    %c2_91 = arith.constant 2 : index
    %c0_92 = arith.constant 0 : index
    %c0_93 = arith.constant 0 : index
    %142 = vector.load %arg3[%c2_91, %c0_92, %c0_93] : memref<8x32x64xbf16, #tpu.memory_space<vmem>>, vector<1x32x64xbf16>
    %143 = vector.shape_cast %142 : vector<1x32x64xbf16> to vector<32x64xbf16>
    %cst_94 = arith.constant dense<0.000000e+00> : vector<16x64xf32>
    %144 = tpu.matmul %141, %143, %cst_94 {dimension_numbers = #tpu.dot_dimension_numbers<[1], [0], [0], [1], [0, 0, 1, 1], [], []>} : vector<16x32xbf16>, vector<32x64xbf16>, vector<16x64xf32> -> vector<16x64xf32>
    %145 = arith.addf %139, %144 : vector<16x64xf32>
    %c71 = arith.constant 71 : index
    %c0_95 = arith.constant 0 : index
    %146 = tpu.strided_load %arg15[%c71, %c0_95] {strides = array<i32: 4, 1>} : memref<136x32xf32, #tpu.memory_space<vmem>>, vector<16x32xf32>
    %147 = arith.truncf %146 : vector<16x32xf32> to vector<16x32xbf16>
    %c3_96 = arith.constant 3 : index
    %c0_97 = arith.constant 0 : index
    %c0_98 = arith.constant 0 : index
    %148 = vector.load %arg3[%c3_96, %c0_97, %c0_98] : memref<8x32x64xbf16, #tpu.memory_space<vmem>>, vector<1x32x64xbf16>
    %149 = vector.shape_cast %148 : vector<1x32x64xbf16> to vector<32x64xbf16>
    %cst_99 = arith.constant dense<0.000000e+00> : vector<16x64xf32>
    %150 = tpu.matmul %147, %149, %cst_99 {dimension_numbers = #tpu.dot_dimension_numbers<[1], [0], [0], [1], [0, 0, 1, 1], [], []>} : vector<16x32xbf16>, vector<32x64xbf16>, vector<16x64xf32> -> vector<16x64xf32>
    %151 = arith.addf %145, %150 : vector<16x64xf32>
    %c72 = arith.constant 72 : index
    %c0_100 = arith.constant 0 : index
    %152 = tpu.strided_load %arg15[%c72, %c0_100] {strides = array<i32: 4, 1>} : memref<136x32xf32, #tpu.memory_space<vmem>>, vector<16x32xf32>
    %153 = arith.truncf %152 : vector<16x32xf32> to vector<16x32xbf16>
    %c4_101 = arith.constant 4 : index
    %c0_102 = arith.constant 0 : index
    %c0_103 = arith.constant 0 : index
    %154 = vector.load %arg3[%c4_101, %c0_102, %c0_103] : memref<8x32x64xbf16, #tpu.memory_space<vmem>>, vector<1x32x64xbf16>
    %155 = vector.shape_cast %154 : vector<1x32x64xbf16> to vector<32x64xbf16>
    %cst_104 = arith.constant dense<0.000000e+00> : vector<16x64xf32>
    %156 = tpu.matmul %153, %155, %cst_104 {dimension_numbers = #tpu.dot_dimension_numbers<[1], [0], [0], [1], [0, 0, 1, 1], [], []>} : vector<16x32xbf16>, vector<32x64xbf16>, vector<16x64xf32> -> vector<16x64xf32>
    %157 = arith.addf %151, %156 : vector<16x64xf32>
    %c73 = arith.constant 73 : index
    %c0_105 = arith.constant 0 : index
    %158 = tpu.strided_load %arg15[%c73, %c0_105] {strides = array<i32: 4, 1>} : memref<136x32xf32, #tpu.memory_space<vmem>>, vector<16x32xf32>
    %159 = arith.truncf %158 : vector<16x32xf32> to vector<16x32xbf16>
    %c5_106 = arith.constant 5 : index
    %c0_107 = arith.constant 0 : index
    %c0_108 = arith.constant 0 : index
    %160 = vector.load %arg3[%c5_106, %c0_107, %c0_108] : memref<8x32x64xbf16, #tpu.memory_space<vmem>>, vector<1x32x64xbf16>
    %161 = vector.shape_cast %160 : vector<1x32x64xbf16> to vector<32x64xbf16>
    %cst_109 = arith.constant dense<0.000000e+00> : vector<16x64xf32>
    %162 = tpu.matmul %159, %161, %cst_109 {dimension_numbers = #tpu.dot_dimension_numbers<[1], [0], [0], [1], [0, 0, 1, 1], [], []>} : vector<16x32xbf16>, vector<32x64xbf16>, vector<16x64xf32> -> vector<16x64xf32>
    %163 = arith.addf %157, %162 : vector<16x64xf32>
    %c74 = arith.constant 74 : index
    %c0_110 = arith.constant 0 : index
    %164 = tpu.strided_load %arg15[%c74, %c0_110] {strides = array<i32: 4, 1>} : memref<136x32xf32, #tpu.memory_space<vmem>>, vector<16x32xf32>
    %165 = arith.truncf %164 : vector<16x32xf32> to vector<16x32xbf16>
    %c6_111 = arith.constant 6 : index
    %c0_112 = arith.constant 0 : index
    %c0_113 = arith.constant 0 : index
    %166 = vector.load %arg3[%c6_111, %c0_112, %c0_113] : memref<8x32x64xbf16, #tpu.memory_space<vmem>>, vector<1x32x64xbf16>
    %167 = vector.shape_cast %166 : vector<1x32x64xbf16> to vector<32x64xbf16>
    %cst_114 = arith.constant dense<0.000000e+00> : vector<16x64xf32>
    %168 = tpu.matmul %165, %167, %cst_114 {dimension_numbers = #tpu.dot_dimension_numbers<[1], [0], [0], [1], [0, 0, 1, 1], [], []>} : vector<16x32xbf16>, vector<32x64xbf16>, vector<16x64xf32> -> vector<16x64xf32>
    %169 = arith.addf %163, %168 : vector<16x64xf32>
    %c75 = arith.constant 75 : index
    %c0_115 = arith.constant 0 : index
    %170 = tpu.strided_load %arg15[%c75, %c0_115] {strides = array<i32: 4, 1>} : memref<136x32xf32, #tpu.memory_space<vmem>>, vector<16x32xf32>
    %171 = arith.truncf %170 : vector<16x32xf32> to vector<16x32xbf16>
    %c7_116 = arith.constant 7 : index
    %c0_117 = arith.constant 0 : index
    %c0_118 = arith.constant 0 : index
    %172 = vector.load %arg3[%c7_116, %c0_117, %c0_118] : memref<8x32x64xbf16, #tpu.memory_space<vmem>>, vector<1x32x64xbf16>
    %173 = vector.shape_cast %172 : vector<1x32x64xbf16> to vector<32x64xbf16>
    %cst_119 = arith.constant dense<0.000000e+00> : vector<16x64xf32>
    %174 = tpu.matmul %171, %173, %cst_119 {dimension_numbers = #tpu.dot_dimension_numbers<[1], [0], [0], [1], [0, 0, 1, 1], [], []>} : vector<16x32xbf16>, vector<32x64xbf16>, vector<16x64xf32> -> vector<16x64xf32>
    %175 = arith.addf %169, %174 : vector<16x64xf32>
    %c0_120 = arith.constant 0 : index
    %c0_121 = arith.constant 0 : index
    %176 = vector.load %arg4[%c0_120, %c0_121] : memref<1x64xf32, #tpu.memory_space<vmem>>, vector<1x64xf32>
    %177 = vector.broadcast %176 : vector<1x64xf32> to vector<16x64xf32>
    %178 = arith.addf %175, %177 : vector<16x64xf32>
    %cst_122 = arith.constant dense<0.000000e+00> : vector<64xf32>
    %179 = vector.multi_reduction <add>, %178, %cst_122 [0] : vector<16x64xf32> to vector<64xf32>
    %180 = vector.shape_cast %179 : vector<64xf32> to vector<1x64xf32>
    %181 = arith.addf %122, %180 : vector<1x64xf32>
    %182 = arith.mulf %178, %178 : vector<16x64xf32>
    %cst_123 = arith.constant dense<0.000000e+00> : vector<64xf32>
    %183 = vector.multi_reduction <add>, %182, %cst_123 [0] : vector<16x64xf32> to vector<64xf32>
    %184 = vector.shape_cast %183 : vector<64xf32> to vector<1x64xf32>
    %185 = arith.addf %126, %184 : vector<1x64xf32>
    %cst_124 = arith.constant 3.125000e-02 : f32
    %186 = vector.broadcast %cst_124 : f32 to vector<1x64xf32>
    %187 = arith.mulf %181, %186 : vector<1x64xf32>
    %cst_125 = arith.constant 3.125000e-02 : f32
    %188 = vector.broadcast %cst_125 : f32 to vector<1x64xf32>
    %189 = arith.mulf %185, %188 : vector<1x64xf32>
    %190 = arith.mulf %187, %187 : vector<1x64xf32>
    %191 = arith.subf %189, %190 : vector<1x64xf32>
    %c0_126 = arith.constant 0 : index
    %c0_127 = arith.constant 0 : index
    %192 = vector.load %arg5[%c0_126, %c0_127] : memref<1x64xf32, #tpu.memory_space<vmem>>, vector<1x64xf32>
    %cst_128 = arith.constant 9.99999974E-6 : f32
    %193 = vector.broadcast %cst_128 : f32 to vector<1x64xf32>
    %194 = arith.addf %191, %193 : vector<1x64xf32>
    %195 = math.rsqrt %194 : vector<1x64xf32>
    %196 = arith.mulf %192, %195 : vector<1x64xf32>
    %c0_129 = arith.constant 0 : index
    %c0_130 = arith.constant 0 : index
    %197 = vector.load %arg6[%c0_129, %c0_130] : memref<1x64xf32, #tpu.memory_space<vmem>>, vector<1x64xf32>
    %198 = arith.mulf %187, %196 : vector<1x64xf32>
    %199 = arith.subf %197, %198 : vector<1x64xf32>
    %200 = vector.broadcast %196 : vector<1x64xf32> to vector<16x64xf32>
    %201 = arith.mulf %119, %200 : vector<16x64xf32>
    %202 = vector.broadcast %199 : vector<1x64xf32> to vector<16x64xf32>
    %203 = arith.addf %201, %202 : vector<16x64xf32>
    %cst_131 = arith.constant 0.000000e+00 : f32
    %204 = vector.broadcast %cst_131 : f32 to vector<16x64xf32>
    %205 = arith.cmpf oge, %203, %204 : vector<16x64xf32>
    %cst_132 = arith.constant 2.000000e-01 : f32
    %206 = vector.broadcast %cst_132 : f32 to vector<16x64xf32>
    %207 = arith.mulf %206, %203 : vector<16x64xf32>
    %208 = arith.select %205, %203, %207 : vector<16x64xi1>, vector<16x64xf32>
    %209 = vector.broadcast %196 : vector<1x64xf32> to vector<16x64xf32>
    %210 = arith.mulf %178, %209 : vector<16x64xf32>
    %211 = vector.broadcast %199 : vector<1x64xf32> to vector<16x64xf32>
    %212 = arith.addf %210, %211 : vector<16x64xf32>
    %cst_133 = arith.constant 0.000000e+00 : f32
    %213 = vector.broadcast %cst_133 : f32 to vector<16x64xf32>
    %214 = arith.cmpf oge, %212, %213 : vector<16x64xf32>
    %cst_134 = arith.constant 2.000000e-01 : f32
    %215 = vector.broadcast %cst_134 : f32 to vector<16x64xf32>
    %216 = arith.mulf %215, %212 : vector<16x64xf32>
    %217 = arith.select %214, %212, %216 : vector<16x64xi1>, vector<16x64xf32>
    %c2_135 = arith.constant 2 : index
    %c0_136 = arith.constant 0 : index
    %218 = vector.load %arg16[%c2_135, %c0_136] : memref<40x64xf32, #tpu.memory_space<vmem>>, vector<16x64xf32>
    tpu.vector_store %arg16[%c2_135, %c0_136], %208 {strides = array<i32>} : memref<40x64xf32, #tpu.memory_space<vmem>>, vector<16x64xf32>,
    %c22 = arith.constant 22 : index
    %c0_137 = arith.constant 0 : index
    %219 = vector.load %arg16[%c22, %c0_137] : memref<40x64xf32, #tpu.memory_space<vmem>>, vector<16x64xf32>
    tpu.vector_store %arg16[%c22, %c0_137], %217 {strides = array<i32>} : memref<40x64xf32, #tpu.memory_space<vmem>>, vector<16x64xf32>,
    %cst_138 = arith.constant 0.000000e+00 : f32
    %220 = vector.broadcast %cst_138 : f32 to vector<1x128xf32>
    %cst_139 = arith.constant 0.000000e+00 : f32
    %221 = vector.broadcast %cst_139 : f32 to vector<1x128xf32>
    %cst_140 = arith.constant 0.000000e+00 : f32
    %222 = vector.broadcast %cst_140 : f32 to vector<4x128xf32>
    %c0_141 = arith.constant 0 : index
    %c0_142 = arith.constant 0 : index
    %223 = tpu.strided_load %arg16[%c0_141, %c0_142] {strides = array<i32: 4, 1>} : memref<40x64xf32, #tpu.memory_space<vmem>>, vector<4x64xf32>
    %224 = arith.truncf %223 : vector<4x64xf32> to vector<4x64xbf16>
    %c0_143 = arith.constant 0 : index
    %c0_144 = arith.constant 0 : index
    %c0_145 = arith.constant 0 : index
    %225 = vector.load %arg7[%c0_143, %c0_144, %c0_145] : memref<8x64x128xbf16, #tpu.memory_space<vmem>>, vector<1x64x128xbf16>
    %226 = vector.shape_cast %225 : vector<1x64x128xbf16> to vector<64x128xbf16>
    %cst_146 = arith.constant dense<0.000000e+00> : vector<4x128xf32>
    %227 = tpu.matmul %224, %226, %cst_146 {dimension_numbers = #tpu.dot_dimension_numbers<[1], [0], [0], [1], [0, 0, 1, 1], [], []>} : vector<4x64xbf16>, vector<64x128xbf16>, vector<4x128xf32> -> vector<4x128xf32>
    %228 = arith.addf %222, %227 : vector<4x128xf32>
    %c1_147 = arith.constant 1 : index
    %c0_148 = arith.constant 0 : index
    %229 = tpu.strided_load %arg16[%c1_147, %c0_148] {strides = array<i32: 4, 1>} : memref<40x64xf32, #tpu.memory_space<vmem>>, vector<4x64xf32>
    %230 = arith.truncf %229 : vector<4x64xf32> to vector<4x64xbf16>
    %c1_149 = arith.constant 1 : index
    %c0_150 = arith.constant 0 : index
    %c0_151 = arith.constant 0 : index
    %231 = vector.load %arg7[%c1_149, %c0_150, %c0_151] : memref<8x64x128xbf16, #tpu.memory_space<vmem>>, vector<1x64x128xbf16>
    %232 = vector.shape_cast %231 : vector<1x64x128xbf16> to vector<64x128xbf16>
    %cst_152 = arith.constant dense<0.000000e+00> : vector<4x128xf32>
    %233 = tpu.matmul %230, %232, %cst_152 {dimension_numbers = #tpu.dot_dimension_numbers<[1], [0], [0], [1], [0, 0, 1, 1], [], []>} : vector<4x64xbf16>, vector<64x128xbf16>, vector<4x128xf32> -> vector<4x128xf32>
    %234 = arith.addf %228, %233 : vector<4x128xf32>
    %c2_153 = arith.constant 2 : index
    %c0_154 = arith.constant 0 : index
    %235 = tpu.strided_load %arg16[%c2_153, %c0_154] {strides = array<i32: 4, 1>} : memref<40x64xf32, #tpu.memory_space<vmem>>, vector<4x64xf32>
    %236 = arith.truncf %235 : vector<4x64xf32> to vector<4x64xbf16>
    %c2_155 = arith.constant 2 : index
    %c0_156 = arith.constant 0 : index
    %c0_157 = arith.constant 0 : index
    %237 = vector.load %arg7[%c2_155, %c0_156, %c0_157] : memref<8x64x128xbf16, #tpu.memory_space<vmem>>, vector<1x64x128xbf16>
    %238 = vector.shape_cast %237 : vector<1x64x128xbf16> to vector<64x128xbf16>
    %cst_158 = arith.constant dense<0.000000e+00> : vector<4x128xf32>
    %239 = tpu.matmul %236, %238, %cst_158 {dimension_numbers = #tpu.dot_dimension_numbers<[1], [0], [0], [1], [0, 0, 1, 1], [], []>} : vector<4x64xbf16>, vector<64x128xbf16>, vector<4x128xf32> -> vector<4x128xf32>
    %240 = arith.addf %234, %239 : vector<4x128xf32>
    %c3_159 = arith.constant 3 : index
    %c0_160 = arith.constant 0 : index
    %241 = tpu.strided_load %arg16[%c3_159, %c0_160] {strides = array<i32: 4, 1>} : memref<40x64xf32, #tpu.memory_space<vmem>>, vector<4x64xf32>
    %242 = arith.truncf %241 : vector<4x64xf32> to vector<4x64xbf16>
    %c3_161 = arith.constant 3 : index
    %c0_162 = arith.constant 0 : index
    %c0_163 = arith.constant 0 : index
    %243 = vector.load %arg7[%c3_161, %c0_162, %c0_163] : memref<8x64x128xbf16, #tpu.memory_space<vmem>>, vector<1x64x128xbf16>
    %244 = vector.shape_cast %243 : vector<1x64x128xbf16> to vector<64x128xbf16>
    %cst_164 = arith.constant dense<0.000000e+00> : vector<4x128xf32>
    %245 = tpu.matmul %242, %244, %cst_164 {dimension_numbers = #tpu.dot_dimension_numbers<[1], [0], [0], [1], [0, 0, 1, 1], [], []>} : vector<4x64xbf16>, vector<64x128xbf16>, vector<4x128xf32> -> vector<4x128xf32>
    %246 = arith.addf %240, %245 : vector<4x128xf32>
    %c4_165 = arith.constant 4 : index
    %c0_166 = arith.constant 0 : index
    %247 = tpu.strided_load %arg16[%c4_165, %c0_166] {strides = array<i32: 4, 1>} : memref<40x64xf32, #tpu.memory_space<vmem>>, vector<4x64xf32>
    %248 = arith.truncf %247 : vector<4x64xf32> to vector<4x64xbf16>
    %c4_167 = arith.constant 4 : index
    %c0_168 = arith.constant 0 : index
    %c0_169 = arith.constant 0 : index
    %249 = vector.load %arg7[%c4_167, %c0_168, %c0_169] : memref<8x64x128xbf16, #tpu.memory_space<vmem>>, vector<1x64x128xbf16>
    %250 = vector.shape_cast %249 : vector<1x64x128xbf16> to vector<64x128xbf16>
    %cst_170 = arith.constant dense<0.000000e+00> : vector<4x128xf32>
    %251 = tpu.matmul %248, %250, %cst_170 {dimension_numbers = #tpu.dot_dimension_numbers<[1], [0], [0], [1], [0, 0, 1, 1], [], []>} : vector<4x64xbf16>, vector<64x128xbf16>, vector<4x128xf32> -> vector<4x128xf32>
    %252 = arith.addf %246, %251 : vector<4x128xf32>
    %c5_171 = arith.constant 5 : index
    %c0_172 = arith.constant 0 : index
    %253 = tpu.strided_load %arg16[%c5_171, %c0_172] {strides = array<i32: 4, 1>} : memref<40x64xf32, #tpu.memory_space<vmem>>, vector<4x64xf32>
    %254 = arith.truncf %253 : vector<4x64xf32> to vector<4x64xbf16>
    %c5_173 = arith.constant 5 : index
    %c0_174 = arith.constant 0 : index
    %c0_175 = arith.constant 0 : index
    %255 = vector.load %arg7[%c5_173, %c0_174, %c0_175] : memref<8x64x128xbf16, #tpu.memory_space<vmem>>, vector<1x64x128xbf16>
    %256 = vector.shape_cast %255 : vector<1x64x128xbf16> to vector<64x128xbf16>
    %cst_176 = arith.constant dense<0.000000e+00> : vector<4x128xf32>
    %257 = tpu.matmul %254, %256, %cst_176 {dimension_numbers = #tpu.dot_dimension_numbers<[1], [0], [0], [1], [0, 0, 1, 1], [], []>} : vector<4x64xbf16>, vector<64x128xbf16>, vector<4x128xf32> -> vector<4x128xf32>
    %258 = arith.addf %252, %257 : vector<4x128xf32>
    %c6_177 = arith.constant 6 : index
    %c0_178 = arith.constant 0 : index
    %259 = tpu.strided_load %arg16[%c6_177, %c0_178] {strides = array<i32: 4, 1>} : memref<40x64xf32, #tpu.memory_space<vmem>>, vector<4x64xf32>
    %260 = arith.truncf %259 : vector<4x64xf32> to vector<4x64xbf16>
    %c6_179 = arith.constant 6 : index
    %c0_180 = arith.constant 0 : index
    %c0_181 = arith.constant 0 : index
    %261 = vector.load %arg7[%c6_179, %c0_180, %c0_181] : memref<8x64x128xbf16, #tpu.memory_space<vmem>>, vector<1x64x128xbf16>
    %262 = vector.shape_cast %261 : vector<1x64x128xbf16> to vector<64x128xbf16>
    %cst_182 = arith.constant dense<0.000000e+00> : vector<4x128xf32>
    %263 = tpu.matmul %260, %262, %cst_182 {dimension_numbers = #tpu.dot_dimension_numbers<[1], [0], [0], [1], [0, 0, 1, 1], [], []>} : vector<4x64xbf16>, vector<64x128xbf16>, vector<4x128xf32> -> vector<4x128xf32>
    %264 = arith.addf %258, %263 : vector<4x128xf32>
    %c7_183 = arith.constant 7 : index
    %c0_184 = arith.constant 0 : index
    %265 = tpu.strided_load %arg16[%c7_183, %c0_184] {strides = array<i32: 4, 1>} : memref<40x64xf32, #tpu.memory_space<vmem>>, vector<4x64xf32>
    %266 = arith.truncf %265 : vector<4x64xf32> to vector<4x64xbf16>
    %c7_185 = arith.constant 7 : index
    %c0_186 = arith.constant 0 : index
    %c0_187 = arith.constant 0 : index
    %267 = vector.load %arg7[%c7_185, %c0_186, %c0_187] : memref<8x64x128xbf16, #tpu.memory_space<vmem>>, vector<1x64x128xbf16>
    %268 = vector.shape_cast %267 : vector<1x64x128xbf16> to vector<64x128xbf16>
    %cst_188 = arith.constant dense<0.000000e+00> : vector<4x128xf32>
    %269 = tpu.matmul %266, %268, %cst_188 {dimension_numbers = #tpu.dot_dimension_numbers<[1], [0], [0], [1], [0, 0, 1, 1], [], []>} : vector<4x64xbf16>, vector<64x128xbf16>, vector<4x128xf32> -> vector<4x128xf32>
    %270 = arith.addf %264, %269 : vector<4x128xf32>
    %c0_189 = arith.constant 0 : index
    %c0_190 = arith.constant 0 : index
    %271 = vector.load %arg8[%c0_189, %c0_190] : memref<1x128xf32, #tpu.memory_space<vmem>>, vector<1x128xf32>
    %272 = vector.broadcast %271 : vector<1x128xf32> to vector<4x128xf32>
    %273 = arith.addf %270, %272 : vector<4x128xf32>
    %cst_191 = arith.constant dense<0.000000e+00> : vector<128xf32>
    %274 = vector.multi_reduction <add>, %273, %cst_191 [0] : vector<4x128xf32> to vector<128xf32>
    %275 = vector.shape_cast %274 : vector<128xf32> to vector<1x128xf32>
    %276 = arith.addf %220, %275 : vector<1x128xf32>
    %277 = arith.mulf %273, %273 : vector<4x128xf32>
    %cst_192 = arith.constant dense<0.000000e+00> : vector<128xf32>
    %278 = vector.multi_reduction <add>, %277, %cst_192 [0] : vector<4x128xf32> to vector<128xf32>
    %279 = vector.shape_cast %278 : vector<128xf32> to vector<1x128xf32>
    %280 = arith.addf %221, %279 : vector<1x128xf32>
    %cst_193 = arith.constant 0.000000e+00 : f32
    %281 = vector.broadcast %cst_193 : f32 to vector<4x128xf32>
    %c20 = arith.constant 20 : index
    %c0_194 = arith.constant 0 : index
    %282 = tpu.strided_load %arg16[%c20, %c0_194] {strides = array<i32: 4, 1>} : memref<40x64xf32, #tpu.memory_space<vmem>>, vector<4x64xf32>
    %283 = arith.truncf %282 : vector<4x64xf32> to vector<4x64xbf16>
    %c0_195 = arith.constant 0 : index
    %c0_196 = arith.constant 0 : index
    %c0_197 = arith.constant 0 : index
    %284 = vector.load %arg7[%c0_195, %c0_196, %c0_197] : memref<8x64x128xbf16, #tpu.memory_space<vmem>>, vector<1x64x128xbf16>
    %285 = vector.shape_cast %284 : vector<1x64x128xbf16> to vector<64x128xbf16>
    %cst_198 = arith.constant dense<0.000000e+00> : vector<4x128xf32>
    %286 = tpu.matmul %283, %285, %cst_198 {dimension_numbers = #tpu.dot_dimension_numbers<[1], [0], [0], [1], [0, 0, 1, 1], [], []>} : vector<4x64xbf16>, vector<64x128xbf16>, vector<4x128xf32> -> vector<4x128xf32>
    %287 = arith.addf %281, %286 : vector<4x128xf32>
    %c21 = arith.constant 21 : index
    %c0_199 = arith.constant 0 : index
    %288 = tpu.strided_load %arg16[%c21, %c0_199] {strides = array<i32: 4, 1>} : memref<40x64xf32, #tpu.memory_space<vmem>>, vector<4x64xf32>
    %289 = arith.truncf %288 : vector<4x64xf32> to vector<4x64xbf16>
    %c1_200 = arith.constant 1 : index
    %c0_201 = arith.constant 0 : index
    %c0_202 = arith.constant 0 : index
    %290 = vector.load %arg7[%c1_200, %c0_201, %c0_202] : memref<8x64x128xbf16, #tpu.memory_space<vmem>>, vector<1x64x128xbf16>
    %291 = vector.shape_cast %290 : vector<1x64x128xbf16> to vector<64x128xbf16>
    %cst_203 = arith.constant dense<0.000000e+00> : vector<4x128xf32>
    %292 = tpu.matmul %289, %291, %cst_203 {dimension_numbers = #tpu.dot_dimension_numbers<[1], [0], [0], [1], [0, 0, 1, 1], [], []>} : vector<4x64xbf16>, vector<64x128xbf16>, vector<4x128xf32> -> vector<4x128xf32>
    %293 = arith.addf %287, %292 : vector<4x128xf32>
    %c22_204 = arith.constant 22 : index
    %c0_205 = arith.constant 0 : index
    %294 = tpu.strided_load %arg16[%c22_204, %c0_205] {strides = array<i32: 4, 1>} : memref<40x64xf32, #tpu.memory_space<vmem>>, vector<4x64xf32>
    %295 = arith.truncf %294 : vector<4x64xf32> to vector<4x64xbf16>
    %c2_206 = arith.constant 2 : index
    %c0_207 = arith.constant 0 : index
    %c0_208 = arith.constant 0 : index
    %296 = vector.load %arg7[%c2_206, %c0_207, %c0_208] : memref<8x64x128xbf16, #tpu.memory_space<vmem>>, vector<1x64x128xbf16>
    %297 = vector.shape_cast %296 : vector<1x64x128xbf16> to vector<64x128xbf16>
    %cst_209 = arith.constant dense<0.000000e+00> : vector<4x128xf32>
    %298 = tpu.matmul %295, %297, %cst_209 {dimension_numbers = #tpu.dot_dimension_numbers<[1], [0], [0], [1], [0, 0, 1, 1], [], []>} : vector<4x64xbf16>, vector<64x128xbf16>, vector<4x128xf32> -> vector<4x128xf32>
    %299 = arith.addf %293, %298 : vector<4x128xf32>
    %c23 = arith.constant 23 : index
    %c0_210 = arith.constant 0 : index
    %300 = tpu.strided_load %arg16[%c23, %c0_210] {strides = array<i32: 4, 1>} : memref<40x64xf32, #tpu.memory_space<vmem>>, vector<4x64xf32>
    %301 = arith.truncf %300 : vector<4x64xf32> to vector<4x64xbf16>
    %c3_211 = arith.constant 3 : index
    %c0_212 = arith.constant 0 : index
    %c0_213 = arith.constant 0 : index
    %302 = vector.load %arg7[%c3_211, %c0_212, %c0_213] : memref<8x64x128xbf16, #tpu.memory_space<vmem>>, vector<1x64x128xbf16>
    %303 = vector.shape_cast %302 : vector<1x64x128xbf16> to vector<64x128xbf16>
    %cst_214 = arith.constant dense<0.000000e+00> : vector<4x128xf32>
    %304 = tpu.matmul %301, %303, %cst_214 {dimension_numbers = #tpu.dot_dimension_numbers<[1], [0], [0], [1], [0, 0, 1, 1], [], []>} : vector<4x64xbf16>, vector<64x128xbf16>, vector<4x128xf32> -> vector<4x128xf32>
    %305 = arith.addf %299, %304 : vector<4x128xf32>
    %c24 = arith.constant 24 : index
    %c0_215 = arith.constant 0 : index
    %306 = tpu.strided_load %arg16[%c24, %c0_215] {strides = array<i32: 4, 1>} : memref<40x64xf32, #tpu.memory_space<vmem>>, vector<4x64xf32>
    %307 = arith.truncf %306 : vector<4x64xf32> to vector<4x64xbf16>
    %c4_216 = arith.constant 4 : index
    %c0_217 = arith.constant 0 : index
    %c0_218 = arith.constant 0 : index
    %308 = vector.load %arg7[%c4_216, %c0_217, %c0_218] : memref<8x64x128xbf16, #tpu.memory_space<vmem>>, vector<1x64x128xbf16>
    %309 = vector.shape_cast %308 : vector<1x64x128xbf16> to vector<64x128xbf16>
    %cst_219 = arith.constant dense<0.000000e+00> : vector<4x128xf32>
    %310 = tpu.matmul %307, %309, %cst_219 {dimension_numbers = #tpu.dot_dimension_numbers<[1], [0], [0], [1], [0, 0, 1, 1], [], []>} : vector<4x64xbf16>, vector<64x128xbf16>, vector<4x128xf32> -> vector<4x128xf32>
    %311 = arith.addf %305, %310 : vector<4x128xf32>
    %c25 = arith.constant 25 : index
    %c0_220 = arith.constant 0 : index
    %312 = tpu.strided_load %arg16[%c25, %c0_220] {strides = array<i32: 4, 1>} : memref<40x64xf32, #tpu.memory_space<vmem>>, vector<4x64xf32>
    %313 = arith.truncf %312 : vector<4x64xf32> to vector<4x64xbf16>
    %c5_221 = arith.constant 5 : index
    %c0_222 = arith.constant 0 : index
    %c0_223 = arith.constant 0 : index
    %314 = vector.load %arg7[%c5_221, %c0_222, %c0_223] : memref<8x64x128xbf16, #tpu.memory_space<vmem>>, vector<1x64x128xbf16>
    %315 = vector.shape_cast %314 : vector<1x64x128xbf16> to vector<64x128xbf16>
    %cst_224 = arith.constant dense<0.000000e+00> : vector<4x128xf32>
    %316 = tpu.matmul %313, %315, %cst_224 {dimension_numbers = #tpu.dot_dimension_numbers<[1], [0], [0], [1], [0, 0, 1, 1], [], []>} : vector<4x64xbf16>, vector<64x128xbf16>, vector<4x128xf32> -> vector<4x128xf32>
    %317 = arith.addf %311, %316 : vector<4x128xf32>
    %c26 = arith.constant 26 : index
    %c0_225 = arith.constant 0 : index
    %318 = tpu.strided_load %arg16[%c26, %c0_225] {strides = array<i32: 4, 1>} : memref<40x64xf32, #tpu.memory_space<vmem>>, vector<4x64xf32>
    %319 = arith.truncf %318 : vector<4x64xf32> to vector<4x64xbf16>
    %c6_226 = arith.constant 6 : index
    %c0_227 = arith.constant 0 : index
    %c0_228 = arith.constant 0 : index
    %320 = vector.load %arg7[%c6_226, %c0_227, %c0_228] : memref<8x64x128xbf16, #tpu.memory_space<vmem>>, vector<1x64x128xbf16>
    %321 = vector.shape_cast %320 : vector<1x64x128xbf16> to vector<64x128xbf16>
    %cst_229 = arith.constant dense<0.000000e+00> : vector<4x128xf32>
    %322 = tpu.matmul %319, %321, %cst_229 {dimension_numbers = #tpu.dot_dimension_numbers<[1], [0], [0], [1], [0, 0, 1, 1], [], []>} : vector<4x64xbf16>, vector<64x128xbf16>, vector<4x128xf32> -> vector<4x128xf32>
    %323 = arith.addf %317, %322 : vector<4x128xf32>
    %c27 = arith.constant 27 : index
    %c0_230 = arith.constant 0 : index
    %324 = tpu.strided_load %arg16[%c27, %c0_230] {strides = array<i32: 4, 1>} : memref<40x64xf32, #tpu.memory_space<vmem>>, vector<4x64xf32>
    %325 = arith.truncf %324 : vector<4x64xf32> to vector<4x64xbf16>
    %c7_231 = arith.constant 7 : index
    %c0_232 = arith.constant 0 : index
    %c0_233 = arith.constant 0 : index
    %326 = vector.load %arg7[%c7_231, %c0_232, %c0_233] : memref<8x64x128xbf16, #tpu.memory_space<vmem>>, vector<1x64x128xbf16>
    %327 = vector.shape_cast %326 : vector<1x64x128xbf16> to vector<64x128xbf16>
    %cst_234 = arith.constant dense<0.000000e+00> : vector<4x128xf32>
    %328 = tpu.matmul %325, %327, %cst_234 {dimension_numbers = #tpu.dot_dimension_numbers<[1], [0], [0], [1], [0, 0, 1, 1], [], []>} : vector<4x64xbf16>, vector<64x128xbf16>, vector<4x128xf32> -> vector<4x128xf32>
    %329 = arith.addf %323, %328 : vector<4x128xf32>
    %c0_235 = arith.constant 0 : index
    %c0_236 = arith.constant 0 : index
    %330 = vector.load %arg8[%c0_235, %c0_236] : memref<1x128xf32, #tpu.memory_space<vmem>>, vector<1x128xf32>
    %331 = vector.broadcast %330 : vector<1x128xf32> to vector<4x128xf32>
    %332 = arith.addf %329, %331 : vector<4x128xf32>
    %cst_237 = arith.constant dense<0.000000e+00> : vector<128xf32>
    %333 = vector.multi_reduction <add>, %332, %cst_237 [0] : vector<4x128xf32> to vector<128xf32>
    %334 = vector.shape_cast %333 : vector<128xf32> to vector<1x128xf32>
    %335 = arith.addf %276, %334 : vector<1x128xf32>
    %336 = arith.mulf %332, %332 : vector<4x128xf32>
    %cst_238 = arith.constant dense<0.000000e+00> : vector<128xf32>
    %337 = vector.multi_reduction <add>, %336, %cst_238 [0] : vector<4x128xf32> to vector<128xf32>
    %338 = vector.shape_cast %337 : vector<128xf32> to vector<1x128xf32>
    %339 = arith.addf %280, %338 : vector<1x128xf32>
    %cst_239 = arith.constant 1.250000e-01 : f32
    %340 = vector.broadcast %cst_239 : f32 to vector<1x128xf32>
    %341 = arith.mulf %335, %340 : vector<1x128xf32>
    %cst_240 = arith.constant 1.250000e-01 : f32
    %342 = vector.broadcast %cst_240 : f32 to vector<1x128xf32>
    %343 = arith.mulf %339, %342 : vector<1x128xf32>
    %344 = arith.mulf %341, %341 : vector<1x128xf32>
    %345 = arith.subf %343, %344 : vector<1x128xf32>
    %c0_241 = arith.constant 0 : index
    %c0_242 = arith.constant 0 : index
    %346 = vector.load %arg9[%c0_241, %c0_242] : memref<1x128xf32, #tpu.memory_space<vmem>>, vector<1x128xf32>
    %cst_243 = arith.constant 9.99999974E-6 : f32
    %347 = vector.broadcast %cst_243 : f32 to vector<1x128xf32>
    %348 = arith.addf %345, %347 : vector<1x128xf32>
    %349 = math.rsqrt %348 : vector<1x128xf32>
    %350 = arith.mulf %346, %349 : vector<1x128xf32>
    %c0_244 = arith.constant 0 : index
    %c0_245 = arith.constant 0 : index
    %351 = vector.load %arg10[%c0_244, %c0_245] : memref<1x128xf32, #tpu.memory_space<vmem>>, vector<1x128xf32>
    %352 = arith.mulf %341, %350 : vector<1x128xf32>
    %353 = arith.subf %351, %352 : vector<1x128xf32>
    %354 = vector.broadcast %350 : vector<1x128xf32> to vector<4x128xf32>
    %355 = arith.mulf %273, %354 : vector<4x128xf32>
    %356 = vector.broadcast %353 : vector<1x128xf32> to vector<4x128xf32>
    %357 = arith.addf %355, %356 : vector<4x128xf32>
    %cst_246 = arith.constant 0.000000e+00 : f32
    %358 = vector.broadcast %cst_246 : f32 to vector<4x128xf32>
    %359 = arith.cmpf oge, %357, %358 : vector<4x128xf32>
    %cst_247 = arith.constant 2.000000e-01 : f32
    %360 = vector.broadcast %cst_247 : f32 to vector<4x128xf32>
    %361 = arith.mulf %360, %357 : vector<4x128xf32>
    %362 = arith.select %359, %357, %361 : vector<4x128xi1>, vector<4x128xf32>
    %363 = vector.broadcast %350 : vector<1x128xf32> to vector<4x128xf32>
    %364 = arith.mulf %332, %363 : vector<4x128xf32>
    %365 = vector.broadcast %353 : vector<1x128xf32> to vector<4x128xf32>
    %366 = arith.addf %364, %365 : vector<4x128xf32>
    %cst_248 = arith.constant 0.000000e+00 : f32
    %367 = vector.broadcast %cst_248 : f32 to vector<4x128xf32>
    %368 = arith.cmpf oge, %366, %367 : vector<4x128xf32>
    %cst_249 = arith.constant 2.000000e-01 : f32
    %369 = vector.broadcast %cst_249 : f32 to vector<4x128xf32>
    %370 = arith.mulf %369, %366 : vector<4x128xf32>
    %371 = arith.select %368, %366, %370 : vector<4x128xi1>, vector<4x128xf32>
    %c0_250 = arith.constant 0 : index
    %c0_251 = arith.constant 0 : index
    %372 = vector.load %arg11[%c0_250, %c0_251] : memref<4x128xf32, #tpu.memory_space<vmem>>, vector<4x128xf32>
    %c0_252 = arith.constant 0 : index
    %c0_253 = arith.constant 0 : index
    %373 = vector.load %arg12[%c0_252, %c0_253] : memref<1x1xf32, #tpu.memory_space<vmem>>, vector<1x1xf32>
    %c0_254 = arith.constant 0 : index
    %c0_255 = arith.constant 0 : index
    %374 = vector.load %arg13[%c0_254, %c0_255] : memref<8x128xf32, #tpu.memory_space<vmem>>, vector<4x128xf32>
    tpu.vector_store %arg13[%c0_254, %c0_255], %362 {strides = array<i32>} : memref<8x128xf32, #tpu.memory_space<vmem>>, vector<4x128xf32>,
    %375 = arith.mulf %362, %372 : vector<4x128xf32>
    %cst_256 = arith.constant dense<0.000000e+00> : vector<4xf32>
    %376 = vector.multi_reduction <add>, %375, %cst_256 [1] : vector<4x128xf32> to vector<4xf32>
    %377 = vector.shape_cast %376 : vector<4xf32> to vector<4x1xf32>
    %cst_257 = arith.constant dense<0.000000e+00> : vector<1xf32>
    %378 = vector.multi_reduction <add>, %377, %cst_257 [0] : vector<4x1xf32> to vector<1xf32>
    %379 = vector.shape_cast %378 : vector<1xf32> to vector<1x1xf32>
    %380 = arith.addf %379, %373 : vector<1x1xf32>
    %c0_258 = arith.constant 0 : index
    %c0_259 = arith.constant 0 : index
    %381 = vector.load %arg14[%c0_258, %c0_259] : memref<2x1xf32, #tpu.memory_space<vmem>>, vector<1x1xf32>
    tpu.vector_store %arg14[%c0_258, %c0_259], %380 {strides = array<i32>} : memref<2x1xf32, #tpu.memory_space<vmem>>, vector<1x1xf32>,
    %c4_260 = arith.constant 4 : index
    %c0_261 = arith.constant 0 : index
    %382 = vector.load %arg13[%c4_260, %c0_261] : memref<8x128xf32, #tpu.memory_space<vmem>>, vector<4x128xf32>
    tpu.vector_store %arg13[%c4_260, %c0_261], %371 {strides = array<i32>} : memref<8x128xf32, #tpu.memory_space<vmem>>, vector<4x128xf32>,
    %383 = arith.mulf %371, %372 : vector<4x128xf32>
    %cst_262 = arith.constant dense<0.000000e+00> : vector<4xf32>
    %384 = vector.multi_reduction <add>, %383, %cst_262 [1] : vector<4x128xf32> to vector<4xf32>
    %385 = vector.shape_cast %384 : vector<4xf32> to vector<4x1xf32>
    %cst_263 = arith.constant dense<0.000000e+00> : vector<1xf32>
    %386 = vector.multi_reduction <add>, %385, %cst_263 [0] : vector<4x1xf32> to vector<1xf32>
    %387 = vector.shape_cast %386 : vector<1xf32> to vector<1x1xf32>
    %388 = arith.addf %387, %373 : vector<1x1xf32>
    %c1_264 = arith.constant 1 : index
    %c0_265 = arith.constant 0 : index
    %389 = vector.load %arg14[%c1_264, %c0_265] : memref<2x1xf32, #tpu.memory_space<vmem>>, vector<1x1xf32>
    tpu.vector_store %arg14[%c1_264, %c0_265], %388 {strides = array<i32>} : memref<2x1xf32, #tpu.memory_space<vmem>>, vector<1x1xf32>,
    return
  }
}

</mosaic_0001>

<bundles_post_ra>
// kernel: conv1d_discriminator_forward.1
= control target key start
LH: loop header
LB: loop body
LE: loop exit
PB: predicated region body
PF: predicated region fallthrough
CT: control target
= control target key end

     0   :  { %s5384_s0 = inlined_call_operand.vmem [shape: f32[128,8], index: 0, kind: input, shape index: {}]   ;;  %s5385_s1 = inlined_call_operand.vmem [shape: f32[8,32], index: 1, kind: input, shape index: {}]   ;;  %s5386_s2 = inlined_call_operand.vmem [shape: f32[1,32], index: 2, kind: input, shape index: {}]   ;;  %s5387_s3 = inlined_call_operand.vmem [shape: bf16[8,32,64], index: 3, kind: input, shape index: {}]   ;;  %s5388_s4 = inlined_call_operand.vmem [shape: f32[1,64], index: 4, kind: input, shape index: {}]   ;;  %s5389_s5 = inlined_call_operand.vmem [shape: f32[1,64], index: 5, kind: input, shape index: {}]   ;;  %s5390_s6 = inlined_call_operand.vmem [shape: f32[1,64], index: 6, kind: input, shape index: {}]   ;;  %s5391_s7 = inlined_call_operand.vmem [shape: bf16[8,64,128], index: 7, kind: input, shape index: {}]   ;;  %s5392_s8 = inlined_call_operand.vmem [shape: f32[1,128], index: 8, kind: input, shape index: {}]   ;;  %s5393_s9 = inlined_call_operand.vmem [shape: f32[1,128], index: 9, kind: input, shape index: {}]   ;;  %s5394_s10 = inlined_call_operand.vmem [shape: f32[1,128], index: 10, kind: input, shape index: {}]   ;;  %s5395_s11 = inlined_call_operand.vmem [shape: f32[4,128], index: 11, kind: input, shape index: {}]   ;;  %s5396_s12 = inlined_call_operand.<no memory space> [shape: f32[1,1], index: 12, kind: input, shape index: {}]   ;;  %s5397_s13 = inlined_call_operand.hbm [shape: f32[8,128], index: 13, kind: output, shape index: {0}]   ;;  %s5398_s14 = inlined_call_operand.vmem [shape: f32[2,1], index: 14, kind: output, shape index: {1}]  }
   0x1   :  { %v20_v0 = vstv %s5396_s12 }
   0x2   :  { %21 = vst [vmem:[#allocation4] sm:$0x1] %v20_v0 }
   0x3   :  { %v4009_v1 = vld [vmem:[%s5384_s0 + $0x10] sm:$0xff]  ;;  %v4014_v2 = vld [vmem:[%s5384_s0 + $0x8] sm:$0xff]  ;;  %v5401_v3 = vmov 6   ;;  %v3918_v4 = vmov 0   ;;  %v4023_v5 = vld [vmem:[%s5384_s0 + $0x18] sm:$0xff]  ;;  %v5403_v11 = vmov 7  }
   0x4   :  { %3822 = vset.pattern.permute.xlu0 %v5401_v3  ;;  %3815 = vset.pattern.permute.xlu1 %v3918_v4  ;;  %v4028_v6 = vld [vmem:[%s5384_s0 + $0x20] sm:$0xff]  ;;  %v4033_v7 = vld [vmem:[%s5384_s0 + $0x28] sm:$0xff]  ;;  %v4038_v8 = vld [vmem:[%s5384_s0 + $0x30] sm:$0xff]  ;;  %v3920_v12 = vmov 1   ;;  %v3921_v13 = vmov 2  }
   0x5   :  { %103 = vperm.xlu1 %3815, %v4009_v1   ;;  %718 = vperm.xlu0 %3822, %v4014_v2   ;;  %v4045_v9 = vld [vmem:[%s5384_s0 + $0x38] sm:$0xff]  ;;  %v4052_v10 = vld [vmem:[%s5384_s0] sm:$0xff] }
   0x9   :  { %108 = vperm.xlu1 %3815, %v4023_v5   ;;  %730 = vperm.xlu0 %3822, %v4028_v6  }
   0xd   :  { %118 = vperm.xlu1 %3815, %v4033_v7   ;;  %738 = vperm.xlu0 %3822, %v4038_v8  }
  0x11   :  { %128 = vperm.xlu1 %3815, %v4045_v9   ;;  %3823 = vset.pattern.permute.xlu0 %v5403_v11 }
  0x12   :  { %815 = vperm.xlu0 %3823, %v4052_v10  }
  0x15   :  { %3816 = vset.pattern.permute.xlu1 %v3920_v12 }
  0x16   :  { %213 = vperm.xlu1 %3816, %v4014_v2   ;;  %827 = vperm.xlu0 %3823, %v4023_v5  }
  0x1a   :  { %217 = vperm.xlu1 %3816, %v4009_v1   ;;  %835 = vperm.xlu0 %3823, %v4033_v7  }
  0x1e   :  { %225 = vperm.xlu1 %3816, %v4028_v6   ;;  %843 = vperm.xlu0 %3823, %v4045_v9  }
  0x22   :  { %233 = vperm.xlu1 %3816, %v4038_v8   ;;  %3825 = vset.pattern.permute.xlu0 %v3918_v4 }
  0x23   :  { %93 = vperm.xlu0 %3825, %v4052_v10  }
  0x26   :  { %3817 = vset.pattern.permute.xlu1 %v3921_v13 }
  0x27   :  { %98 = vperm.xlu0 %3825, %v4014_v2   ;;  %310 = vperm.xlu1 %3817, %v4052_v10  }
  0x28   :  { %22 = vsyncpa [#allocation6], 0  ;;  %v4077_v14 = vld [vmem:[%s5384_s0 + $0x48] sm:$0xff]  ;;  %v4084_v15 = vld [vmem:[%s5384_s0 + $0x60] sm:$0xff]  ;;  %v3922_v17 = vmov 3   ;;  %v3923_v18 = vmov 4  }
  0x29   :  { %v4091_v16 = vld [vmem:[%s5384_s0 + $0x70] sm:$0xff]  ;;  %v4109_v19 = vld [vmem:[%s5384_s0 + $0x40] sm:$0xff]  ;;  %v4116_v20 = vld [vmem:[%s5384_s0 + $0x58] sm:$0xff]  ;;  %v5402_v23 = vmov 5   ;;  %vm50_vm0 = vcmask 261120   ;;  %v5399_v30 = vmov 0.0  }
  0x2a   :  { %v4123_v21 = vld [vmem:[%s5384_s0 + $0x68] sm:$0xff]  ;;  %v4130_v22 = vld [vmem:[%s5384_s0 + $0x78] sm:$0xff]  ;;  %53 = vst.msk [vmem:[#allocation2 + $0x10] sm:$0xff] %vm50_vm0, %v5399_v30  ;;  %54 = vst.msk [vmem:[#allocation2 + $0x18] sm:$0xff] %vm50_vm0, %v5399_v30  ;;  %3484 = vmatprep.subr.bf16.mxu0 %v5399_v30  ;;  %3492 = vmatprep.subr.bf16.mxu1 %v5399_v30  ;;  %vm3926_vm1 = vmmov 0  }
  0x2b   :  { %113 = vperm.xlu0 %3825, %v4028_v6   ;;  %318 = vperm.xlu1 %3817, %v4009_v1   ;;  %51 = vst.msk [vmem:[#allocation2] sm:$0xff] %vm50_vm0, %v5399_v30  ;;  %52 = vst.msk [vmem:[#allocation2 + $0x8] sm:$0xff] %vm50_vm0, %v5399_v30  ;;  %v4232_v37 = vld [vmem:[%s5384_s0 + $0x50] sm:$0xff]  ;;  %v4321_v0 = vld [vmem:[%s5387_s3] sm:$0xff]  }
  0x2c   :  { %55 = vst.msk [vmem:[#allocation2 + $0x20] sm:$0xff] %vm50_vm0, %v5399_v30  ;;  %56 = vst.msk [vmem:[#allocation2 + $0x28] sm:$0xff] %vm50_vm0, %v5399_v30  ;;  %v4316_v63 = vld [vmem:[%s5387_s3 + $0x10] sm:$0xff]   ;;  %3493 = vmatpush3.bf16.msra.mxu1 %v4321_v0  ;;  %3488 = vmatprep.mubr.msk.bf16.mxu0 %vm3926_vm1, %v5399_v30 }
  0x2d   :  { %57 = vst.msk [vmem:[#allocation2 + $0x30] sm:$0xff] %vm50_vm0, %v5399_v30  ;;  %58 = vst.msk [vmem:[#allocation2 + $0x38] sm:$0xff] %vm50_vm0, %v5399_v30  ;;  %3485 = vmatpush3.bf16.msra.mxu0 %v4316_v63  ;;  %3494 = vmatprep.subr.bf16.mxu1 %v5399_v30 }
  0x2e   :  { %59 = vst.msk [vmem:[#allocation2 + $0x40] sm:$0xff] %vm50_vm0, %v5399_v30  ;;  %60 = vst.msk [vmem:[#allocation2 + $0x48] sm:$0xff] %vm50_vm0, %v5399_v30  ;;  %3486 = vmatprep.subr.bf16.mxu0 %v5399_v30  ;;  %3496 = vmatprep.mubr.msk.bf16.mxu1 %vm3926_vm1, %v5399_v30 }
  0x2f   :  { %123 = vperm.xlu0 %3825, %v4038_v8   ;;  %322 = vperm.xlu1 %3817, %v4023_v5   ;;  %61 = vst.msk [vmem:[#allocation2 + $0x50] sm:$0xff] %vm50_vm0, %v5399_v30  ;;  %62 = vst.msk [vmem:[#allocation2 + $0x58] sm:$0xff] %vm50_vm0, %v5399_v30 }
  0x30   :  { %63 = vst.msk [vmem:[#allocation2 + $0x60] sm:$0xff] %vm50_vm0, %v5399_v30  ;;  %64 = vst.msk [vmem:[#allocation2 + $0x68] sm:$0xff] %vm50_vm0, %v5399_v30 }
  0x31   :  { %65 = vst.msk [vmem:[#allocation2 + $0x70] sm:$0xff] %vm50_vm0, %v5399_v30  ;;  %66 = vst.msk [vmem:[#allocation2 + $0x78] sm:$0xff] %vm50_vm0, %v5399_v30 }
  0x32   :  { %67 = vst.msk [vmem:[#allocation2 + $0x80] sm:$0xff] %vm50_vm0, %v5399_v30  ;;  %5418 = vst [vmem:[#allocation18_spill] sm:$0xff] %v4316_v63 }
  0x33   :  { %138 = vperm.xlu0 %3825, %v4077_v14   ;;  %330 = vperm.xlu1 %3817, %v4033_v7   ;;  %5419 = vst [vmem:[#allocation19_spill] sm:$0xff] %v4321_v0 }
  0x37   :  { %153 = vperm.xlu0 %3825, %v4084_v15   ;;  %338 = vperm.xlu1 %3817, %v4045_v9  }
  0x3b   :  { %163 = vperm.xlu0 %3825, %v4091_v16   ;;  %3818 = vset.pattern.permute.xlu1 %v3922_v17 }
  0x3c   :  { %415 = vperm.xlu1 %3818, %v4014_v2  }
  0x3f   :  { %3827 = vset.pattern.permute.xlu0 %v3920_v12 }
  0x40   :  { %209 = vperm.xlu0 %3827, %v4052_v10   ;;  %419 = vperm.xlu1 %3818, %v4009_v1  }
  0x44   :  { %221 = vperm.xlu0 %3827, %v4023_v5   ;;  %427 = vperm.xlu1 %3818, %v4028_v6  }
  0x48   :  { %229 = vperm.xlu0 %3827, %v4033_v7   ;;  %435 = vperm.xlu1 %3818, %v4038_v8  }
  0x4c   :  { %237 = vperm.xlu0 %3827, %v4045_v9   ;;  %3819 = vset.pattern.permute.xlu1 %v3923_v18 }
  0x4d   :  { %512 = vperm.xlu1 %3819, %v4052_v10  }
  0x50   :  { %241 = vperm.xlu0 %3827, %v4109_v19  }
  0x51   :  { %520 = vperm.xlu1 %3819, %v4009_v1  }
  0x54   :  { %253 = vperm.xlu0 %3827, %v4116_v20  }
  0x55   :  { %524 = vperm.xlu1 %3819, %v4023_v5  }
  0x58   :  { %261 = vperm.xlu0 %3827, %v4123_v21  }
  0x59   :  { %532 = vperm.xlu1 %3819, %v4033_v7  }
  0x5c   :  { %269 = vperm.xlu0 %3827, %v4130_v22  }
  0x5d   :  { %540 = vperm.xlu1 %3819, %v4045_v9  }
  0x60   :  { %3829 = vset.pattern.permute.xlu0 %v3921_v13 }
  0x61   :  { %314 = vperm.xlu0 %3829, %v4014_v2   ;;  %3820 = vset.pattern.permute.xlu1 %v5402_v23 }
  0x62   :  { %617 = vperm.xlu1 %3820, %v4014_v2  }
  0x65   :  { %326 = vperm.xlu0 %3829, %v4028_v6  }
  0x66   :  { %621 = vperm.xlu1 %3820, %v4009_v1  }
  0x69   :  { %334 = vperm.xlu0 %3829, %v4038_v8  }
  0x6a   :  { %629 = vperm.xlu1 %3820, %v4028_v6  }
  0x6d   :  { %346 = vperm.xlu0 %3829, %v4077_v14  }
  0x6e   :  { %637 = vperm.xlu1 %3820, %v4038_v8  }
  0x71   :  { %358 = vperm.xlu0 %3829, %v4084_v15  }
  0x72   :  { %3821 = vset.pattern.permute.xlu1 %v5401_v3 }
  0x73   :  { %714 = vperm.xlu1 %3821, %v4052_v10  }
  0x75   :  { %366 = vperm.xlu0 %3829, %v4091_v16  }
  0x77   :  { %722 = vperm.xlu1 %3821, %v4009_v1  }
  0x79   :  { %3831 = vset.pattern.permute.xlu0 %v3922_v17 }
  0x7a   :  { %411 = vperm.xlu0 %3831, %v4052_v10  }
  0x7b   :  { %726 = vperm.xlu1 %3821, %v4023_v5  }
  0x7e   :  { %423 = vperm.xlu0 %3831, %v4023_v5  }
  0x7f   :  { %734 = vperm.xlu1 %3821, %v4033_v7  }
  0x82   :  { %431 = vperm.xlu0 %3831, %v4033_v7  }
  0x83   :  { %742 = vperm.xlu1 %3821, %v4045_v9  }
  0x84   :  { %v4156_v24 = vpop.permute.xlu1 %103  ;;  %v4158_v25 = vpop.permute.xlu0 %718 }
  0x86   :  { %439 = vperm.xlu0 %3831, %v4045_v9  }
  0x87   :  { %3824 = vset.pattern.permute.xlu1 %v5403_v11 }
  0x88   :  { %v4162_v26 = vpop.permute.xlu1 %108  ;;  %819 = vperm.xlu1 %3824, %v4014_v2   ;;  %v4165_v27 = vpop.permute.xlu0 %730 }
  0x8a   :  { %443 = vperm.xlu0 %3831, %v4109_v19  }
  0x8c   :  { %v4168_v28 = vpop.permute.xlu1 %118  ;;  %823 = vperm.xlu1 %3824, %v4009_v1   ;;  %v4171_v29 = vpop.permute.xlu0 %738 }
  0x8e   :  { %455 = vperm.xlu0 %3831, %v4116_v20  }
  0x90   :  { %v4210_v31 = vpop.permute.xlu1 %128  ;;  %831 = vperm.xlu1 %3824, %v4028_v6  }
  0x91   :  { %5408 = vst [vmem:[#allocation8_spill] sm:$0xff] %v4210_v31  ;;  %v4213_v32 = vpop.permute.xlu0 %815 }
  0x92   :  { %5409 = vst [vmem:[#allocation9_spill] sm:$0xff] %v4213_v32  ;;  %463 = vperm.xlu0 %3831, %v4123_v21  }
  0x94   :  { %839 = vperm.xlu1 %3824, %v4038_v8  }
  0x95   :  { %v4217_v33 = vpop.permute.xlu1 %213  ;;  %v4219_v34 = vpop.permute.xlu0 %827 }
  0x96   :  { %5410 = vst [vmem:[#allocation10_spill] sm:$0xff] %v4219_v34  ;;  %471 = vperm.xlu0 %3831, %v4130_v22   ;;  %v4409_v34 = vld [vmem:[%s5385_s1] ss:$0 sm:$0xff] }
  0x98   :  { %3826 = vset.pattern.permute.xlu1 %v3918_v4  ;;  %v4336_v4 = vld [vmem:[%s5387_s3 + $0x18] sm:$0xff]  }
  0x99   :  { %v4223_v35 = vpop.permute.xlu1 %217  ;;  %133 = vperm.xlu1 %3826, %v4109_v19   ;;  %v4226_v36 = vpop.permute.xlu0 %835  ;;  %5420 = vst [vmem:[#allocation20_spill] sm:$0xff] %v4336_v4  ;;  %3487 = vmatpush3.bf16.msra.mxu0 %v4336_v4 }
  0x9a   :  { %5411 = vst [vmem:[#allocation11_spill] sm:$0xff] %v4226_v36  ;;  %3833 = vset.pattern.permute.xlu0 %v3923_v18  ;;  %3500 = vmatprep.subr.bf16.mxu0 %v5399_v30  ;;  %v5428_v36 = vmov 5  }
  0x9b   :  { %516 = vperm.xlu0 %3833, %v4014_v2  }
  0x9d   :  { %v4235_v38 = vpop.permute.xlu1 %225  ;;  %143 = vperm.xlu1 %3826, %v4232_v37   ;;  %v4238_v39 = vpop.permute.xlu0 %843 }
  0x9e   :  { %5412 = vst [vmem:[#allocation12_spill] sm:$0xff] %v4238_v39 }
  0x9f   :  { %528 = vperm.xlu0 %3833, %v4028_v6  }
  0xa1   :  { %v4241_v40 = vpop.permute.xlu1 %233  ;;  %148 = vperm.xlu1 %3826, %v4116_v20  }
  0xa2   :  { %v4244_v41 = vpop.permute.xlu0 %93 }
  0xa3   :  { %536 = vperm.xlu0 %3833, %v4038_v8  }
  0xa5   :  { %158 = vperm.xlu1 %3826, %v4123_v21  }
  0xa6   :  { %v4248_v42 = vpop.permute.xlu0 %98  ;;  %v4250_v43 = vpop.permute.xlu1 %310 }
  0xa7   :  { %548 = vperm.xlu0 %3833, %v4077_v14  }
  0xa9   :  { %168 = vperm.xlu1 %3826, %v4130_v22  }
  0xaa   :  { %v4254_v44 = vpop.permute.xlu0 %113  ;;  %v4256_v45 = vpop.permute.xlu1 %318 }
  0xab   :  { %560 = vperm.xlu0 %3833, %v4084_v15  }
  0xad   :  { %3828 = vset.pattern.permute.xlu1 %v3920_v12 }
  0xae   :  { %v4260_v46 = vpop.permute.xlu0 %123  ;;  %245 = vperm.xlu1 %3828, %v4077_v14   ;;  %v4263_v47 = vpop.permute.xlu1 %322 }
  0xaf   :  { %568 = vperm.xlu0 %3833, %v4091_v16  }
  0xb2   :  { %249 = vperm.xlu1 %3828, %v4232_v37   ;;  %v4267_v48 = vpop.permute.xlu1 %330  ;;  %v4269_v49 = vpop.permute.xlu0 %138 }
  0xb3   :  { %5413 = vst [vmem:[#allocation13_spill] sm:$0xff] %v4267_v48  ;;  %3835 = vset.pattern.permute.xlu0 %v5402_v23 }
  0xb4   :  { %613 = vperm.xlu0 %3835, %v4052_v10  }
  0xb6   :  { %257 = vperm.xlu1 %3828, %v4084_v15   ;;  %v4274_v50 = vpop.permute.xlu1 %338  ;;  %v4276_v51 = vpop.permute.xlu0 %153 }
  0xb7   :  { %5414 = vst [vmem:[#allocation14_spill] sm:$0xff] %v4274_v50  ;;  %5415 = vst [vmem:[#allocation15_spill] sm:$0xff] %v4276_v51 }
  0xb8   :  { %625 = vperm.xlu0 %3835, %v4023_v5   ;;  %v4341_v5 = vld [vmem:[%s5387_s3 + $0x8] sm:$0xff]  }
  0xb9   :  { %5421 = vst [vmem:[#allocation21_spill] sm:$0xff] %v4341_v5  ;;  %3495 = vmatpush3.bf16.msra.mxu1 %v4341_v5 }
  0xba   :  { %265 = vperm.xlu1 %3828, %v4091_v16   ;;  %v4280_v52 = vpop.permute.xlu0 %163  ;;  %3508 = vmatprep.subr.bf16.mxu1 %v5399_v30 }
  0xbb   :  { %5416 = vst [vmem:[#allocation16_spill] sm:$0xff] %v4280_v52  ;;  %v4282_v53 = vpop.permute.xlu1 %415 }
  0xbc   :  { %633 = vperm.xlu0 %3835, %v4033_v7  }
  0xbe   :  { %3830 = vset.pattern.permute.xlu1 %v3921_v13 }
  0xbf   :  { %v4286_v54 = vpop.permute.xlu0 %209  ;;  %342 = vperm.xlu1 %3830, %v4109_v19   ;;  %v4289_v55 = vpop.permute.xlu1 %419 }
  0xc0   :  { %641 = vperm.xlu0 %3835, %v4045_v9  }
  0xc3   :  { %v4292_v56 = vpop.permute.xlu0 %221  ;;  %350 = vperm.xlu1 %3830, %v4232_v37   ;;  %v4295_v57 = vpop.permute.xlu1 %427 }
  0xc4   :  { %645 = vperm.xlu0 %3835, %v4109_v19  }
  0xc7   :  { %v4298_v58 = vpop.permute.xlu0 %229  ;;  %354 = vperm.xlu1 %3830, %v4116_v20   ;;  %v4301_v59 = vpop.permute.xlu1 %435 }
  0xc8   :  { %657 = vperm.xlu0 %3835, %v4116_v20  }
  0xcb   :  { %v4304_v60 = vpop.permute.xlu0 %237  ;;  %362 = vperm.xlu1 %3830, %v4123_v21  }
  0xcc   :  { %v4307_v61 = vpop.permute.xlu1 %512  ;;  %665 = vperm.xlu0 %3835, %v4123_v21  }
  0xcd   :  { %5417 = vst [vmem:[#allocation17_spill] sm:$0xff] %v4307_v61  ;;  %v5434_v61 = vmov 6  }
  0xcf   :  { %370 = vperm.xlu1 %3830, %v4130_v22   ;;  %v4311_v62 = vpop.permute.xlu0 %241 }
  0xd0   :  { %v4323_v1 = vpop.permute.xlu1 %520  ;;  %673 = vperm.xlu0 %3835, %v4130_v22  }
  0xd3   :  { %3832 = vset.pattern.permute.xlu1 %v3922_v17  ;;  %v4331_v2 = vpop.permute.xlu0 %253 }
  0xd4   :  { %447 = vperm.xlu1 %3832, %v4077_v14   ;;  %v4344_v6 = vpop.permute.xlu1 %524  ;;  %3838 = vset.pattern.permute.xlu0 %v5401_v3 }
  0xd5   :  { %5422 = vst [vmem:[#allocation22_spill] sm:$0xff] %v4344_v6  ;;  %750 = vperm.xlu0 %3838, %v4077_v14  }
  0xd7   :  { %v4351_v7 = vpop.permute.xlu0 %261 }
  0xd8   :  { %451 = vperm.xlu1 %3832, %v4232_v37   ;;  %v4358_v8 = vpop.permute.xlu1 %532 }
  0xd9   :  { %5423 = vst [vmem:[#allocation23_spill] sm:$0xff] %v4358_v8  ;;  %762 = vperm.xlu0 %3838, %v4084_v15  }
  0xdb   :  { %v4362_v9 = vpop.permute.xlu0 %269 }
  0xdc   :  { %459 = vperm.xlu1 %3832, %v4084_v15   ;;  %v4365_v10 = vpop.permute.xlu1 %540 }
  0xdd   :  { %5424 = vst [vmem:[#allocation24_spill] sm:$0xff] %v4365_v10  ;;  %770 = vperm.xlu0 %3838, %v4091_v16  }
  0xe0   :  { %v4368_v12 = vpop.permute.xlu0 %314  ;;  %467 = vperm.xlu1 %3832, %v4091_v16  }
  0xe1   :  { %v4371_v13 = vpop.permute.xlu1 %617  ;;  %3839 = vset.pattern.permute.xlu0 %v5403_v11 }
  0xe2   :  { %847 = vperm.xlu0 %3839, %v4109_v19  }
  0xe4   :  { %v4375_v17 = vpop.permute.xlu0 %326  ;;  %3834 = vset.pattern.permute.xlu1 %v3923_v18 }
  0xe5   :  { %544 = vperm.xlu1 %3834, %v4109_v19   ;;  %v622_v30 = vpop.permute.xlu1 %621 }
  0xe6   :  { %859 = vperm.xlu0 %3839, %v4116_v20  }
  0xe8   :  { %v4380_v3 = vpop.permute.xlu0 %334 }
  0xe9   :  { %552 = vperm.xlu1 %3834, %v4232_v37   ;;  %v4383_v23 = vpop.permute.xlu1 %629 }
  0xea   :  { %867 = vperm.xlu0 %3839, %v4123_v21  }
  0xec   :  { %v4386_v11 = vpop.permute.xlu0 %346 }
  0xed   :  { %556 = vperm.xlu1 %3834, %v4116_v20   ;;  %v4389_v5 = vpop.permute.xlu1 %637 }
  0xee   :  { %875 = vperm.xlu0 %3839, %v4130_v22  }
  0xf0   :  { %v4392_v18 = vpop.permute.xlu0 %358 }
  0xf1   :  { %5425 = vst [vmem:[#allocation25_spill] sm:$0xff] %v4392_v18  ;;  %564 = vperm.xlu1 %3834, %v4123_v21   ;;  %v177_v18 = vmul.f32 %v4409_v34, %v4156_v24  ;;  %v4447_v24 = vld [vmem:[%s5385_s1 + $0x4] ss:$0 sm:$0xff] }
  0xf2   :  { %v4395_v4 = vpop.permute.xlu1 %714  ;;  %v581_v32 = vmul.f32 %v4447_v24, %v4323_v1 }
  0xf3   :  { %5426 = vst [vmem:[#allocation26_spill] sm:$0xff] %v4395_v4  ;;  %v4435_v4 = vld [vmem:[%s5385_s1 + $0x3] ss:$0 sm:$0xff] }
  0xf4   :  { %v4397_v0 = vpop.permute.xlu0 %366 }
  0xf5   :  { %5427 = vst [vmem:[#allocation27_spill] sm:$0xff] %v4397_v0  ;;  %572 = vperm.xlu1 %3834, %v4130_v22   ;;  %v4414_v0 = vld [vmem:[%s5385_s1 + $0x1] ss:$0 sm:$0xff] }
  0xf6   :  { %v723_v63 = vpop.permute.xlu1 %722  ;;  %v278_v52 = vmul.f32 %v4414_v0, %v4223_v35 }
  0xf8   :  { %v294_v6 = vadd.f32 %v278_v52, %v177_v18  ;;  %v4454_v52 = vld [vmem:[%s5385_s1 + $0x5] ss:$0 sm:$0xff] }
  0xf9   :  { %v4400_v39 = vpop.permute.xlu0 %411  ;;  %3836 = vset.pattern.permute.xlu1 %v5428_v36 }
  0xfa   :  { %649 = vperm.xlu1 %3836, %v4077_v14   ;;  %v4404_v10 = vpop.permute.xlu1 %726 }
  0xfb   :  { %5429 = vst [vmem:[#allocation28_spill] sm:$0xff] %v4404_v10  ;;  %v4426_v10 = vld [vmem:[%s5385_s1 + $0x2] ss:$0 sm:$0xff] }
  0xfc   :  { %v379_v50 = vmul.f32 %v4426_v10, %v4256_v45 }
  0xfd   :  { %v4416_v8 = vpop.permute.xlu0 %423 }
  0xfe   :  { %653 = vperm.xlu1 %3836, %v4232_v37   ;;  %v4421_v36 = vpop.permute.xlu1 %734  ;;  %v395_v45 = vadd.f32 %v379_v50, %v294_v6 }
  0xff   :  { %5430 = vst [vmem:[#allocation29_spill] sm:$0xff] %v4421_v36  ;;  %v480_v36 = vmul.f32 %v4435_v4, %v4289_v55 }
 0x101   :  { %v4437_v35 = vpop.permute.xlu0 %431  ;;  %v496_v55 = vadd.f32 %v480_v36, %v395_v45 }
 0x102   :  { %5431 = vst [vmem:[#allocation30_spill] sm:$0xff] %v4437_v35  ;;  %661 = vperm.xlu1 %3836, %v4084_v15   ;;  %v4442_v51 = vpop.permute.xlu1 %742  ;;  %v682_v35 = vmul.f32 %v4454_v52, %v622_v30  ;;  %v4474_v30 = vld [vmem:[%s5385_s1 + $0x7] ss:$0 sm:$0xff] }
 0x103   :  { %5432 = vst [vmem:[#allocation31_spill] sm:$0xff] %v4442_v51  ;;  %v4463_v51 = vld [vmem:[%s5385_s1 + $0x6] ss:$0 sm:$0xff]  ;;  %v597_v1 = vadd.f32 %v581_v32, %v496_v55  ;;  %v4481_v32 = vld [vmem:[%s5386_s2] ss:$0 sm:$0xff] }
 0x104   :  { %v783_v6 = vmul.f32 %v4463_v51, %v723_v63 }
 0x105   :  { %v4456_v18 = vpop.permute.xlu0 %439  ;;  %v698_v31 = vadd.f32 %v682_v35, %v597_v1 }
 0x106   :  { %5433 = vst [vmem:[#allocation32_spill] sm:$0xff] %v4456_v18  ;;  %669 = vperm.xlu1 %3836, %v4091_v16  }
 0x107   :  { %v4465_v50 = vpop.permute.xlu1 %819  ;;  %v799_v45 = vadd.f32 %v783_v6, %v698_v31  ;;  %v277_v6 = vmul.f32 %v4414_v0, %v4217_v33 }
 0x109   :  { %v4468_v48 = vpop.permute.xlu0 %443 }
 0x10a   :  { %3837 = vset.pattern.permute.xlu1 %v5434_v61 }
 0x10b   :  { %746 = vperm.xlu1 %3837, %v4109_v19   ;;  %v824_v36 = vpop.permute.xlu1 %823  ;;  %v176_v19 = vmul.f32 %v4409_v34, %v4248_v42 }
 0x10c   :  { %v884_v18 = vmul.f32 %v4474_v30, %v824_v36  ;;  %v378_v36 = vmul.f32 %v4426_v10, %v4368_v12  ;;  %v381_v12 = vmul.f32 %v4426_v10, %v4375_v17  ;;  %v383_v17 = vmul.f32 %v4426_v10, %v4380_v3 }
 0x10d   :  { %v4483_v63 = vpop.permute.xlu0 %455 }
 0x10e   :  { %5435 = vst [vmem:[#allocation33_spill] sm:$0xff] %v4483_v63  ;;  %v900_v35 = vadd.f32 %v884_v18, %v799_v45  ;;  %v293_v63 = vadd.f32 %v277_v6, %v176_v19 }
 0x10f   :  { %754 = vperm.xlu1 %3837, %v4232_v37   ;;  %v832_v61 = vpop.permute.xlu1 %831 }
 0x110   :  { %v923_v55 = vadd.f32 %v4481_v32, %v900_v35  ;;  %v179_v35 = vmul.f32 %v4409_v34, %v4254_v44  ;;  %v394_v33 = vadd.f32 %v378_v36, %v293_v63  ;;  %v479_v44 = vmul.f32 %v4435_v4, %v4282_v53 }
 0x111   :  { %v4489_v1 = vpop.permute.xlu0 %463 }
 0x112   :  { %5436 = vst [vmem:[#allocation34_spill] sm:$0xff] %v4489_v1  ;;  %vm939_vm2 = vcmp.ge.f32.partialorder %v923_v55, 0.0  ;;  %v955_v31 = vmul.f32 0.2, %v923_v55  ;;  %v280_v1 = vmul.f32 %v4414_v0, %v4235_v38  ;;  %v282_v38 = vmul.f32 %v4414_v0, %v4241_v40 }
 0x113   :  { %758 = vperm.xlu1 %3837, %v4116_v20   ;;  %v4496_v18 = vpop.permute.xlu1 %839  ;;  %v181_v20 = vmul.f32 %v4409_v34, %v4260_v46  ;;  %v495_v46 = vadd.f32 %v479_v44, %v394_v33  ;;  %v681_v40 = vmul.f32 %v4454_v52, %v4371_v13  ;;  %v684_v13 = vmul.f32 %v4454_v52, %v4383_v23 }
 0x114   :  { %v971_v45 = vsel %vm939_vm2, %v923_v55, %v955_v31  ;;  %v296_v19 = vadd.f32 %v280_v1, %v179_v35  ;;  %v284_v31 = vmul.f32 %v4414_v0, %v4311_v62  ;;  %v482_v62 = vmul.f32 %v4435_v4, %v4295_v57 }
 0x115   :  { %987 = vst.msk [vmem:[#allocation2 + $0x12] sm:$0xff] %vm50_vm0, %v971_v45  ;;  %v4501_v42 = vpop.permute.xlu0 %471  ;;  %v298_v53 = vadd.f32 %v282_v38, %v181_v20  ;;  %v484_v20 = vmul.f32 %v4435_v4, %v4301_v59  ;;  %v287_v57 = vmul.f32 %v4414_v0, %v4331_v2 }
 0x116   :  { %v397_v63 = vadd.f32 %v381_v12, %v296_v19  ;;  %v782_v12 = vmul.f32 %v4463_v51, %v4158_v25  ;;  %v883_v25 = vmul.f32 %v4474_v30, %v4465_v50  ;;  %v886_v50 = vmul.f32 %v4474_v30, %v832_v61 }
 0x117   :  { %766 = vperm.xlu1 %3837, %v4123_v21   ;;  %v399_v3 = vadd.f32 %v383_v17, %v298_v53  ;;  %v289_v61 = vmul.f32 %v4414_v0, %v4351_v7 }
 0x118   :  { %v134_v55 = vpop.permute.xlu1 %133  ;;  %v498_v19 = vadd.f32 %v482_v62, %v397_v63 }
 0x119   :  { %v183_v6 = vmul.f32 %v4409_v34, %v134_v55  ;;  %v500_v63 = vadd.f32 %v484_v20, %v399_v3  ;;  %v787_v3 = vmul.f32 %v4463_v51, %v4171_v29  ;;  %v291_v29 = vmul.f32 %v4414_v0, %v4362_v9 }
 0x11a   :  { %v517_v21 = vpop.permute.xlu0 %516 }
 0x11b   :  { %v4519_v36 = vadd.f32 %v284_v31, %v183_v6  ;;  %v580_v1 = vmul.f32 %v4447_v24, %v517_v21  ;;  %774 = vperm.xlu1 %3837, %v4130_v22   ;;  %v5437_v22 = vmov 7   ;;  %v785_v21 = vmul.f32 %v4463_v51, %v4165_v27 }
 0x11c   :  { %v4523_v45 = vpop.permute.xlu1 %143 }
 0x11d   :  { %v596_v35 = vadd.f32 %v580_v1, %v495_v46 }
 0x11e   :  { %v529_v55 = vpop.permute.xlu0 %528 }
 0x11f   :  { %v697_v33 = vadd.f32 %v681_v40, %v596_v35  ;;  %v583_v44 = vmul.f32 %v4447_v24, %v529_v55  ;;  %3840 = vset.pattern.permute.xlu1 %v5437_v22  ;;  %v175_v55 = vmul.f32 %v4409_v34, %v4244_v41  ;;  %v888_v41 = vmul.f32 %v4474_v30, %v4496_v18 }
 0x120   :  { %851 = vperm.xlu1 %3840, %v4077_v14   ;;  %v149_v31 = vpop.permute.xlu1 %148  ;;  %v686_v14 = vmul.f32 %v4454_v52, %v4389_v5  ;;  %v276_v5 = vmul.f32 %v4414_v0, %v4286_v54 }
 0x121   :  { %v798_v6 = vadd.f32 %v782_v12, %v697_v33  ;;  %v599_v38 = vadd.f32 %v583_v44, %v498_v19  ;;  %v186_v17 = vmul.f32 %v4409_v34, %v149_v31  ;;  %v279_v44 = vmul.f32 %v4414_v0, %v4292_v56 }
 0x122   :  { %v537_v59 = vpop.permute.xlu0 %536  ;;  %v178_v56 = vmul.f32 %v4409_v34, %v4162_v26  ;;  %v292_v31 = vadd.f32 %v276_v5, %v175_v55  ;;  %v281_v26 = vmul.f32 %v4414_v0, %v4298_v58  ;;  %v185_v55 = vmul.f32 %v4409_v34, %v4523_v45 }
 0x123   :  { %v899_v46 = vadd.f32 %v883_v25, %v798_v6  ;;  %v700_v2 = vadd.f32 %v684_v13, %v599_v38  ;;  %v4545_v1 = vadd.f32 %v287_v57, %v186_v17  ;;  %v585_v23 = vmul.f32 %v4447_v24, %v537_v59 }
 0x124   :  { %855 = vperm.xlu1 %3840, %v4232_v37   ;;  %v159_v53 = vpop.permute.xlu1 %158  ;;  %v478_v38 = vmul.f32 %v4435_v4, %v4400_v39  ;;  %v295_v17 = vadd.f32 %v279_v44, %v178_v56  ;;  %v380_v39 = vmul.f32 %v4426_v10, %v4263_v47 }
 0x125   :  { %v922_v62 = vadd.f32 %v4481_v32, %v899_v46  ;;  %v801_v40 = vadd.f32 %v785_v21, %v700_v2  ;;  %v601_v27 = vadd.f32 %v585_v23, %v500_v63  ;;  %v188_v35 = vmul.f32 %v4409_v34, %v159_v53 }
 0x126   :  { %v4562_v37 = vpop.permute.xlu0 %548  ;;  %v184_v46 = vmul.f32 %v4409_v34, %v4269_v49  ;;  %v481_v49 = vmul.f32 %v4435_v4, %v4416_v8  ;;  %v5439_v8 = vld [vmem:[#allocation8_spill] sm:$0xff] }
 0x127   :  { %vm938_vm3 = vcmp.ge.f32.partialorder %v922_v62, 0.0  ;;  %v954_v12 = vmul.f32 0.2, %v922_v62  ;;  %v902_v33 = vadd.f32 %v886_v50, %v801_v40  ;;  %v702_v19 = vadd.f32 %v686_v14, %v601_v27 }
 0x128   :  { %v4570_v22 = vadd.f32 %v289_v61, %v188_v35  ;;  %863 = vperm.xlu1 %3840, %v4084_v15   ;;  %v169_v54 = vpop.permute.xlu1 %168  ;;  %v377_v15 = vmul.f32 %v4426_v10, %v4250_v43  ;;  %v386_v14 = vmul.f32 %v4426_v10, %v4386_v11  ;;  %v283_v40 = vmul.f32 %v4414_v0, %v4304_v60 }
 0x129   :  { %v970_v7 = vsel %vm938_vm3, %v922_v62, %v954_v12  ;;  %v925_v20 = vadd.f32 %v4481_v32, %v902_v33  ;;  %v803_v57 = vadd.f32 %v787_v3, %v702_v19  ;;  %v190_v13 = vmul.f32 %v4409_v34, %v169_v54  ;;  %v5438_v3 = vld [vmem:[#allocation17_spill] sm:$0xff]  ;;  %v5441_v33 = vld [vmem:[#allocation30_spill] sm:$0xff] }
 0x12a   :  { %986 = vst.msk [vmem:[#allocation2 + $0xa] sm:$0xff] %vm50_vm0, %v970_v7  ;;  %v4578_v9 = vpop.permute.xlu0 %560  ;;  %v393_v2 = vadd.f32 %v377_v15, %v292_v31  ;;  %v396_v27 = vadd.f32 %v380_v39, %v295_v17  ;;  %v579_v47 = vmul.f32 %v4447_v24, %v5438_v3  ;;  %v182_v61 = vmul.f32 %v4409_v34, %v5439_v8  ;;  %v5440_v12 = vld [vmem:[#allocation13_spill] sm:$0xff] }
 0x12b   :  { %vm941_vm4 = vcmp.ge.f32.partialorder %v925_v20, 0.0  ;;  %v957_v18 = vmul.f32 0.2, %v925_v20  ;;  %v904_v25 = vadd.f32 %v888_v41, %v803_v57  ;;  %v4580_v6 = vadd.f32 %v291_v29, %v190_v13  ;;  %v5442_v7 = vld [vmem:[#allocation9_spill] sm:$0xff]  ;;  %v5443_v57 = vld [vmem:[#allocation15_spill] sm:$0xff] }
 0x12c   :  { %871 = vperm.xlu1 %3840, %v4091_v16   ;;  %v180_v16 = vmul.f32 %v4409_v34, %v4168_v28  ;;  %v494_v50 = vadd.f32 %v478_v38, %v393_v2  ;;  %v382_v60 = vmul.f32 %v4426_v10, %v5440_v12  ;;  %v483_v19 = vmul.f32 %v4435_v4, %v5441_v33  ;;  %v5445_v38 = vld [vmem:[#allocation26_spill] sm:$0xff] }
 0x12d   :  { %v973_v21 = vsel %vm941_vm4, %v925_v20, %v957_v18  ;;  %v927_v59 = vadd.f32 %v4481_v32, %v904_v25  ;;  %v246_v63 = vpop.permute.xlu1 %245  ;;  %v497_v29 = vadd.f32 %v481_v49, %v396_v27  ;;  %v882_v20 = vmul.f32 %v4474_v30, %v5442_v7  ;;  %v5444_v25 = vld [vmem:[#allocation22_spill] sm:$0xff]  ;;  %v5450_v27 = vld [vmem:[#allocation23_spill] sm:$0xff] }
 0x12e   :  { %989 = vst.msk [vmem:[#allocation2 + $0x22] sm:$0xff] %vm50_vm0, %v973_v21  ;;  %v285_v43 = vmul.f32 %v4414_v0, %v246_v63  ;;  %v4594_v23 = vpop.permute.xlu0 %568  ;;  %v297_v62 = vadd.f32 %v281_v26, %v180_v16  ;;  %v595_v45 = vadd.f32 %v579_v47, %v494_v50  ;;  %v187_v13 = vmul.f32 %v4409_v34, %v5443_v57  ;;  %v5448_v16 = vld [vmem:[#allocation32_spill] sm:$0xff] }
 0x12f   :  { %vm943_vm5 = vcmp.ge.f32.partialorder %v927_v59, 0.0  ;;  %v959_v58 = vmul.f32 0.2, %v927_v59  ;;  %v299_v56 = vadd.f32 %v283_v40, %v182_v61  ;;  %v582_v15 = vmul.f32 %v4447_v24, %v5444_v25  ;;  %v5453_v57 = vld [vmem:[#allocation24_spill] sm:$0xff] }
 0x130   :  { %v301_v53 = vadd.f32 %v285_v43, %v184_v46  ;;  %v398_v31 = vadd.f32 %v382_v60, %v297_v62  ;;  %v781_v17 = vmul.f32 %v4463_v51, %v5445_v38  ;;  %v5447_v46 = vld [vmem:[#allocation25_spill] sm:$0xff]  ;;  %v485_v39 = vmul.f32 %v4435_v4, %v5448_v16  ;;  %v5449_v62 = vld [vmem:[#allocation16_spill] sm:$0xff]  ;;  %v5452_v60 = vld [vmem:[#allocation10_spill] sm:$0xff] }
 0x131   :  { %v975_v35 = vsel %vm943_vm5, %v927_v59, %v959_v58  ;;  %v250_v28 = vpop.permute.xlu1 %249  ;;  %v5446_v59 = vld [vmem:[#allocation14_spill] sm:$0xff]  ;;  %v389_v2 = vmul.f32 %v4426_v10, %v5447_v46  ;;  %v598_v49 = vadd.f32 %v582_v15, %v497_v29  ;;  %v189_v40 = vmul.f32 %v4409_v34, %v5449_v62 }
 0x132   :  { %991 = vst.msk [vmem:[#allocation2 + $0x32] sm:$0xff] %vm50_vm0, %v975_v35  ;;  %v286_v11 = vmul.f32 %v4414_v0, %v250_v28  ;;  %v4612_v5 = vadd.f32 %v386_v14, %v301_v53  ;;  %v384_v63 = vmul.f32 %v4426_v10, %v5446_v59  ;;  %v499_v43 = vadd.f32 %v483_v19, %v398_v31  ;;  %v5451_v28 = vld [vmem:[#allocation28_spill] sm:$0xff] }
 0x133   :  { %v614_v44 = vpop.permute.xlu0 %613  ;;  %v584_v35 = vmul.f32 %v4447_v24, %v5450_v27  ;;  %v784_v3 = vmul.f32 %v4463_v51, %v5451_v28  ;;  %v885_v33 = vmul.f32 %v4474_v30, %v5452_v60  ;;  %vm68_vm4 = vcmask 523264  }
 0x134   :  { %v4620_v41 = vadd.f32 %v286_v11, %v185_v55  ;;  %v680_v54 = vmul.f32 %v4454_v52, %v614_v44  ;;  %v400_v47 = vadd.f32 %v384_v63, %v299_v56  ;;  %v5455_v56 = vld [vmem:[#allocation29_spill] sm:$0xff] }
 0x135   :  { %v258_v18 = vpop.permute.xlu1 %257  ;;  %v600_v34 = vadd.f32 %v584_v35, %v499_v43  ;;  %v786_v31 = vmul.f32 %v4463_v51, %v5455_v56 }
 0x136   :  { %v696_v26 = vadd.f32 %v680_v54, %v595_v45  ;;  %v288_v21 = vmul.f32 %v4414_v0, %v258_v18  ;;  %v501_v19 = vadd.f32 %v485_v39, %v400_v47 }
 0x137   :  { %v626_v58 = vpop.permute.xlu0 %625 }
 0x138   :  { %v797_v14 = vadd.f32 %v781_v17, %v696_v26  ;;  %v304_v50 = vadd.f32 %v288_v21, %v187_v13  ;;  %v683_v53 = vmul.f32 %v4454_v52, %v626_v58  ;;  %v5454_v13 = vld [vmem:[#allocation27_spill] sm:$0xff] }
 0x139   :  { %v266_v55 = vpop.permute.xlu1 %265  ;;  %v5456_v17 = vld [vmem:[#allocation11_spill] sm:$0xff] }
 0x13a   :  { %v898_v11 = vadd.f32 %v882_v20, %v797_v14  ;;  %v699_v8 = vadd.f32 %v683_v53, %v598_v49  ;;  %v290_v61 = vmul.f32 %v4414_v0, %v266_v55  ;;  %v4646_v12 = vadd.f32 %v389_v2, %v304_v50  ;;  %v5457_v58 = vld [vmem:[#allocation31_spill] sm:$0xff] }
 0x13b   :  { %v634_v44 = vpop.permute.xlu0 %633  ;;  %v586_v20 = vmul.f32 %v4447_v24, %v5453_v57  ;;  %v391_v0 = vmul.f32 %v4426_v10, %v5454_v13  ;;  %v887_v26 = vmul.f32 %v4474_v30, %v5456_v17  ;;  %v788_v14 = vmul.f32 %v4463_v51, %v5457_v58  ;;  %v5460_v13 = vld [vmem:[#allocation34_spill] sm:$0xff] }
 0x13c   :  { %v921_v29 = vadd.f32 %v4481_v32, %v898_v11  ;;  %v800_v45 = vadd.f32 %v784_v3, %v699_v8  ;;  %v306_v54 = vadd.f32 %v290_v61, %v189_v40  ;;  %v685_v7 = vmul.f32 %v4454_v52, %v634_v44  ;;  %v5458_v3 = vld [vmem:[#allocation12_spill] sm:$0xff] }
 0x13d   :  { %v602_v63 = vadd.f32 %v586_v20, %v501_v19  ;;  %v486_v50 = vmul.f32 %v4435_v4, %v4468_v48  ;;  %v889_v47 = vmul.f32 %v4474_v30, %v5458_v3 }
 0x13e   :  { %vm937_vm6 = vcmp.ge.f32.partialorder %v921_v29, 0.0  ;;  %v953_v18 = vmul.f32 0.2, %v921_v29  ;;  %v901_v25 = vadd.f32 %v885_v33, %v800_v45  ;;  %v701_v15 = vadd.f32 %v685_v7, %v600_v34  ;;  %v343_v38 = vpop.permute.xlu1 %342  ;;  %v5459_v34 = vld [vmem:[#allocation33_spill] sm:$0xff] }
 0x13f   :  { %v385_v21 = vmul.f32 %v4426_v10, %v343_v38  ;;  %v642_v59 = vpop.permute.xlu0 %641  ;;  %v4661_v46 = vadd.f32 %v391_v0, %v306_v54  ;;  %v491_v0 = vmul.f32 %v4435_v4, %v5460_v13 }
 0x140   :  { %v969_v2 = vsel %vm937_vm6, %v921_v29, %v953_v18  ;;  %v924_v43 = vadd.f32 %v4481_v32, %v901_v25  ;;  %v802_v16 = vadd.f32 %v786_v31, %v701_v15  ;;  %v687_v39 = vmul.f32 %v4454_v52, %v642_v59 }
 0x141   :  { %985 = vst.msk [vmem:[#allocation2 + $0x2] sm:$0xff] %vm50_vm0, %v969_v2  ;;  %v401_v49 = vadd.f32 %v385_v21, %v4519_v36  ;;  %v489_v29 = vmul.f32 %v4435_v4, %v5459_v34  ;;  %v588_v21 = vmul.f32 %v4447_v24, %v4562_v37  ;;  %v4722_v37 = vld [vmem:[%s5387_s3 + $0x28] sm:$0xff]  }
 0x142   :  { %vm940_vm7 = vcmp.ge.f32.partialorder %v924_v43, 0.0  ;;  %v956_v53 = vmul.f32 0.2, %v924_v43  ;;  %v903_v62 = vadd.f32 %v887_v26, %v802_v16  ;;  %v703_v40 = vadd.f32 %v687_v39, %v602_v63  ;;  %v351_v27 = vpop.permute.xlu1 %350  ;;  %v4701_v26 = vld [vmem:[%s5387_s3 + $0x20] sm:$0xff]  }
 0x143   :  { %v387_v35 = vmul.f32 %v4426_v10, %v351_v27  ;;  %v4672_v28 = vadd.f32 %v486_v50, %v401_v49  ;;  %v5461_v50 = vmov 0.0   ;;  %v4742_v27 = vld [vmem:[%s5387_s3 + $0x40] sm:$0xff]  }
 0x144   :  { %v972_v55 = vsel %vm940_vm7, %v924_v43, %v956_v53  ;;  %v926_v11 = vadd.f32 %v4481_v32, %v903_v62  ;;  %v804_v48 = vadd.f32 %v788_v14, %v703_v40  ;;  %69 = vst.msk [vmem:[#allocation3] sm:$0xff] %vm68_vm4, %v5461_v50  ;;  %70 = vst.msk [vmem:[#allocation3 + $0x8] sm:$0xff] %vm68_vm4, %v5461_v50 }
 0x145   :  { %988 = vst.msk [vmem:[#allocation2 + $0x1a] sm:$0xff] %vm50_vm0, %v972_v55  ;;  %v403_v36 = vadd.f32 %v387_v35, %v4620_v41  ;;  %v4750_v55 = vld [vmem:[%s5387_s3 + $0x50] sm:$0xff]  }
 0x146   :  { %vm942_vm8 = vcmp.ge.f32.partialorder %v926_v11, 0.0  ;;  %v958_v8 = vmul.f32 0.2, %v926_v11  ;;  %v905_v61 = vadd.f32 %v889_v47, %v804_v48  ;;  %v355_v60 = vpop.permute.xlu1 %354  ;;  %71 = vst.msk [vmem:[#allocation3 + $0x10] sm:$0xff] %vm68_vm4, %v5461_v50  ;;  %72 = vst.msk [vmem:[#allocation3 + $0x18] sm:$0xff] %vm68_vm4, %v5461_v50 }
 0x147   :  { %v388_v33 = vmul.f32 %v4426_v10, %v355_v60  ;;  %73 = vst.msk [vmem:[#allocation3 + $0x20] sm:$0xff] %vm68_vm4, %v5461_v50 }
 0x148   :  { %v974_v19 = vsel %vm942_vm8, %v926_v11, %v958_v8  ;;  %v928_v44 = vadd.f32 %v4481_v32, %v905_v61 }
 0x149   :  { %990 = vst.msk [vmem:[#allocation2 + $0x2a] sm:$0xff] %vm50_vm0, %v974_v19  ;;  %v404_v45 = vadd.f32 %v388_v33, %v4545_v1  ;;  %v493_v1 = vmul.f32 %v4435_v4, %v4501_v42  ;;  %v4765_v33 = vld [vmem:[%s5387_s3 + $0x48] sm:$0xff]   ;;  %v593_v19 = vmul.f32 %v4447_v24, %v4594_v23 }
 0x14a   :  { %vm944_vm9 = vcmp.ge.f32.partialorder %v928_v44, 0.0  ;;  %v960_v54 = vmul.f32 0.2, %v928_v44  ;;  %v363_v7 = vpop.permute.xlu1 %362 }
 0x14b   :  { %v390_v41 = vmul.f32 %v4426_v10, %v363_v7  ;;  %v4686_v57 = vadd.f32 %v489_v29, %v404_v45  ;;  %v4788_v45 = vld [vmem:[%s5387_s3 + $0x60] sm:$0xff]   ;;  %v4795_v7 = vld [vmem:[%s5387_s3 + $0x70] sm:$0xff]  }
 0x14c   :  { %v976_v20 = vsel %vm944_vm9, %v928_v44, %v960_v54  ;;  %v1010_v17 = vld [vmem:[#allocation2 + $0x1] ss:$4 sm:$0xff]  ;;  %v1001_v59 = vld [vmem:[#allocation2] ss:$4 sm:$0xff]  ;;  %v1132_v3 = vld [vmem:[#allocation2 + $0x2] ss:$4 sm:$0xff] }
 0x14d   :  { %992 = vst.msk [vmem:[#allocation2 + $0x3a] sm:$0xff] %vm50_vm0, %v976_v20  ;;  %v406_v56 = vadd.f32 %v390_v41, %v4570_v22  ;;  %v4706_v22 = vld [vmem:[%s5387_s3 + $0x30] sm:$0xff]  }
 0x14e   :  { %v371_v31 = vpop.permute.xlu1 %370  ;;  %v1200_v47 = vld [vmem:[#allocation2 + $0x3] ss:$4 sm:$0xff]  ;;  %v1268_v23 = vld [vmem:[#allocation2 + $0x4] ss:$4 sm:$0xff] }
 0x14f   :  { %v392_v18 = vmul.f32 %v4426_v10, %v371_v31  ;;  %v4693_v25 = vadd.f32 %v491_v0, %v406_v56  ;;  %v4810_v31 = vld [vmem:[%s5387_s3 + $0x68] sm:$0xff]  }
 0x151   :  { %v408_v15 = vadd.f32 %v392_v18, %v4580_v6  ;;  %v4815_v18 = vld [vmem:[%s5387_s3 + $0x78] sm:$0xff]  }
 0x153   :  { %v448_v38 = vpop.permute.xlu1 %447  ;;  %v4708_v10 = vadd.f32 %v493_v1, %v408_v15 }
 0x154   :  { %v487_v42 = vmul.f32 %v4435_v4, %v448_v38  ;;  %v1012_v6 = vld [vmem:[#allocation2 + $0x21] ss:$4 sm:$0xff]  ;;  %v1003_v63 = vld [vmem:[#allocation2 + $0x20] ss:$4 sm:$0xff]  ;;  %v1134_v53 = vld [vmem:[#allocation2 + $0x22] ss:$4 sm:$0xff] }
 0x155   :  { %v1013_v2 = vpack.c.bf16 %v1012_v6, %v1010_v17  ;;  %v1004_v43 = vpack.c.bf16 %v1003_v63, %v1001_v59  ;;  %v1202_v62 = vld [vmem:[#allocation2 + $0x23] ss:$4 sm:$0xff]  ;;  %v1135_v11 = vpack.c.bf16 %v1134_v53, %v1132_v3  ;;  %v1270_v34 = vld [vmem:[#allocation2 + $0x24] ss:$4 sm:$0xff]  ;;  %v1338_v29 = vld [vmem:[#allocation2 + $0x25] ss:$4 sm:$0xff] }
 0x156   :  { %v503_v16 = vadd.f32 %v487_v42, %v4612_v5  ;;  %v4727_v5 = vld [vmem:[%s5387_s3 + $0x38] sm:$0xff]   ;;  %v1203_v48 = vpack.c.bf16 %v1202_v62, %v1200_v47  ;;  %v1271_v20 = vpack.c.bf16 %v1270_v34, %v1268_v23  ;;  %v5465_v53 = vld [vmem:[#allocation21_spill] sm:$0xff] }
 0x157   :  { %v452_v39 = vpop.permute.xlu1 %451  ;;  %3489 = vmatmul.mubr.msk.bf16.vlgmr.msra.gmra.mrb[0].mxu0 %vm50_vm0, %v1013_v2  ;;  %3497 = vmatmul.mubr.msk.bf16.vlgmr.msra.gmra.mrb[0].mxu1 %vm50_vm0, %v1004_v43  ;;  %v1406_v1 = vld [vmem:[#allocation2 + $0x26] ss:$4 sm:$0xff]  ;;  %v1474_v15 = vld [vmem:[#allocation2 + $0x27] ss:$4 sm:$0xff] }
 0x158   :  { %v488_v58 = vmul.f32 %v4435_v4, %v452_v39  ;;  %3501 = vmatpush3.bf16.msra.mxu0 %v4701_v26  ;;  %3509 = vmatpush3.bf16.msra.mxu1 %v4706_v22  ;;  %v4729_v14 = vadd.f32 %v588_v21, %v503_v16  ;;  %v1404_v17 = vld [vmem:[#allocation2 + $0x6] ss:$4 sm:$0xff]  ;;  %v1472_v21 = vld [vmem:[#allocation2 + $0x7] ss:$4 sm:$0xff] }
 0x159   :  { %3502 = vmatprep.subr.bf16.mxu0 %v5461_v50  ;;  %3510 = vmatprep.subr.bf16.mxu1 %v5461_v50  ;;  %v1407_v6 = vpack.c.bf16 %v1406_v1, %v1404_v17  ;;  %v1475_v59 = vpack.c.bf16 %v1474_v15, %v1472_v21  ;;  %v5462_v2 = vld [vmem:[#allocation18_spill] sm:$0xff]  ;;  %v5463_v43 = vld [vmem:[#allocation19_spill] sm:$0xff] }
 0x15a   :  { %v4733_v49 = vadd.f32 %v488_v58, %v403_v36  ;;  %3504 = vmatprep.mubr.msk.bf16.mxu0 %vm3926_vm1, %v5461_v50  ;;  %3512 = vmatprep.mubr.msk.bf16.mxu1 %vm3926_vm1, %v5461_v50  ;;  %v591_v36 = vmul.f32 %v4447_v24, %v4578_v9  ;;  %v4770_v9 = vld [vmem:[%s5387_s3 + $0x58] sm:$0xff]  }
 0x15b   :  { %v460_v40 = vpop.permute.xlu1 %459  ;;  %v5464_v58 = vld [vmem:[#allocation20_spill] sm:$0xff] }
 0x15c   :  { %v490_v35 = vmul.f32 %v4435_v4, %v460_v40  ;;  %3503 = vmatpush3.bf16.msra.mxu0 %v4722_v37  ;;  %3511 = vmatpush3.bf16.msra.mxu1 %v4727_v5 }
 0x15d   :  { %3516 = vmatprep.subr.bf16.mxu0 %v5461_v50  ;;  %3524 = vmatprep.subr.bf16.mxu1 %v5461_v50 }
 0x15e   :  { %v506_v8 = vadd.f32 %v490_v35, %v4646_v12 }
 0x15f   :  { %v468_v61 = vpop.permute.xlu1 %467  ;;  %3505 = vmatmul.mubr.msk.bf16.vlgmr.msra.gmra.mrb[4].mxu0 %vm50_vm0, %v1135_v11  ;;  %3513 = vmatmul.mubr.msk.bf16.vlgmr.msra.gmra.mrb[4].mxu1 %vm50_vm0, %v1203_v48 }
 0x160   :  { %v492_v60 = vmul.f32 %v4435_v4, %v468_v61  ;;  %3517 = vmatpush3.bf16.msra.mxu0 %v4742_v27  ;;  %3525 = vmatpush3.bf16.msra.mxu1 %v4750_v55  ;;  %v4772_v12 = vadd.f32 %v591_v36, %v506_v8  ;;  %v4776_v4 = vpop.permute.xlu0 %645 }
 0x161   :  { %3518 = vmatprep.subr.bf16.mxu0 %v5461_v50  ;;  %3526 = vmatprep.subr.bf16.mxu1 %v5461_v50  ;;  %v688_v61 = vmul.f32 %v4454_v52, %v4776_v4 }
 0x162   :  { %v508_v44 = vadd.f32 %v492_v60, %v4661_v46  ;;  %3520 = vmatprep.mubr.msk.bf16.mxu0 %vm3926_vm1, %v5461_v50  ;;  %3528 = vmatprep.mubr.msk.bf16.mxu1 %vm3926_vm1, %v5461_v50  ;;  %v1336_v46 = vld [vmem:[#allocation2 + $0x5] ss:$4 sm:$0xff] }
 0x163   :  { %v1339_v13 = vpack.c.bf16 %v1338_v29, %v1336_v46 }
 0x164   :  { %v545_v54 = vpop.permute.xlu1 %544  ;;  %3519 = vmatpush3.bf16.msra.mxu0 %v4765_v33  ;;  %3527 = vmatpush3.bf16.msra.mxu1 %v4770_v9  ;;  %v4797_v41 = vadd.f32 %v593_v19, %v508_v44  ;;  %v658_v0 = vpop.permute.xlu0 %657 }
 0x165   :  { %3532 = vmatprep.subr.bf16.mxu0 %v5461_v50  ;;  %3540 = vmatprep.subr.bf16.mxu1 %v5461_v50  ;;  %v587_v48 = vmul.f32 %v4447_v24, %v545_v54  ;;  %v691_v54 = vmul.f32 %v4454_v52, %v658_v0 }
 0x167   :  { %3521 = vmatmul.mubr.msk.bf16.vlgmr.msra.gmra.mrb[8].mxu0 %vm50_vm0, %v1271_v20  ;;  %3529 = vmatmul.mubr.msk.bf16.vlgmr.msra.gmra.mrb[8].mxu1 %vm50_vm0, %v1339_v13  ;;  %v603_v8 = vadd.f32 %v587_v48, %v4672_v28 }
 0x168   :  { %v4803_v56 = vpop.permute.xlu1 %552  ;;  %3533 = vmatpush3.bf16.msra.mxu0 %v4788_v45  ;;  %3541 = vmatpush3.bf16.msra.mxu1 %v4795_v7  ;;  %v666_v42 = vpop.permute.xlu0 %665 }
 0x169   :  { %3534 = vmatprep.subr.bf16.mxu0 %v5461_v50  ;;  %3542 = vmatprep.subr.bf16.mxu1 %v5461_v50  ;;  %v704_v34 = vadd.f32 %v688_v61, %v603_v8 }
 0x16a   :  { %3536 = vmatprep.mubr.msk.bf16.mxu0 %vm3926_vm1, %v5461_v50  ;;  %3544 = vmatprep.mubr.msk.bf16.mxu1 %vm3926_vm1, %v5461_v50 }
 0x16c   :  { %v557_v38 = vpop.permute.xlu1 %556  ;;  %3535 = vmatpush3.bf16.msra.mxu0 %v4810_v31  ;;  %3543 = vmatpush3.bf16.msra.mxu1 %v4815_v18  ;;  %v674_v16 = vpop.permute.xlu0 %673 }
 0x16d   :  { %3548 = vmatprep.subr.bf16.mxu0 %v5461_v50  ;;  %3556 = vmatprep.subr.bf16.mxu1 %v5461_v50  ;;  %v590_v19 = vmul.f32 %v4447_v24, %v557_v38  ;;  %v693_v38 = vmul.f32 %v4454_v52, %v666_v42 }
 0x16f   :  { %3537 = vmatmul.mubr.msk.bf16.vlgmr.msra.gmra.mrb[12].mxu0 %vm50_vm0, %v1407_v6  ;;  %3545 = vmatmul.mubr.msk.bf16.vlgmr.msra.gmra.mrb[12].mxu1 %vm50_vm0, %v1475_v59  ;;  %v606_v13 = vadd.f32 %v590_v19, %v4686_v57 }
 0x170   :  { %v565_v63 = vpop.permute.xlu1 %564  ;;  %3549 = vmatpush3.bf16.msra.mxu0 %v5462_v2  ;;  %3557 = vmatpush3.bf16.msra.mxu1 %v5463_v43  ;;  %v751_v62 = vpop.permute.xlu0 %750 }
 0x171   :  { %3550 = vmatprep.subr.bf16.mxu0 %v5461_v50  ;;  %3558 = vmatprep.subr.bf16.mxu1 %v5461_v50  ;;  %v592_v28 = vmul.f32 %v4447_v24, %v565_v63  ;;  %v707_v6 = vadd.f32 %v691_v54, %v606_v13  ;;  %v589_v13 = vmul.f32 %v4447_v24, %v4803_v56 }
 0x172   :  { %3552 = vmatprep.mubr.msk.bf16.mxu0 %vm3926_vm1, %v5461_v50  ;;  %3560 = vmatprep.mubr.msk.bf16.mxu1 %vm3926_vm1, %v5461_v50 }
 0x173   :  { %v608_v43 = vadd.f32 %v592_v28, %v4693_v25  ;;  %v695_v25 = vmul.f32 %v4454_v52, %v674_v16  ;;  %v790_v16 = vmul.f32 %v4463_v51, %v751_v62 }
 0x174   :  { %v573_v39 = vpop.permute.xlu1 %572  ;;  %3551 = vmatpush3.bf16.msra.mxu0 %v5464_v58  ;;  %3559 = vmatpush3.bf16.msra.mxu1 %v5465_v53  ;;  %v4841_v35 = vpop.permute.xlu0 %762 }
 0x175   :  { %3564 = vmatprep.subr.bf16.mxu0 %v5461_v50  ;;  %3572 = vmatprep.subr.bf16.mxu1 %v5461_v50  ;;  %v594_v21 = vmul.f32 %v4447_v24, %v573_v39  ;;  %v709_v8 = vadd.f32 %v693_v38, %v608_v43  ;;  %v605_v24 = vadd.f32 %v589_v13, %v4733_v49 }
 0x177   :  { %v610_v53 = vadd.f32 %v594_v21, %v4708_v10 }
 0x178   :  { %v4843_v11 = vpop.permute.xlu0 %770 }
 0x179   :  { %v650_v40 = vpop.permute.xlu1 %649 }
 0x17a   :  { %v689_v19 = vmul.f32 %v4454_v52, %v650_v40 }
 0x17c   :  { %v848_v60 = vpop.permute.xlu0 %847  ;;  %v705_v28 = vadd.f32 %v689_v19, %v4729_v14 }
 0x17d   :  { %v654_v3 = vpop.permute.xlu1 %653  ;;  %v890_v23 = vmul.f32 %v4474_v30, %v848_v60 }
 0x17e   :  { %v806_v56 = vadd.f32 %v790_v16, %v705_v28 }
 0x180   :  { %v860_v46 = vpop.permute.xlu0 %859 }
 0x181   :  { %v662_v47 = vpop.permute.xlu1 %661  ;;  %v893_v2 = vmul.f32 %v4474_v30, %v860_v46 }
 0x182   :  { %v692_v38 = vmul.f32 %v4454_v52, %v662_v47 }
 0x184   :  { %v868_v17 = vpop.permute.xlu0 %867  ;;  %v708_v47 = vadd.f32 %v692_v38, %v4772_v12 }
 0x185   :  { %v4846_v36 = vpop.permute.xlu1 %669  ;;  %v895_v61 = vmul.f32 %v4474_v30, %v868_v17  ;;  %v690_v17 = vmul.f32 %v4454_v52, %v654_v3 }
 0x188   :  { %v876_v60 = vpop.permute.xlu0 %875 }
 0x189   :  { %v897_v10 = vmul.f32 %v4474_v30, %v876_v60 }
 0x18a   :  { %v747_v44 = vpop.permute.xlu1 %746 }
 0x18b   :  { %v789_v29 = vmul.f32 %v4463_v51, %v747_v44 }
 0x18d   :  { %v805_v20 = vadd.f32 %v789_v29, %v704_v34  ;;  %v711_v29 = vadd.f32 %v695_v25, %v610_v53 }
 0x18e   :  { %v755_v1 = vpop.permute.xlu1 %754 }
 0x18f   :  { %v906_v15 = vadd.f32 %v890_v23, %v805_v20  ;;  %v791_v14 = vmul.f32 %v4463_v51, %v755_v1  ;;  %v694_v1 = vmul.f32 %v4454_v52, %v4846_v36 }
 0x191   :  { %v929_v4 = vadd.f32 %v4481_v32, %v906_v15  ;;  %v710_v60 = vadd.f32 %v694_v1, %v4797_v41 }
 0x192   :  { %v759_v59 = vpop.permute.xlu1 %758 }
 0x193   :  { %vm945_vm10 = vcmp.ge.f32.partialorder %v929_v4, 0.0  ;;  %v961_v0 = vmul.f32 0.2, %v929_v4  ;;  %v792_v57 = vmul.f32 %v4463_v51, %v759_v59 }
 0x195   :  { %v977_v58 = vsel %vm945_vm10, %v929_v4, %v961_v0  ;;  %v808_v63 = vadd.f32 %v792_v57, %v707_v6  ;;  %v706_v0 = vadd.f32 %v690_v17, %v605_v24  ;;  %v793_v57 = vmul.f32 %v4463_v51, %v4841_v35 }
 0x196   :  { %993 = vst.msk [vmem:[#allocation2 + $0x46] sm:$0xff] %vm50_vm0, %v977_v58  ;;  %v767_v48 = vpop.permute.xlu1 %766  ;;  %v795_v35 = vmul.f32 %v4463_v51, %v4843_v11 }
 0x197   :  { %v909_v42 = vadd.f32 %v893_v2, %v808_v63  ;;  %v794_v39 = vmul.f32 %v4463_v51, %v767_v48  ;;  %v807_v63 = vadd.f32 %v791_v14, %v706_v0 }
 0x199   :  { %v932_v44 = vadd.f32 %v4481_v32, %v909_v42  ;;  %v810_v34 = vadd.f32 %v794_v39, %v709_v8  ;;  %v809_v39 = vadd.f32 %v793_v57, %v708_v47 }
 0x19a   :  { %v775_v23 = vpop.permute.xlu1 %774 }
 0x19b   :  { %vm948_vm11 = vcmp.ge.f32.partialorder %v932_v44, 0.0  ;;  %v964_v46 = vmul.f32 0.2, %v932_v44  ;;  %v911_v20 = vadd.f32 %v895_v61, %v810_v34  ;;  %v796_v54 = vmul.f32 %v4463_v51, %v775_v23 }
 0x19d   :  { %v980_v40 = vsel %vm948_vm11, %v932_v44, %v964_v46  ;;  %v934_v15 = vadd.f32 %v4481_v32, %v911_v20  ;;  %v812_v4 = vadd.f32 %v796_v54, %v711_v29  ;;  %v811_v29 = vadd.f32 %v795_v35, %v710_v60 }
 0x19e   :  { %996 = vst.msk [vmem:[#allocation2 + $0x5e] sm:$0xff] %vm50_vm0, %v980_v40 }
 0x19f   :  { %vm950_vm12 = vcmp.ge.f32.partialorder %v934_v15, 0.0  ;;  %v966_v21 = vmul.f32 0.2, %v934_v15  ;;  %v913_v6 = vadd.f32 %v897_v10, %v812_v4  ;;  %v852_v59 = vpop.permute.xlu1 %851 }
 0x1a0   :  { %v891_v62 = vmul.f32 %v4474_v30, %v852_v59 }
 0x1a1   :  { %v982_v2 = vsel %vm950_vm12, %v934_v15, %v966_v21  ;;  %v936_v43 = vadd.f32 %v4481_v32, %v913_v6 }
 0x1a2   :  { %998 = vst.msk [vmem:[#allocation2 + $0x6e] sm:$0xff] %vm50_vm0, %v982_v2  ;;  %v907_v3 = vadd.f32 %v891_v62, %v806_v56 }
 0x1a3   :  { %vm952_vm13 = vcmp.ge.f32.partialorder %v936_v43, 0.0  ;;  %v968_v58 = vmul.f32 0.2, %v936_v43  ;;  %v856_v49 = vpop.permute.xlu1 %855 }
 0x1a4   :  { %v930_v53 = vadd.f32 %v4481_v32, %v907_v3  ;;  %v892_v48 = vmul.f32 %v4474_v30, %v856_v49 }
 0x1a5   :  { %v984_v42 = vsel %vm952_vm13, %v936_v43, %v968_v58 }
 0x1a6   :  { %1000 = vst.msk [vmem:[#allocation2 + $0x7e] sm:$0xff] %vm50_vm0, %v984_v42  ;;  %vm946_vm14 = vcmp.ge.f32.partialorder %v930_v53, 0.0  ;;  %v962_v8 = vmul.f32 0.2, %v930_v53  ;;  %v908_v12 = vadd.f32 %v892_v48, %v807_v63 }
 0x1a7   :  { %v864_v61 = vpop.permute.xlu1 %863 }
 0x1a8   :  { %v978_v25 = vsel %vm946_vm14, %v930_v53, %v962_v8  ;;  %v931_v52 = vadd.f32 %v4481_v32, %v908_v12  ;;  %v894_v36 = vmul.f32 %v4474_v30, %v864_v61 }
 0x1a9   :  { %994 = vst.msk [vmem:[#allocation2 + $0x4e] sm:$0xff] %vm50_vm0, %v978_v25 }
 0x1aa   :  { %vm947_vm15 = vcmp.ge.f32.partialorder %v931_v52, 0.0  ;;  %v963_v19 = vmul.f32 0.2, %v931_v52  ;;  %v910_v44 = vadd.f32 %v894_v36, %v809_v39 }
 0x1ab   :  { %v872_v34 = vpop.permute.xlu1 %871 }
 0x1ac   :  { %v979_v23 = vsel %vm947_vm15, %v931_v52, %v963_v19  ;;  %v933_v10 = vadd.f32 %v4481_v32, %v910_v44  ;;  %v896_v51 = vmul.f32 %v4474_v30, %v872_v34 }
 0x1ad   :  { %995 = vst.msk [vmem:[#allocation2 + $0x56] sm:$0xff] %vm50_vm0, %v979_v23 }
 0x1ae   :  { %vm949_vm2 = vcmp.ge.f32.partialorder %v933_v10, 0.0  ;;  %v965_v41 = vmul.f32 0.2, %v933_v10  ;;  %v912_v11 = vadd.f32 %v896_v51, %v811_v29 }
 0x1b0   :  { %v981_v46 = vsel %vm949_vm2, %v933_v10, %v965_v41  ;;  %v935_v20 = vadd.f32 %v4481_v32, %v912_v11 }
 0x1b1   :  { %997 = vst.msk [vmem:[#allocation2 + $0x66] sm:$0xff] %vm50_vm0, %v981_v46 }
 0x1b2   :  { %vm951_vm3 = vcmp.ge.f32.partialorder %v935_v20, 0.0  ;;  %v967_v54 = vmul.f32 0.2, %v935_v20 }
 0x1b4   :  { %v983_v13 = vsel %vm951_vm3, %v935_v20, %v967_v54  ;;  %v1576_v28 = vld [vmem:[#allocation2 + $0x45] ss:$4 sm:$0xff]  ;;  %v1571_v40 = vld [vmem:[#allocation2 + $0x44] ss:$4 sm:$0xff]  ;;  %v1720_v38 = vld [vmem:[#allocation2 + $0x47] ss:$4 sm:$0xff] }
 0x1b5   :  { %999 = vst.msk [vmem:[#allocation2 + $0x76] sm:$0xff] %vm50_vm0, %v983_v13  ;;  %v1771_v6 = vld [vmem:[#allocation2 + $0x48] ss:$4 sm:$0xff] }
 0x1b8   :  { %v1873_v24 = vld [vmem:[#allocation2 + $0x4a] ss:$4 sm:$0xff] }
 0x1bc   :  { %v1578_v16 = vld [vmem:[#allocation2 + $0x65] ss:$4 sm:$0xff]  ;;  %v1573_v15 = vld [vmem:[#allocation2 + $0x64] ss:$4 sm:$0xff]  ;;  %v1671_v32 = vld [vmem:[#allocation2 + $0x66] ss:$4 sm:$0xff] }
 0x1bd   :  { %v1579_v30 = vpack.c.bf16 %v1578_v16, %v1576_v28  ;;  %v1574_v4 = vpack.c.bf16 %v1573_v15, %v1571_v40  ;;  %v1722_v17 = vld [vmem:[#allocation2 + $0x67] ss:$4 sm:$0xff]  ;;  %v1824_v21 = vld [vmem:[#allocation2 + $0x69] ss:$4 sm:$0xff]  ;;  %v4966_v28 = vld [vmem:[%s5388_s4] ss:$0 sm:$0xff] }
 0x1bf   :  { %3553 = vmatmul.mubr.msk.bf16.vlgmr.msra.gmra.mrb[16].mxu0 %vm50_vm0, %v1579_v30  ;;  %3561 = vmatmul.mubr.msk.bf16.vlgmr.msra.gmra.mrb[16].mxu1 %vm50_vm0, %v1574_v4 }
 0x1c0   :  { %3565 = vmatpush3.bf16.msra.mxu0 %v4701_v26  ;;  %3573 = vmatpush3.bf16.msra.mxu1 %v4706_v22  ;;  %v1669_v26 = vld [vmem:[#allocation2 + $0x46] ss:$4 sm:$0xff] }
 0x1c1   :  { %3566 = vmatprep.subr.bf16.mxu0 %v5461_v50  ;;  %3574 = vmatprep.subr.bf16.mxu1 %v5461_v50  ;;  %v1672_v22 = vpack.c.bf16 %v1671_v32, %v1669_v26 }
 0x1c2   :  { %3568 = vmatprep.mubr.msk.bf16.mxu0 %vm3926_vm1, %v5461_v50  ;;  %3576 = vmatprep.mubr.msk.bf16.mxu1 %vm3926_vm1, %v5461_v50 }
 0x1c4   :  { %3567 = vmatpush3.bf16.msra.mxu0 %v4722_v37  ;;  %3575 = vmatpush3.bf16.msra.mxu1 %v4727_v5  ;;  %v1723_v37 = vpack.c.bf16 %v1722_v17, %v1720_v38  ;;  %v1773_v5 = vld [vmem:[#allocation2 + $0x68] ss:$4 sm:$0xff] }
 0x1c5   :  { %3580 = vmatprep.subr.bf16.mxu0 %v5461_v50  ;;  %3588 = vmatprep.subr.bf16.mxu1 %v5461_v50 }
 0x1c7   :  { %3569 = vmatmul.mubr.msk.bf16.vlgmr.msra.gmra.mrb[20].mxu0 %vm50_vm0, %v1672_v22  ;;  %3577 = vmatmul.mubr.msk.bf16.vlgmr.msra.gmra.mrb[20].mxu1 %vm50_vm0, %v1723_v37 }
 0x1c8   :  { %3581 = vmatpush3.bf16.msra.mxu0 %v4742_v27  ;;  %3589 = vmatpush3.bf16.msra.mxu1 %v4750_v55  ;;  %v1822_v27 = vld [vmem:[#allocation2 + $0x49] ss:$4 sm:$0xff]  ;;  %v1774_v55 = vpack.c.bf16 %v1773_v5, %v1771_v6 }
 0x1c9   :  { %3582 = vmatprep.subr.bf16.mxu0 %v5461_v50  ;;  %3590 = vmatprep.subr.bf16.mxu1 %v5461_v50  ;;  %v1825_v59 = vpack.c.bf16 %v1824_v21, %v1822_v27 }
 0x1ca   :  { %3584 = vmatprep.mubr.msk.bf16.mxu0 %vm3926_vm1, %v5461_v50  ;;  %3592 = vmatprep.mubr.msk.bf16.mxu1 %vm3926_vm1, %v5461_v50 }
 0x1cc   :  { %3583 = vmatpush3.bf16.msra.mxu0 %v4765_v33  ;;  %3591 = vmatpush3.bf16.msra.mxu1 %v4770_v9  ;;  %v1875_v33 = vld [vmem:[#allocation2 + $0x6a] ss:$4 sm:$0xff]  ;;  %v1926_v9 = vld [vmem:[#allocation2 + $0x6b] ss:$4 sm:$0xff] }
 0x1cd   :  { %3596 = vmatprep.subr.bf16.mxu0 %v5461_v50  ;;  %3604 = vmatprep.subr.bf16.mxu1 %v5461_v50  ;;  %v1876_v56 = vpack.c.bf16 %v1875_v33, %v1873_v24  ;;  %v4991_v33 = vld [vmem:[%s5391_s7 + $0x20] sm:$0xff]   ;;  %v5005_v24 = vld [vmem:[%s5391_s7 + $0x28] sm:$0xff]  }
 0x1cf   :  { %3585 = vmatmul.mubr.msk.bf16.vlgmr.msra.gmra.mrb[24].mxu0 %vm50_vm0, %v1774_v55  ;;  %3593 = vmatmul.mubr.msk.bf16.vlgmr.msra.gmra.mrb[24].mxu1 %vm50_vm0, %v1825_v59 }
 0x1d0   :  { %3597 = vmatpush3.bf16.msra.mxu0 %v4788_v45  ;;  %3605 = vmatpush3.bf16.msra.mxu1 %v4795_v7  ;;  %v1924_v45 = vld [vmem:[#allocation2 + $0x4b] ss:$4 sm:$0xff] }
 0x1d1   :  { %3598 = vmatprep.subr.bf16.mxu0 %v5461_v50  ;;  %3606 = vmatprep.subr.bf16.mxu1 %v5461_v50  ;;  %v1927_v7 = vpack.c.bf16 %v1926_v9, %v1924_v45  ;;  %v4996_v9 = vld [vmem:[%s5391_s7] sm:$0xff]   ;;  %v5010_v45 = vld [vmem:[%s5391_s7 + $0x8] sm:$0xff]  }
 0x1d2   :  { %3600 = vmatprep.mubr.msk.bf16.mxu0 %vm3926_vm1, %v5461_v50  ;;  %3608 = vmatprep.mubr.msk.bf16.mxu1 %vm3926_vm1, %v5461_v50 }
 0x1d4   :  { %3599 = vmatpush3.bf16.msra.mxu0 %v4810_v31  ;;  %3607 = vmatpush3.bf16.msra.mxu1 %v4815_v18 }
 0x1d5   :  { %3612 = vmatprep.subr.bf16.mxu0 %v5461_v50  ;;  %3624 = vmatprep.subr.bf16.mxu1 %v5461_v50 }
 0x1d7   :  { %3601 = vmatmul.mubr.msk.bf16.vlgmr.msra.gmra.mrb[28].mxu0 %vm50_vm0, %v1876_v56  ;;  %3609 = vmatmul.mubr.msk.bf16.vlgmr.msra.gmra.mrb[28].mxu1 %vm50_vm0, %v1927_v7  ;;  %v5019_v56 = vld [vmem:[%s5391_s7 + $0x30] sm:$0xff]  }
 0x1d8   :  { %3620 = vmatprep.mubr.msk.bf16.mxu0 %vm3926_vm1, %v5461_v50  ;;  %3632 = vmatprep.mubr.msk.bf16.mxu1 %vm3926_vm1, %v5461_v50  ;;  %v5024_v7 = vld [vmem:[%s5391_s7 + $0x10] sm:$0xff]  }
 0x1d9   :  { %3613 = vmatpush3.bf16.msra.mxu0 %v4991_v33  ;;  %3625 = vmatpush3.bf16.msra.mxu1 %v4996_v9 }
 0x1da   :  { %3614 = vmatprep.subr.bf16.mxu0 %v5461_v50  ;;  %3626 = vmatprep.subr.bf16.mxu1 %v5461_v50 }
 0x1dd   :  { %3615 = vmatpush3.bf16.msra.mxu0 %v5005_v24  ;;  %3627 = vmatpush3.bf16.msra.mxu1 %v5010_v45 }
 0x1de   :  { %3616 = vmatprep.subr.bf16.mxu0 %v5461_v50  ;;  %3628 = vmatprep.subr.bf16.mxu1 %v5461_v50 }
 0x1e1   :  { %3617 = vmatpush3.bf16.msra.mxu0 %v5019_v56  ;;  %3629 = vmatpush3.bf16.msra.mxu1 %v5024_v7 }
 0x1e2   :  { %3618 = vmatprep.subr.bf16.mxu0 %v5461_v50  ;;  %3630 = vmatprep.subr.bf16.mxu1 %v5461_v50 }
 0x22a   :  { %v1068_v31 = vpop.f32.mrb[0].mxu0  ;;  %v1124_v18 = vpop.f32.mrb[0].mxu1 }
 0x22b   :  { %v1125_v14 = vadd.f32 %v1124_v18, %v1068_v31  ;;  %v3490_v62 = vpop.f32.mrb[1].mxu0  ;;  %v3498_v2 = vpop.f32.mrb[1].mxu1  ;;  %v5031_v31 = vld [vmem:[%s5391_s7 + $0x38] sm:$0xff]  }
 0x22c   :  { %v1071_v43 = vpop.f32.mrb[2].mxu0  ;;  %v1127_v0 = vpop.f32.mrb[2].mxu1  ;;  %v5036_v18 = vld [vmem:[%s5391_s7 + $0x18] sm:$0xff]   ;;  %3619 = vmatpush3.bf16.msra.mxu0 %v5031_v31 }
 0x22d   :  { %v1128_v3 = vadd.f32 %v1127_v0, %v1071_v43  ;;  %v3491_v47 = vpop.f32.mrb[3].mxu0  ;;  %v3499_v57 = vpop.f32.mrb[3].mxu1  ;;  %3631 = vmatpush3.bf16.msra.mxu1 %v5036_v18  ;;  %3636 = vmatprep.subr.bf16.mxu0 %v5461_v50 }
 0x22e   :  { %3648 = vmatprep.subr.bf16.mxu1 %v5461_v50 }
 0x232   :  { %v1190_v58 = vpop.f32.mrb[4].mxu0  ;;  %v1258_v49 = vpop.f32.mrb[4].mxu1 }
 0x233   :  { %v1197_v1 = vadd.f32 %v1190_v58, %v1125_v14  ;;  %v3506_v63 = vpop.f32.mrb[5].mxu0  ;;  %v3514_v53 = vpop.f32.mrb[5].mxu1 }
 0x234   :  { %v1193_v48 = vpop.f32.mrb[6].mxu0  ;;  %v1261_v42 = vpop.f32.mrb[6].mxu1 }
 0x235   :  { %v1265_v8 = vadd.f32 %v1258_v49, %v1197_v1  ;;  %v1198_v12 = vadd.f32 %v1193_v48, %v1128_v3  ;;  %v3507_v39 = vpop.f32.mrb[7].mxu0  ;;  %v3515_v35 = vpop.f32.mrb[7].mxu1 }
 0x237   :  { %v1266_v61 = vadd.f32 %v1261_v42, %v1198_v12 }
 0x23a   :  { %v1326_v60 = vpop.f32.mrb[8].mxu0  ;;  %v1394_v25 = vpop.f32.mrb[8].mxu1 }
 0x23b   :  { %v1333_v52 = vadd.f32 %v1326_v60, %v1265_v8  ;;  %v3522_v36 = vpop.f32.mrb[9].mxu0  ;;  %v3530_v19 = vpop.f32.mrb[9].mxu1 }
 0x23c   :  { %v1329_v44 = vpop.f32.mrb[10].mxu0  ;;  %v1397_v34 = vpop.f32.mrb[10].mxu1 }
 0x23d   :  { %v1401_v29 = vadd.f32 %v1394_v25, %v1333_v52  ;;  %v1334_v23 = vadd.f32 %v1329_v44, %v1266_v61  ;;  %v3523_v10 = vpop.f32.mrb[11].mxu0  ;;  %v3531_v51 = vpop.f32.mrb[11].mxu1 }
 0x23f   :  { %v1402_v41 = vadd.f32 %v1397_v34, %v1334_v23 }
 0x242   :  { %v1462_v11 = vpop.f32.mrb[12].mxu0  ;;  %v1530_v46 = vpop.f32.mrb[12].mxu1 }
 0x243   :  { %v1469_v20 = vadd.f32 %v1462_v11, %v1401_v29  ;;  %v3538_v54 = vpop.f32.mrb[13].mxu0  ;;  %v3546_v13 = vpop.f32.mrb[13].mxu1 }
 0x244   :  { %v1465_v16 = vpop.f32.mrb[14].mxu0  ;;  %v1533_v40 = vpop.f32.mrb[14].mxu1 }
 0x245   :  { %v1537_v15 = vadd.f32 %v1530_v46, %v1469_v20  ;;  %v1470_v30 = vadd.f32 %v1465_v16, %v1402_v41  ;;  %v3539_v4 = vpop.f32.mrb[15].mxu0  ;;  %v3547_v32 = vpop.f32.mrb[15].mxu1 }
 0x247   :  { %v4969_v17 = vadd.f32 %v4966_v28, %v1537_v15  ;;  %v1538_v26 = vadd.f32 %v1533_v40, %v1470_v30 }
 0x249   :  { %v1558_v38 = vmul.f32 %v4969_v17, %v4969_v17  ;;  %v4974_v22 = vadd.f32 %v4966_v28, %v1538_v26  ;;  %v1548_v37 = vsel %vm68_vm4, %v4969_v17, 0.0 }
 0x24b   :  { %v1549_v5 = vsel %vm68_vm4, %v4974_v22, 0.0  ;;  %v1559_v21 = vmul.f32 %v4974_v22, %v4974_v22  ;;  %v1560_v27 = vsel %vm68_vm4, %v1558_v38, 0.0 }
 0x24c   :  { %v4982_v6 = vadd.f32 %v1549_v5, %v1548_v37 }
 0x24d   :  { %v1561_v55 = vsel %vm68_vm4, %v1559_v21, 0.0 }
 0x24e   :  { %v4986_v59 = vadd.f32 %v1561_v55, %v1560_v27  ;;  %v1551_v15 = vrot.slane %v4982_v6, 4 }
 0x250   :  { %v1563_v5 = vrot.slane %v4986_v59, 4  ;;  %v1552_v55 = vadd.f32 %v1551_v15, %v4982_v6 }
 0x292   :  { %v1617_v14 = vpop.f32.mrb[16].mxu0  ;;  %v1661_v62 = vpop.f32.mrb[16].mxu1 }
 0x293   :  { %v1662_v2 = vadd.f32 %v1661_v62, %v1617_v14  ;;  %v3554_v43 = vpop.f32.mrb[17].mxu0  ;;  %v3562_v0 = vpop.f32.mrb[17].mxu1 }
 0x294   :  { %v1620_v3 = vpop.f32.mrb[18].mxu0  ;;  %v1664_v47 = vpop.f32.mrb[18].mxu1 }
 0x295   :  { %v1665_v57 = vadd.f32 %v1664_v47, %v1620_v3  ;;  %v3555_v58 = vpop.f32.mrb[19].mxu0  ;;  %v3563_v49 = vpop.f32.mrb[19].mxu1  ;;  %v1553_v47 = vrot.slane %v1552_v55, 2 }
 0x297   :  { %v1554_v6 = vadd.f32 %v1553_v47, %v1552_v55 }
 0x29a   :  { %v1710_v1 = vpop.f32.mrb[20].mxu0  ;;  %v1761_v63 = vpop.f32.mrb[20].mxu1 }
 0x29b   :  { %v1717_v53 = vadd.f32 %v1710_v1, %v1662_v2  ;;  %v3570_v48 = vpop.f32.mrb[21].mxu0  ;;  %v3578_v42 = vpop.f32.mrb[21].mxu1  ;;  %v1564_v2 = vadd.f32 %v1563_v5, %v4986_v59 }
 0x29c   :  { %v1713_v8 = vpop.f32.mrb[22].mxu0  ;;  %v1764_v12 = vpop.f32.mrb[22].mxu1 }
 0x29d   :  { %v1768_v39 = vadd.f32 %v1761_v63, %v1717_v53  ;;  %v1718_v35 = vadd.f32 %v1713_v8, %v1665_v57  ;;  %v3571_v61 = vpop.f32.mrb[23].mxu0  ;;  %v3579_v60 = vpop.f32.mrb[23].mxu1  ;;  %v1565_v1 = vrot.slane %v1564_v2, 2 }
 0x29f   :  { %v1769_v25 = vadd.f32 %v1764_v12, %v1718_v35  ;;  %v1555_v12 = vrot.slane %v1554_v6, 1 }
 0x2a2   :  { %v1812_v52 = vpop.f32.mrb[24].mxu0  ;;  %v1863_v36 = vpop.f32.mrb[24].mxu1 }
 0x2a3   :  { %v1819_v19 = vadd.f32 %v1812_v52, %v1768_v39  ;;  %v3586_v44 = vpop.f32.mrb[25].mxu0  ;;  %v3594_v34 = vpop.f32.mrb[25].mxu1  ;;  %v1556_v52 = vadd.f32 %v1555_v12, %v1554_v6  ;;  %v5119_v12 = vld [vmem:[%s5391_s7 + $0x58] sm:$0xff]  }
 0x2a4   :  { %v1815_v29 = vpop.f32.mrb[26].mxu0  ;;  %v1866_v23 = vpop.f32.mrb[26].mxu1 }
 0x2a5   :  { %v1870_v10 = vadd.f32 %v1863_v36, %v1819_v19  ;;  %v1820_v51 = vadd.f32 %v1815_v29, %v1769_v25  ;;  %v3587_v41 = vpop.f32.mrb[27].mxu0  ;;  %v3595_v11 = vpop.f32.mrb[27].mxu1 }
 0x2a7   :  { %v1871_v46 = vadd.f32 %v1866_v23, %v1820_v51 }
 0x2aa   :  { %v1914_v20 = vpop.f32.mrb[28].mxu0  ;;  %v1965_v54 = vpop.f32.mrb[28].mxu1 }
 0x2ab   :  { %v1921_v13 = vadd.f32 %v1914_v20, %v1870_v10  ;;  %v3602_v16 = vpop.f32.mrb[29].mxu0  ;;  %v3610_v40 = vpop.f32.mrb[29].mxu1  ;;  %v2010_v20 = vlaneseq }
 0x2ac   :  { %v1917_v30 = vpop.f32.mrb[30].mxu0  ;;  %v1968_v4 = vpop.f32.mrb[30].mxu1 }
 0x2ad   :  { %v1972_v32 = vadd.f32 %v1965_v54, %v1921_v13  ;;  %v1922_v26 = vadd.f32 %v1917_v30, %v1871_v46  ;;  %v3603_v38 = vpop.f32.mrb[31].mxu0  ;;  %v3611_v37 = vpop.f32.mrb[31].mxu1  ;;  %v2011_v54 = vshrl.u32 %v2010_v20, 7  ;;  %v2002_v13 = vld [vmem:[%s5389_s5] sm:$0x1] }
 0x2ae   :  { %v2006_v30 = vld [vmem:[%s5390_s6] sm:$0x1] }
 0x2af   :  { %v1974_v21 = vadd.f32 %v4966_v28, %v1972_v32  ;;  %v1973_v27 = vadd.f32 %v1968_v4, %v1922_v26  ;;  %v5057_v16 = vsub.s32 0, %v2011_v54 }
 0x2b1   :  { %v1986_v14 = vmul.f32 %v1974_v21, %v1974_v21  ;;  %v1975_v62 = vadd.f32 %v4966_v28, %v1973_v27  ;;  %v1976_v43 = vsel %vm68_vm4, %v1974_v21, 0.0  ;;  %v1566_v28 = vadd.f32 %v1565_v1, %v1564_v2 }
 0x2b3   :  { %v1977_v0 = vsel %vm68_vm4, %v1975_v62, 0.0  ;;  %v1987_v3 = vmul.f32 %v1975_v62, %v1975_v62  ;;  %v1988_v58 = vsel %vm68_vm4, %v1986_v14, 0.0  ;;  %v1567_v61 = vrot.slane %v1566_v28, 1 }
 0x2b4   :  { %v1978_v57 = vadd.f32 %v1977_v0, %v1976_v43 }
 0x2b5   :  { %v1989_v49 = vsel %vm68_vm4, %v1987_v3, 0.0  ;;  %v1568_v44 = vadd.f32 %v1567_v61, %v1566_v28  ;;  %v5092_v28 = vld [vmem:[%s5391_s7 + $0x68] sm:$0xff]  }
 0x2b6   :  { %v1979_v63 = vrot.slane %v1978_v57, 4  ;;  %v1990_v53 = vadd.f32 %v1989_v49, %v1988_v58 }
 0x2b8   :  { %v1980_v48 = vadd.f32 %v1979_v63, %v1978_v57  ;;  %v1991_v42 = vrot.slane %v1990_v53, 4 }
 0x2ba   :  { %v1981_v8 = vrot.slane %v1980_v48, 2  ;;  %v1992_v59 = vadd.f32 %v1991_v42, %v1990_v53  ;;  %v5087_v42 = vld [vmem:[%s5391_s7 + $0x48] sm:$0xff]  }
 0x2bc   :  { %v1982_v39 = vadd.f32 %v1981_v8, %v1980_v48  ;;  %v1993_v35 = vrot.slane %v1992_v59, 2  ;;  %v5105_v8 = vld [vmem:[%s5391_s7 + $0x50] sm:$0xff]  }
 0x2be   :  { %v1983_v60 = vrot.slane %v1982_v39, 1  ;;  %v1994_v25 = vadd.f32 %v1993_v35, %v1992_v59  ;;  %v5110_v59 = vld [vmem:[%s5391_s7 + $0x70] sm:$0xff]  }
 0x2c0   :  { %v1984_v36 = vadd.f32 %v1983_v60, %v1982_v39  ;;  %v1995_v19 = vrot.slane %v1994_v25, 1  ;;  %v5124_v39 = vld [vmem:[%s5391_s7 + $0x78] sm:$0xff]   ;;  %v5133_v60 = vld [vmem:[%s5391_s7 + $0x80] sm:$0xff]  }
 0x2c2   :  { %v1985_v34 = vadd.f32 %v1984_v36, %v1556_v52  ;;  %v1996_v29 = vadd.f32 %v1995_v19, %v1994_v25  ;;  %v5138_v25 = vld [vmem:[%s5391_s7 + $0xa0] sm:$0xff]   ;;  %v5149_v19 = vld [vmem:[%s5391_s7 + $0x88] sm:$0xff]  }
 0x2c4   :  { %v1997_v23 = vadd.f32 %v1996_v29, %v1568_v44  ;;  %v1998_v10 = vmul.f32 0.03125, %v1985_v34  ;;  %v5154_v44 = vld [vmem:[%s5391_s7 + $0xa8] sm:$0xff]   ;;  %v5167_v34 = vld [vmem:[%s5391_s7 + $0x90] sm:$0xff]  }
 0x2c5   :  { %v5172_v29 = vld [vmem:[%s5391_s7 + $0xb0] sm:$0xff]  }
 0x2c6   :  { %v1999_v51 = vmul.f32 0.03125, %v1997_v23  ;;  %v2000_v41 = vmul.f32 %v1998_v10, %v1998_v10  ;;  %v5181_v23 = vld [vmem:[%s5391_s7 + $0x98] sm:$0xff]  }
 0x2c8   :  { %v2001_v11 = vsub.f32 %v1999_v51, %v2000_v41 }
 0x2ca   :  { %v2003_v46 = vadd.f32 1e-05, %v2001_v11  ;;  %v5195_v11 = vld [vmem:[%s5391_s7 + $0xc0] sm:$0xff]  }
 0x2cc   :  { %3889 = vrsqrt.f32 %v2003_v46  ;;  %v5200_v46 = vld [vmem:[%s5391_s7 + $0xe0] sm:$0xff]  }
 0x2d6   :  { %v3890_v40 = vpop.eup %3889 }
 0x2d7   :  { %v2005_v15 = vmul.f32 %v3890_v40, %v2002_v13  ;;  %v5211_v13 = vld [vmem:[%s5391_s7 + $0xc8] sm:$0xff]  }
 0x2d8   :  { %v5216_v40 = vld [vmem:[%s5391_s7 + $0xe8] sm:$0xff]  }
 0x2d9   :  { %v2007_v4 = vmul.f32 %v2005_v15, %v1998_v10  ;;  %v2013_v32 = vrot.slane %v2005_v15, %v5057_v16  ;;  %v5186_v10 = vld [vmem:[%s5391_s7 + $0xb8] sm:$0xff]   ;;  %v5229_v15 = vld [vmem:[%s5391_s7 + $0xd0] sm:$0xff]  }
 0x2db   :  { %v2008_v26 = vsub.f32 %v2006_v30, %v2007_v4  ;;  %v2015_v38 = vmul.f32 %v2013_v32, %v4969_v17  ;;  %v2016_v37 = vmul.f32 %v2013_v32, %v4974_v22  ;;  %v2031_v5 = vmul.f32 %v2013_v32, %v1974_v21  ;;  %v5073_v21 = vld [vmem:[%s5391_s7 + $0x40] sm:$0xff]   ;;  %v5234_v30 = vld [vmem:[%s5391_s7 + $0xf0] sm:$0xff]   ;;  %v5243_v4 = vld [vmem:[%s5391_s7 + $0xd8] sm:$0xff]  }
 0x2dc   :  { %v2032_v27 = vmul.f32 %v2013_v32, %v1975_v62  ;;  %v5078_v62 = vld [vmem:[%s5391_s7 + $0x60] sm:$0xff]   ;;  %v5248_v32 = vld [vmem:[%s5391_s7 + $0xf8] sm:$0xff]  }
 0x2dd   :  { %v2021_v55 = vrot.slane %v2008_v26, %v5057_v16 }
 0x2df   :  { %v2023_v14 = vadd.f32 %v2021_v55, %v2015_v38  ;;  %v2024_v2 = vadd.f32 %v2021_v55, %v2016_v37  ;;  %v2033_v43 = vadd.f32 %v2031_v5, %v2021_v55  ;;  %v2034_v0 = vadd.f32 %v2032_v27, %v2021_v55 }
 0x2e1   :  { %vm2025_vm0 = vcmp.ge.f32.partialorder %v2023_v14, 0.0  ;;  %vm2026_vm5 = vcmp.ge.f32.partialorder %v2024_v2, 0.0  ;;  %v2027_v3 = vmul.f32 0.2, %v2023_v14  ;;  %v2028_v47 = vmul.f32 0.2, %v2024_v2 }
 0x2e2   :  { %vm2035_vm6 = vcmp.ge.f32.partialorder %v2033_v43, 0.0  ;;  %vm2036_vm7 = vcmp.ge.f32.partialorder %v2034_v0, 0.0  ;;  %v2037_v57 = vmul.f32 0.2, %v2033_v43  ;;  %v2038_v58 = vmul.f32 0.2, %v2034_v0 }
 0x2e3   :  { %v2029_v49 = vsel %vm2025_vm0, %v2023_v14, %v2027_v3  ;;  %v2030_v17 = vsel %vm2026_vm5, %v2024_v2, %v2028_v47 }
 0x2e4   :  { %v2039_v1 = vsel %vm2035_vm6, %v2033_v43, %v2037_v57  ;;  %v2040_v22 = vsel %vm2036_vm7, %v2034_v0, %v2038_v58  ;;  %2041 = vst.msk [vmem:[#allocation3 + $0x2] sm:$0xff] %vm68_vm4, %v2029_v49  ;;  %2042 = vst.msk [vmem:[#allocation3 + $0xa] sm:$0xff] %vm68_vm4, %v2030_v17 }
 0x2e5   :  { %2043 = vst.msk [vmem:[#allocation3 + $0x16] sm:$0xff] %vm68_vm4, %v2039_v1  ;;  %2044 = vst.msk [vmem:[#allocation3 + $0x1e] sm:$0xff] %vm68_vm4, %v2040_v22 }
 0x2eb   :  { %v2056_v63 = vld [vmem:[#allocation3 + $0x1] ss:$4 sm:$0xf]  ;;  %v2045_v53 = vld [vmem:[#allocation3] ss:$4 sm:$0xf] }
 0x2ec   :  { %v2057_v6 = vpack.c.bf16 %v2056_v63, %v2056_v63  ;;  %v2046_v48 = vpack.c.bf16 %v2045_v53, %v2045_v53  ;;  %v2202_v35 = vld [vmem:[#allocation3 + $0x2] ss:$4 sm:$0xf]  ;;  %v2282_v61 = vld [vmem:[#allocation3 + $0x3] ss:$4 sm:$0xf] }
 0x2ed   :  { %v2203_v52 = vpack.c.bf16 %v2202_v35, %v2202_v35  ;;  %v2283_v36 = vpack.c.bf16 %v2282_v61, %v2282_v61  ;;  %v2362_v51 = vld [vmem:[#allocation3 + $0x4] ss:$4 sm:$0xf]  ;;  %v2442_v41 = vld [vmem:[#allocation3 + $0x5] ss:$4 sm:$0xf] }
 0x2ee   :  { %3621 = vmatmul.mubr.msk.bf16.vlgmr.msra.gmra.mrb[32].mxu0 %vm68_vm4, %v2057_v6  ;;  %3633 = vmatmul.mubr.msk.bf16.vlgmr.msra.gmra.mrb[32].mxu1 %vm68_vm4, %v2046_v48  ;;  %v2363_v20 = vpack.c.bf16 %v2362_v51, %v2362_v51  ;;  %v2443_v54 = vpack.c.bf16 %v2442_v41, %v2442_v41  ;;  %v2522_v26 = vld [vmem:[#allocation3 + $0x6] ss:$4 sm:$0xf]  ;;  %v2602_v38 = vld [vmem:[#allocation3 + $0x7] ss:$4 sm:$0xf] }
 0x2ef   :  { %3637 = vmatpush3.bf16.msra.mxu0 %v5073_v21  ;;  %3649 = vmatpush3.bf16.msra.mxu1 %v5078_v62  ;;  %v2523_v37 = vpack.c.bf16 %v2522_v26, %v2522_v26  ;;  %v2603_v5 = vpack.c.bf16 %v2602_v38, %v2602_v38  ;;  %v2894_v27 = vld [vmem:[#allocation3 + $0x18] ss:$4 sm:$0xf]  ;;  %v2941_v55 = vld [vmem:[#allocation3 + $0x19] ss:$4 sm:$0xf] }
 0x2f0   :  { %3638 = vmatprep.subr.bf16.mxu0 %v5461_v50  ;;  %3650 = vmatprep.subr.bf16.mxu1 %v5461_v50  ;;  %v2895_v14 = vpack.c.bf16 %v2894_v27, %v2894_v27  ;;  %v2942_v2 = vpack.c.bf16 %v2941_v55, %v2941_v55  ;;  %v2988_v43 = vld [vmem:[#allocation3 + $0x1a] ss:$4 sm:$0xf]  ;;  %v3035_v0 = vld [vmem:[#allocation3 + $0x1b] ss:$4 sm:$0xf] }
 0x2f1   :  { %3644 = vmatprep.mubr.msk.bf16.mxu0 %vm3926_vm1, %v5461_v50  ;;  %3656 = vmatprep.mubr.msk.bf16.mxu1 %vm3926_vm1, %v5461_v50  ;;  %v2989_v3 = vpack.c.bf16 %v2988_v43, %v2988_v43  ;;  %v3036_v47 = vpack.c.bf16 %v3035_v0, %v3035_v0 }
 0x2f3   :  { %3639 = vmatpush3.bf16.msra.mxu0 %v5087_v42  ;;  %3651 = vmatpush3.bf16.msra.mxu1 %v5092_v28 }
 0x2f4   :  { %3640 = vmatprep.subr.bf16.mxu0 %v5461_v50  ;;  %3652 = vmatprep.subr.bf16.mxu1 %v5461_v50 }
 0x2f7   :  { %3641 = vmatpush3.bf16.msra.mxu0 %v5105_v8  ;;  %3653 = vmatpush3.bf16.msra.mxu1 %v5110_v59 }
 0x2f8   :  { %3642 = vmatprep.subr.bf16.mxu0 %v5461_v50  ;;  %3654 = vmatprep.subr.bf16.mxu1 %v5461_v50 }
 0x2fb   :  { %3643 = vmatpush3.bf16.msra.mxu0 %v5119_v12  ;;  %3655 = vmatpush3.bf16.msra.mxu1 %v5124_v39 }
 0x2fc   :  { %3660 = vmatprep.subr.bf16.mxu0 %v5461_v50  ;;  %3672 = vmatprep.subr.bf16.mxu1 %v5461_v50 }
 0x2fe   :  { %3645 = vmatmul.mubr.msk.bf16.vlgmr.msra.gmra.mrb[36].mxu0 %vm68_vm4, %v2203_v52  ;;  %3657 = vmatmul.mubr.msk.bf16.vlgmr.msra.gmra.mrb[36].mxu1 %vm68_vm4, %v2283_v36 }
 0x2ff   :  { %3661 = vmatpush3.bf16.msra.mxu0 %v5133_v60  ;;  %3673 = vmatpush3.bf16.msra.mxu1 %v5138_v25 }
 0x300   :  { %3662 = vmatprep.subr.bf16.mxu0 %v5461_v50  ;;  %3674 = vmatprep.subr.bf16.mxu1 %v5461_v50 }
 0x301   :  { %3668 = vmatprep.mubr.msk.bf16.mxu0 %vm3926_vm1, %v5461_v50  ;;  %3680 = vmatprep.mubr.msk.bf16.mxu1 %vm3926_vm1, %v5461_v50 }
 0x303   :  { %3663 = vmatpush3.bf16.msra.mxu0 %v5149_v19  ;;  %3675 = vmatpush3.bf16.msra.mxu1 %v5154_v44 }
 0x304   :  { %3664 = vmatprep.subr.bf16.mxu0 %v5461_v50  ;;  %3676 = vmatprep.subr.bf16.mxu1 %v5461_v50 }
 0x307   :  { %3665 = vmatpush3.bf16.msra.mxu0 %v5167_v34  ;;  %3677 = vmatpush3.bf16.msra.mxu1 %v5172_v29 }
 0x308   :  { %3666 = vmatprep.subr.bf16.mxu0 %v5461_v50  ;;  %3678 = vmatprep.subr.bf16.mxu1 %v5461_v50 }
 0x30b   :  { %3667 = vmatpush3.bf16.msra.mxu0 %v5181_v23  ;;  %3679 = vmatpush3.bf16.msra.mxu1 %v5186_v10 }
 0x30c   :  { %3684 = vmatprep.subr.bf16.mxu0 %v5461_v50  ;;  %3696 = vmatprep.subr.bf16.mxu1 %v5461_v50 }
 0x30e   :  { %3669 = vmatmul.mubr.msk.bf16.vlgmr.msra.gmra.mrb[40].mxu0 %vm68_vm4, %v2363_v20  ;;  %3681 = vmatmul.mubr.msk.bf16.vlgmr.msra.gmra.mrb[40].mxu1 %vm68_vm4, %v2443_v54 }
 0x30f   :  { %3685 = vmatpush3.bf16.msra.mxu0 %v5195_v11  ;;  %3697 = vmatpush3.bf16.msra.mxu1 %v5200_v46 }
 0x310   :  { %3686 = vmatprep.subr.bf16.mxu0 %v5461_v50  ;;  %3698 = vmatprep.subr.bf16.mxu1 %v5461_v50 }
 0x311   :  { %3692 = vmatprep.mubr.msk.bf16.mxu0 %vm3926_vm1, %v5461_v50  ;;  %3704 = vmatprep.mubr.msk.bf16.mxu1 %vm3926_vm1, %v5461_v50 }
 0x313   :  { %3687 = vmatpush3.bf16.msra.mxu0 %v5211_v13  ;;  %3699 = vmatpush3.bf16.msra.mxu1 %v5216_v40 }
 0x314   :  { %3688 = vmatprep.subr.bf16.mxu0 %v5461_v50  ;;  %3700 = vmatprep.subr.bf16.mxu1 %v5461_v50 }
 0x317   :  { %3689 = vmatpush3.bf16.msra.mxu0 %v5229_v15  ;;  %3701 = vmatpush3.bf16.msra.mxu1 %v5234_v30 }
 0x318   :  { %3690 = vmatprep.subr.bf16.mxu0 %v5461_v50  ;;  %3702 = vmatprep.subr.bf16.mxu1 %v5461_v50 }
 0x31b   :  { %3691 = vmatpush3.bf16.msra.mxu0 %v5243_v4  ;;  %3703 = vmatpush3.bf16.msra.mxu1 %v5248_v32 }
 0x31c   :  { %3708 = vmatprep.subr.bf16.mxu0 %v5461_v50  ;;  %3720 = vmatprep.subr.bf16.mxu1 %v5461_v50 }
 0x31e   :  { %3693 = vmatmul.mubr.msk.bf16.vlgmr.msra.gmra.mrb[44].mxu0 %vm68_vm4, %v2523_v37  ;;  %3705 = vmatmul.mubr.msk.bf16.vlgmr.msra.gmra.mrb[44].mxu1 %vm68_vm4, %v2603_v5 }
 0x31f   :  { %3709 = vmatpush3.bf16.msra.mxu0 %v4991_v33  ;;  %3721 = vmatpush3.bf16.msra.mxu1 %v4996_v9  ;;  %v2711_v33 = vld [vmem:[#allocation3 + $0x15] ss:$4 sm:$0xf]  ;;  %v2708_v9 = vld [vmem:[#allocation3 + $0x14] ss:$4 sm:$0xf] }
 0x320   :  { %3710 = vmatprep.subr.bf16.mxu0 %v5461_v50  ;;  %3722 = vmatprep.subr.bf16.mxu1 %v5461_v50 }
 0x321   :  { %3716 = vmatprep.mubr.msk.bf16.mxu0 %vm3926_vm1, %v5461_v50  ;;  %3728 = vmatprep.mubr.msk.bf16.mxu1 %vm3926_vm1, %v5461_v50 }
 0x323   :  { %3711 = vmatpush3.bf16.msra.mxu0 %v5005_v24  ;;  %3723 = vmatpush3.bf16.msra.mxu1 %v5010_v45  ;;  %v2712_v24 = vpack.c.bf16 %v2711_v33, %v2711_v33  ;;  %v2709_v45 = vpack.c.bf16 %v2708_v9, %v2708_v9 }
 0x324   :  { %3712 = vmatprep.subr.bf16.mxu0 %v5461_v50  ;;  %3724 = vmatprep.subr.bf16.mxu1 %v5461_v50 }
 0x327   :  { %3713 = vmatpush3.bf16.msra.mxu0 %v5019_v56  ;;  %3725 = vmatpush3.bf16.msra.mxu1 %v5024_v7  ;;  %v2800_v56 = vld [vmem:[#allocation3 + $0x16] ss:$4 sm:$0xf]  ;;  %v2847_v7 = vld [vmem:[#allocation3 + $0x17] ss:$4 sm:$0xf] }
 0x328   :  { %3714 = vmatprep.subr.bf16.mxu0 %v5461_v50  ;;  %3726 = vmatprep.subr.bf16.mxu1 %v5461_v50 }
 0x32b   :  { %3715 = vmatpush3.bf16.msra.mxu0 %v5031_v31  ;;  %3727 = vmatpush3.bf16.msra.mxu1 %v5036_v18  ;;  %v2801_v31 = vpack.c.bf16 %v2800_v56, %v2800_v56  ;;  %v2848_v18 = vpack.c.bf16 %v2847_v7, %v2847_v7 }
 0x32c   :  { %3732 = vmatprep.subr.bf16.mxu0 %v5461_v50  ;;  %3744 = vmatprep.subr.bf16.mxu1 %v5461_v50 }
 0x32e   :  { %3717 = vmatmul.mubr.msk.bf16.vlgmr.msra.gmra.mrb[48].mxu0 %vm68_vm4, %v2712_v24  ;;  %3729 = vmatmul.mubr.msk.bf16.vlgmr.msra.gmra.mrb[48].mxu1 %vm68_vm4, %v2709_v45 }
 0x32f   :  { %3733 = vmatpush3.bf16.msra.mxu0 %v5073_v21  ;;  %3745 = vmatpush3.bf16.msra.mxu1 %v5078_v62 }
 0x330   :  { %3734 = vmatprep.subr.bf16.mxu0 %v5461_v50  ;;  %3746 = vmatprep.subr.bf16.mxu1 %v5461_v50 }
 0x331   :  { %3740 = vmatprep.mubr.msk.bf16.mxu0 %vm3926_vm1, %v5461_v50  ;;  %3752 = vmatprep.mubr.msk.bf16.mxu1 %vm3926_vm1, %v5461_v50 }
 0x333   :  { %3735 = vmatpush3.bf16.msra.mxu0 %v5087_v42  ;;  %3747 = vmatpush3.bf16.msra.mxu1 %v5092_v28 }
 0x334   :  { %3736 = vmatprep.subr.bf16.mxu0 %v5461_v50  ;;  %3748 = vmatprep.subr.bf16.mxu1 %v5461_v50 }
 0x337   :  { %3737 = vmatpush3.bf16.msra.mxu0 %v5105_v8  ;;  %3749 = vmatpush3.bf16.msra.mxu1 %v5110_v59 }
 0x338   :  { %3738 = vmatprep.subr.bf16.mxu0 %v5461_v50  ;;  %3750 = vmatprep.subr.bf16.mxu1 %v5461_v50 }
 0x33b   :  { %3739 = vmatpush3.bf16.msra.mxu0 %v5119_v12  ;;  %3751 = vmatpush3.bf16.msra.mxu1 %v5124_v39 }
 0x33c   :  { %3756 = vmatprep.subr.bf16.mxu0 %v5461_v50  ;;  %3768 = vmatprep.subr.bf16.mxu1 %v5461_v50 }
 0x33e   :  { %3741 = vmatmul.mubr.msk.bf16.vlgmr.msra.gmra.mrb[52].mxu0 %vm68_vm4, %v2801_v31  ;;  %3753 = vmatmul.mubr.msk.bf16.vlgmr.msra.gmra.mrb[52].mxu1 %vm68_vm4, %v2848_v18 }
 0x33f   :  { %3757 = vmatpush3.bf16.msra.mxu0 %v5133_v60  ;;  %3769 = vmatpush3.bf16.msra.mxu1 %v5138_v25 }
 0x340   :  { %3758 = vmatprep.subr.bf16.mxu0 %v5461_v50  ;;  %3770 = vmatprep.subr.bf16.mxu1 %v5461_v50 }
 0x341   :  { %3764 = vmatprep.mubr.msk.bf16.mxu0 %vm3926_vm1, %v5461_v50  ;;  %3776 = vmatprep.mubr.msk.bf16.mxu1 %vm3926_vm1, %v5461_v50 }
 0x343   :  { %3759 = vmatpush3.bf16.msra.mxu0 %v5149_v19  ;;  %3771 = vmatpush3.bf16.msra.mxu1 %v5154_v44 }
 0x344   :  { %3760 = vmatprep.subr.bf16.mxu0 %v5461_v50  ;;  %3772 = vmatprep.subr.bf16.mxu1 %v5461_v50 }
 0x347   :  { %3761 = vmatpush3.bf16.msra.mxu0 %v5167_v34  ;;  %3773 = vmatpush3.bf16.msra.mxu1 %v5172_v29 }
 0x348   :  { %3762 = vmatprep.subr.bf16.mxu0 %v5461_v50  ;;  %3774 = vmatprep.subr.bf16.mxu1 %v5461_v50 }
 0x34b   :  { %3763 = vmatpush3.bf16.msra.mxu0 %v5181_v23  ;;  %3775 = vmatpush3.bf16.msra.mxu1 %v5186_v10 }
 0x34c   :  { %3780 = vmatprep.subr.bf16.mxu0 %v5461_v50  ;;  %3792 = vmatprep.subr.bf16.mxu1 %v5461_v50 }
 0x34e   :  { %3765 = vmatmul.mubr.msk.bf16.vlgmr.msra.gmra.mrb[56].mxu0 %vm68_vm4, %v2895_v14  ;;  %3777 = vmatmul.mubr.msk.bf16.vlgmr.msra.gmra.mrb[56].mxu1 %vm68_vm4, %v2942_v2 }
 0x34f   :  { %3781 = vmatpush3.bf16.msra.mxu0 %v5195_v11  ;;  %3793 = vmatpush3.bf16.msra.mxu1 %v5200_v46 }
 0x350   :  { %3782 = vmatprep.subr.bf16.mxu0 %v5461_v50  ;;  %3794 = vmatprep.subr.bf16.mxu1 %v5461_v50 }
 0x351   :  { %3788 = vmatprep.mubr.msk.bf16.mxu0 %vm3926_vm1, %v5461_v50  ;;  %3800 = vmatprep.mubr.msk.bf16.mxu1 %vm3926_vm1, %v5461_v50  ;;  %vm2689_vm1 = vcmask 1043456  }
 0x353   :  { %3783 = vmatpush3.bf16.msra.mxu0 %v5211_v13  ;;  %3795 = vmatpush3.bf16.msra.mxu1 %v5216_v40 }
 0x354   :  { %3784 = vmatprep.subr.bf16.mxu0 %v5461_v50  ;;  %3796 = vmatprep.subr.bf16.mxu1 %v5461_v50 }
 0x357   :  { %3785 = vmatpush3.bf16.msra.mxu0 %v5229_v15  ;;  %3797 = vmatpush3.bf16.msra.mxu1 %v5234_v30 }
 0x358   :  { %3786 = vmatprep.subr.bf16.mxu0 %v5461_v50  ;;  %3798 = vmatprep.subr.bf16.mxu1 %v5461_v50 }
 0x35b   :  { %3787 = vmatpush3.bf16.msra.mxu0 %v5243_v4  ;;  %3799 = vmatpush3.bf16.msra.mxu1 %v5248_v32 }
 0x35e   :  { %3789 = vmatmul.mubr.msk.bf16.vlgmr.msra.gmra.mrb[60].mxu0 %vm68_vm4, %v2989_v3  ;;  %3801 = vmatmul.mubr.msk.bf16.vlgmr.msra.gmra.mrb[60].mxu1 %vm68_vm4, %v3036_v47 }
 0x3c1   :  { %v2128_v57 = vpop.f32.mrb[32].mxu0  ;;  %v2195_v58 = vpop.f32.mrb[32].mxu1 }
 0x3c2   :  { %v2196_v49 = vadd.f32 %v2195_v58, %v2128_v57  ;;  %v3622_v17 = vpop.f32.mrb[33].mxu0  ;;  %v3634_v1 = vpop.f32.mrb[33].mxu1  ;;  %v3347_v57 = vld [vmem:[%s5392_s8] ss:$0 sm:$0xff] }
 0x3c3   :  { %v2131_v22 = vpop.f32.mrb[34].mxu0  ;;  %v2198_v21 = vpop.f32.mrb[34].mxu1 }
 0x3c4   :  { %v3623_v50 = vpop.f32.mrb[35].mxu0  ;;  %v3635_v62 = vpop.f32.mrb[35].mxu1 }
 0x3d1   :  { %v2274_v63 = vpop.f32.mrb[36].mxu0  ;;  %v2354_v53 = vpop.f32.mrb[36].mxu1 }
 0x3d2   :  { %v2280_v6 = vadd.f32 %v2274_v63, %v2196_v49  ;;  %v3646_v48 = vpop.f32.mrb[37].mxu0  ;;  %v3658_v42 = vpop.f32.mrb[37].mxu1 }
 0x3d3   :  { %v2277_v28 = vpop.f32.mrb[38].mxu0  ;;  %v2357_v8 = vpop.f32.mrb[38].mxu1 }
 0x3d4   :  { %v2360_v59 = vadd.f32 %v2354_v53, %v2280_v6  ;;  %v3647_v12 = vpop.f32.mrb[39].mxu0  ;;  %v3659_v39 = vpop.f32.mrb[39].mxu1 }
 0x3e1   :  { %v2434_v35 = vpop.f32.mrb[40].mxu0  ;;  %v2514_v61 = vpop.f32.mrb[40].mxu1 }
 0x3e2   :  { %v2440_v60 = vadd.f32 %v2434_v35, %v2360_v59  ;;  %v3670_v25 = vpop.f32.mrb[41].mxu0  ;;  %v3682_v52 = vpop.f32.mrb[41].mxu1 }
 0x3e3   :  { %v2437_v36 = vpop.f32.mrb[42].mxu0  ;;  %v2517_v19 = vpop.f32.mrb[42].mxu1 }
 0x3e4   :  { %v2520_v44 = vadd.f32 %v2514_v61, %v2440_v60  ;;  %v3671_v34 = vpop.f32.mrb[43].mxu0  ;;  %v3683_v29 = vpop.f32.mrb[43].mxu1 }
 0x3f1   :  { %v2594_v23 = vpop.f32.mrb[44].mxu0  ;;  %v2674_v10 = vpop.f32.mrb[44].mxu1 }
 0x3f2   :  { %v2600_v51 = vadd.f32 %v2594_v23, %v2520_v44  ;;  %v3694_v41 = vpop.f32.mrb[45].mxu0  ;;  %v3706_v11 = vpop.f32.mrb[45].mxu1 }
 0x3f3   :  { %v2597_v46 = vpop.f32.mrb[46].mxu0  ;;  %v2677_v20 = vpop.f32.mrb[46].mxu1 }
 0x3f4   :  { %v2680_v54 = vadd.f32 %v2674_v10, %v2600_v51  ;;  %v3695_v13 = vpop.f32.mrb[47].mxu0  ;;  %v3707_v40 = vpop.f32.mrb[47].mxu1 }
 0x3f6   :  { %v2688_v21 = vadd.f32 %v3347_v57, %v2680_v54 }
 0x3f8   :  { %v2698_v50 = vmul.f32 %v2688_v21, %v2688_v21  ;;  %v2690_v62 = vsel %vm2689_vm1, %v2688_v21, 0.0 }
 0x3f9   :  { %v2691_v53 = vrot.slane %v2690_v62, 4 }
 0x3fa   :  { %v2699_v63 = vsel %vm2689_vm1, %v2698_v50, 0.0 }
 0x3fb   :  { %v2700_v6 = vrot.slane %v2699_v63, 4  ;;  %v2692_v12 = vadd.f32 %v2691_v53, %v2690_v62 }
 0x3fd   :  { %v2701_v52 = vadd.f32 %v2700_v6, %v2699_v63  ;;  %v2693_v19 = vrot.slane %v2692_v12, 2 }
 0x3ff   :  { %v2702_v29 = vrot.slane %v2701_v52, 2  ;;  %v2694_v51 = vadd.f32 %v2693_v19, %v2692_v12 }
 0x401   :  { %v2750_v15 = vpop.f32.mrb[48].mxu0  ;;  %v2793_v30 = vpop.f32.mrb[48].mxu1  ;;  %v2703_v46 = vadd.f32 %v2702_v29, %v2701_v52  ;;  %v2695_v13 = vrot.slane %v2694_v51, 1 }
 0x402   :  { %v2794_v4 = vadd.f32 %v2793_v30, %v2750_v15  ;;  %v3718_v32 = vpop.f32.mrb[49].mxu0  ;;  %v3730_v26 = vpop.f32.mrb[49].mxu1 }
 0x403   :  { %v2753_v38 = vpop.f32.mrb[50].mxu0  ;;  %v2796_v37 = vpop.f32.mrb[50].mxu1  ;;  %v2704_v30 = vrot.slane %v2703_v46, 1  ;;  %v2696_v26 = vadd.f32 %v2695_v13, %v2694_v51 }
 0x404   :  { %v3719_v5 = vpop.f32.mrb[51].mxu0  ;;  %v3731_v33 = vpop.f32.mrb[51].mxu1 }
 0x405   :  { %v2705_v5 = vadd.f32 %v2704_v30, %v2703_v46 }
 0x411   :  { %v2839_v9 = vpop.f32.mrb[52].mxu0  ;;  %v2886_v24 = vpop.f32.mrb[52].mxu1 }
 0x412   :  { %v2845_v45 = vadd.f32 %v2839_v9, %v2794_v4  ;;  %v3742_v56 = vpop.f32.mrb[53].mxu0  ;;  %v3754_v7 = vpop.f32.mrb[53].mxu1 }
 0x413   :  { %v2842_v31 = vpop.f32.mrb[54].mxu0  ;;  %v2889_v18 = vpop.f32.mrb[54].mxu1 }
 0x414   :  { %v2892_v27 = vadd.f32 %v2886_v24, %v2845_v45  ;;  %v3743_v55 = vpop.f32.mrb[55].mxu0  ;;  %v3755_v14 = vpop.f32.mrb[55].mxu1 }
 0x421   :  { %v2933_v2 = vpop.f32.mrb[56].mxu0  ;;  %v2980_v43 = vpop.f32.mrb[56].mxu1 }
 0x422   :  { %v2939_v0 = vadd.f32 %v2933_v2, %v2892_v27  ;;  %v3766_v3 = vpop.f32.mrb[57].mxu0  ;;  %v3778_v47 = vpop.f32.mrb[57].mxu1  ;;  %v3103_v27 = vld [vmem:[%s5393_s9] sm:$0x1]  ;;  %s3927_s9 = smov [#allocation5]  }
 0x423   :  { %v2936_v58 = vpop.f32.mrb[58].mxu0  ;;  %v2983_v49 = vpop.f32.mrb[58].mxu1  ;;  %v3107_v2 = vld [vmem:[%s5394_s10] sm:$0x1]  ;;  %s3169_s10 = sshll.u32 %s3927_s9, 4  ;;  %s3170_s10 = int_to_ptr.vmem [resolvable:$true] %s3169_s10 }
 0x424   :  { %v2986_v17 = vadd.f32 %v2980_v43, %v2939_v0  ;;  %v3767_v1 = vpop.f32.mrb[59].mxu0  ;;  %v3779_v22 = vpop.f32.mrb[59].mxu1  ;;  %p3898_p1 = scmp.lt.s32.totalorder %s3170_s10, %s3170_s10 }
 0x425   :  { %v3132_v1 = vld [vmem:[%s5395_s11] sm:$0xf]  ;;  %s3893_s11 = scalar_lea.vmem %s3170_s10, 128 }
 0x426   :  { %p3894_p0 = scmp.ne.s32.totalorder %s3170_s10, %s3893_s11  ;;  %p3899_p2 = scmp.lt.s32.totalorder %s3893_s11, %s3893_s11 }
 0x428   :  { %p3900_p3 = por %p3899_p2, %p3898_p1 }
 0x42a   :  { %p3901_p4 = pnand %p3900_p3, %p3894_p0 }
 0x431   :  { %v3027_v48 = vpop.f32.mrb[60].mxu0  ;;  %v3074_v42 = vpop.f32.mrb[60].mxu1 }
 0x432   :  { %v3033_v28 = vadd.f32 %v3027_v48, %v2986_v17  ;;  %v3790_v8 = vpop.f32.mrb[61].mxu0  ;;  %v3802_v59 = vpop.f32.mrb[61].mxu1 }
 0x433   :  { %v3030_v39 = vpop.f32.mrb[62].mxu0  ;;  %v3077_v35 = vpop.f32.mrb[62].mxu1 }
 0x434   :  { %v3080_v61 = vadd.f32 %v3074_v42, %v3033_v28  ;;  %v3791_v60 = vpop.f32.mrb[63].mxu0  ;;  %v3803_v25 = vpop.f32.mrb[63].mxu1 }
 0x436   :  { %v3081_v36 = vadd.f32 %v3347_v57, %v3080_v61 }
 0x438   :  { %v3082_v44 = vsel %vm2689_vm1, %v3081_v36, 0.0  ;;  %v3090_v34 = vmul.f32 %v3081_v36, %v3081_v36 }
 0x439   :  { %v3083_v23 = vrot.slane %v3082_v44, 4 }
 0x43a   :  { %v3091_v10 = vsel %vm2689_vm1, %v3090_v34, 0.0 }
 0x43b   :  { %v3084_v41 = vadd.f32 %v3083_v23, %v3082_v44  ;;  %v3092_v11 = vrot.slane %v3091_v10, 4 }
 0x43d   :  { %v3085_v20 = vrot.slane %v3084_v41, 2  ;;  %v3093_v54 = vadd.f32 %v3092_v11, %v3091_v10 }
 0x43f   :  { %v3086_v40 = vadd.f32 %v3085_v20, %v3084_v41  ;;  %v3094_v15 = vrot.slane %v3093_v54, 2 }
 0x441   :  { %v3087_v4 = vrot.slane %v3086_v40, 1  ;;  %v3095_v32 = vadd.f32 %v3094_v15, %v3093_v54 }
 0x443   :  { %v3088_v38 = vadd.f32 %v3087_v4, %v3086_v40  ;;  %v3096_v37 = vrot.slane %v3095_v32, 1 }
 0x445   :  { %v3089_v33 = vadd.f32 %v3088_v38, %v2696_v26  ;;  %v3097_v9 = vadd.f32 %v3096_v37, %v3095_v32 }
 0x447   :  { %v3098_v24 = vadd.f32 %v3097_v9, %v2705_v5  ;;  %v3099_v45 = vmul.f32 0.125, %v3089_v33 }
 0x449   :  { %v3100_v56 = vmul.f32 0.125, %v3098_v24  ;;  %v3101_v7 = vmul.f32 %v3099_v45, %v3099_v45 }
 0x44b   :  { %v3102_v31 = vsub.f32 %v3100_v56, %v3101_v7 }
 0x44d   :  { %v3104_v18 = vadd.f32 1e-05, %v3102_v31 }
 0x44f   :  { %3891 = vrsqrt.f32 %v3104_v18 }
 0x459   :  { %v3892_v55 = vpop.eup %3891 }
 0x45a   :  { %v3106_v14 = vmul.f32 %v3892_v55, %v3103_v27 }
 0x45c   :  { %v3108_v43 = vmul.f32 %v3106_v14, %v3099_v45  ;;  %v3114_v0 = vrot.slane %v3106_v14, %v5057_v16 }
 0x45e   :  { %v3109_v3 = vsub.f32 %v3107_v2, %v3108_v43  ;;  %v3116_v47 = vmul.f32 %v3114_v0, %v2688_v21  ;;  %v3127_v57 = vmul.f32 %v3114_v0, %v3081_v36 }
 0x460   :  { %v3121_v58 = vrot.slane %v3109_v3, %v5057_v16 }
 0x462   :  { %v3128_v49 = vadd.f32 %v3127_v57, %v3121_v58  ;;  %v3123_v17 = vadd.f32 %v3121_v58, %v3116_v47 }
 0x464   :  { %vm3129_vm8 = vcmp.ge.f32.partialorder %v3128_v49, 0.0  ;;  %v3130_v22 = vmul.f32 0.2, %v3128_v49  ;;  %vm3124_vm9 = vcmp.ge.f32.partialorder %v3123_v17, 0.0  ;;  %v3125_v50 = vmul.f32 0.2, %v3123_v17 }
 0x466   :  { %v3131_v62 = vsel %vm3129_vm8, %v3128_v49, %v3130_v22  ;;  %v3126_v63 = vsel %vm3124_vm9, %v3123_v17, %v3125_v50 }
 0x467   :  { %v3150_v53 = vmul.f32 %v3132_v1, %v3131_v62  ;;  %3149 = vst [vmem:[#allocation5 + $0x4] sm:$0xf] %v3131_v62  ;;  %v3135_v6 = vmul.f32 %v3132_v1, %v3126_v63  ;;  %3134 = vst [vmem:[#allocation5] sm:$0xf] %v3126_v63 }
 0x469   :  { %v3151_v21 = vsel %vm2689_vm1, %v3150_v53, 0.0  ;;  %v3136_v16 = vsel %vm2689_vm1, %v3135_v6, 0.0 }
 0x46a   :  { %3152 = vadd.xlane.f32.xlu0 %v3151_v21  ;;  %3137 = vadd.xlane.f32.xlu1 %v3136_v16 }
 0x46b   :  { %3904 = shalt.err (!%p3901_p4)
}
 0x46c   :  { %s3905_s25 = scalar_lea.hbm %s5397_s13, 128 }
 0x46d   :  { %p3906_p5 = scmp.ne.s32.totalorder %s5397_s13, %s3905_s25  ;;  %p3909_p6 = scmp.lt.u32.totalorder %s3905_s25, %s5397_s13 }
 0x46f   :  { %p3911_p7 = pnand %p3909_p6, %p3906_p5 }
 0x471   :  { %3914 = shalt.err (!%p3911_p7)
}
 0x472   :  { %3172 = dma.vmem_to_hbm [thread:$0]  %s3170_s10, 128, %s5397_s13, [#allocation6]   ;;  %v3133_v44 = vld [vmem:[#allocation4] sm:$0x1]  ;;  %vm3147_vm10 = vcmask 0  }
 0x4f7   :  { %v3153_v48 = vpop.xlane.xlu0 %3152  ;;  %v3138_v42 = vpop.xlane.xlu1 %3137 }
 0x4f8   :  { %v3154_v28 = vsel %vm2689_vm1, %v3153_v48, 0.0  ;;  %v3139_v8 = vsel %vm2689_vm1, %v3138_v42, 0.0 }
 0x4f9   :  { %v3155_v59 = vrot.slane %v3154_v28, 4  ;;  %v3140_v12 = vrot.slane %v3139_v8, 4 }
 0x4fb   :  { %v3156_v39 = vadd.f32 %v3155_v59, %v3154_v28  ;;  %v3141_v35 = vadd.f32 %v3140_v12, %v3139_v8 }
 0x4fd   :  { %v3157_v61 = vrot.slane %v3156_v39, 2  ;;  %v3142_v60 = vrot.slane %v3141_v35, 2 }
 0x4ff   :  { %v3158_v25 = vadd.f32 %v3157_v61, %v3156_v39  ;;  %v3143_v52 = vadd.f32 %v3142_v60, %v3141_v35 }
 0x501   :  { %v3159_v36 = vrot.slane %v3158_v25, 1  ;;  %v3144_v19 = vrot.slane %v3143_v52, 1 }
 0x503   :  { %v3160_v34 = vadd.f32 %v3159_v36, %v3158_v25  ;;  %v3145_v29 = vadd.f32 %v3144_v19, %v3143_v52 }
 0x505   :  { %v3161_v23 = vadd.f32 %v3160_v34, %v3133_v44  ;;  %v3146_v10 = vadd.f32 %v3145_v29, %v3133_v44 }
 0x507   :  { %3162 = vst.msk [vmem:[%s5398_s14 + $0x1] sm:$0x1] %vm3147_vm10, %v3161_v23  ;;  %3148 = vst.msk [vmem:[%s5398_s14] sm:$0x1] %vm3147_vm10, %v3146_v10 }
 0x508   :  { %3915 = dma.done.wait [#allocation6], 128  }
 0x509   :  { %3916 = vsyncadd [#allocation6], 4294967168 }
 0x50a   :  { %3180 = vsyncpa [#allocation6], 1 }

</bundles_post_ra>
